<compile_context>
chip_gen: v5e
topology: v5e:2x2
jax: 0.10.0
libtpu: 0.0.40
codegen_flags: <defaults>
</compile_context>

<pallas_src>
import jax
import jax.numpy as jnp
from jax import lax
from jax.experimental import pallas as pl
from jax.experimental.pallas import tpu as pltpu

f32 = jnp.float32
bf16 = jnp.bfloat16


def _make_kernel(B, H, W, Cin, c1, c2, c3, c4):
    c2_0, c2_1 = c2
    c3_0, c3_1 = c3
    BHW = B * H * W
    c_red = c1 + c2_0 + c3_0 + c4          # fused 1x1 output width
    c_out = c1 + c2_1 + c3_1 + c4          # final concat width

    def kernel(x_ref,
               wred_ref, bred_ref,
               w2b_ref, b2b_ref,
               w3b_ref, b3b_ref,
               o_ref,
               h2pad_ref, h2pack_ref, h3pad_ref, h3pack_ref, xpad_ref):
        relu = lambda v: jnp.maximum(v, 0.0)

        # Re-init only the thin border strips every grid step (the interior is
        # fully overwritten each step).  Not gated on program_id == 0: with the
        # batch axis marked "parallel" the steps may be megacore-sharded and
        # every core must initialize its own scratch borders.
        def init_border(ref, pad, fill):
            Bb, Hp, Wp, C = ref.shape
            ref[:, 0:pad, :, :] = jnp.full((Bb, pad, Wp, C), fill, ref.dtype)
            ref[:, Hp - pad:Hp, :, :] = jnp.full((Bb, pad, Wp, C), fill, ref.dtype)
            ref[:, :, 0:pad, :] = jnp.full((Bb, Hp, pad, C), fill, ref.dtype)
            ref[:, :, Wp - pad:Wp, :] = jnp.full((Bb, Hp, pad, C), fill, ref.dtype)

        x = x_ref[...]                                     # (B,H,W,Cin) bf16
        xf = x.reshape(BHW, Cin)

        # ---- branch-4 front half: 3x3 maxpool (stride 1, pad 1), separable.
        # TODO(synk): keep this max chain in f32 on v5e (no bf16 VPU ALU there).
        init_border(xpad_ref, 1, -jnp.inf)
        xpad_ref[:, 1:1 + H, 1:1 + W, :] = x
        rowmax = xpad_ref[:, :, 0:W, :]                    # (B, H+2, W, Cin)
        for dx in range(1, 3):
            rowmax = jnp.maximum(rowmax, xpad_ref[:, :, dx:dx + W, :])
        colmax = rowmax[:, 0:H, :, :]
        for dy in range(1, 3):
            colmax = jnp.maximum(colmax, rowmax[:, dy:dy + H, :, :])
        m = colmax.reshape(BHW, Cin)                       # bf16

        # ---- ALL four 1x1 convs fused in ONE block-diagonal matmul:
        #      [x | maxpool(x)] (BHW, 2*Cin) @ (2*Cin, c1+c2_0+c3_0+c4)
        lhs = jnp.concatenate([xf, m], axis=-1)
        red = jnp.dot(lhs, wred_ref[...], preferred_element_type=f32)
        red = relu(red + bred_ref[...])                    # (BHW, c_red) f32
        p1 = red[:, 0:c1]
        h2 = red[:, c1:c1 + c2_0]
        h3 = red[:, c1 + c2_0:c1 + c2_0 + c3_0]
        p4 = red[:, c1 + c2_0 + c3_0:c_red]

        # ---- k x k conv: column taps packed along the MXU K axis, so only k
        # row-tap matmuls with K = k*cin (instead of k*k matmuls with K = cin).
        def conv_kxk(h_flat, pad_ref, pack_ref, k, cin, cout, w_ref, b_ref):
            pad = k // 2
            init_border(pad_ref, pad, 0.0)
            pad_ref[:, pad:pad + H, pad:pad + W, :] = (
                h_flat.reshape(B, H, W, cin).astype(bf16))
            # k (possibly unaligned) W-window reads, packed lane-wise and
            # written back with a single lane-dense store.
            cols = [pad_ref[:, :, dx:dx + W, :] for dx in range(k)]
            pack_ref[...] = jnp.concatenate(cols, axis=-1)  # (B,H+2p,W,k*cin)
            acc = jnp.broadcast_to(b_ref[...], (BHW, cout)).astype(f32)
            # TODO(synk): chunk over H rows before scaling past toy sizes so
            # this accumulator stays within ~32 vregs.
            for dy in range(k):
                win = pack_ref[:, dy:dy + H, :, :].reshape(BHW, k * cin)
                acc = acc + jnp.dot(win, w_ref[dy],
                                    preferred_element_type=f32)
            return relu(acc)                               # (BHW, cout) f32

        p2 = conv_kxk(h2, h2pad_ref, h2pack_ref, 3, c2_0, c2_1, w2b_ref, b2b_ref)
        p3 = conv_kxk(h3, h3pad_ref, h3pack_ref, 5, c3_0, c3_1, w3b_ref, b3b_ref)

        # ---- single lane-dense store of the concatenated branches.
        out = jnp.concatenate([p1, p2, p3, p4], axis=-1)   # (BHW, c_out) f32
        o_ref[...] = out.reshape(B, H, W, c_out).astype(o_ref.dtype)

    return kernel


def _choose_batch_block(N, per_elem_bytes, weight_bytes):
    """Largest divisor of N that fits ~2/3 of VMEM and leaves >=min(N,4) steps
    (>=2 steps feeds both v7x TensorCores; >2 lets DMA pipeline under compute)."""
    try:
        info = pltpu.get_tpu_info()
        vmem_cap = int(getattr(info, "vmem_capacity_bytes", 64 << 20))
    except Exception:  # pragma: no cover - defensive fallback
        vmem_cap = 64 << 20
    budget = (2 * vmem_cap) // 3 - 2 * weight_bytes
    max_b = max(1, budget // max(1, per_elem_bytes))
    target_steps = min(N, 4)
    best = 1
    for b in range(1, N + 1):
        if N % b:
            continue
        if b > max_b or N // b < target_steps:
            continue
        best = max(best, b)
    return best


def inception_forward(x_nchw, params, *, batch_block=None):
    """Pallas Inception forward. Input/output are NCHW like the PyTorch module."""
    (w1, b1, w2a, b2a, w2b, b2b, w3a, b3a, w3b, b3b, w4, b4) = params
    Cin, c1 = w1.shape
    c2 = (w2a.shape[1], w2b.shape[-1])
    c3 = (w3a.shape[1], w3b.shape[-1])
    c4 = w4.shape[1]
    c_red = c1 + c2[0] + c3[0] + c4
    c_out = c1 + c2[1] + c3[1] + c4

    # NCHW -> NHWC and f32 -> bf16 fused in one wrapper pass: halves the
    # kernel's input DMA and the double-buffered x block.
    # TODO(synk): drop these transposes entirely if the host model is NHWC.
    x = jnp.transpose(x_nchw, (0, 2, 3, 1)).astype(bf16)
    N, H, W, _ = x.shape

    # Block-diagonal fused 1x1 weight acting on [x | maxpool(x)]:
    #   rows [0,Cin)    : [w1 | w2a | w3a | 0 ]
    #   rows [Cin,2Cin) : [0  | 0   | 0   | w4]
    top = jnp.concatenate([w1, w2a, w3a, jnp.zeros((Cin, c4), f32)], axis=1)
    bot = jnp.concatenate(
        [jnp.zeros((Cin, c1 + c2[0] + c3[0]), f32), w4], axis=1)
    w_red = jnp.concatenate([top, bot], axis=0).astype(bf16)    # (2Cin, c_red)
    b_red = jnp.concatenate([b1, b2a, b3a, b4], axis=1).astype(f32)

    # Column-tap packing of the kxk weights: (k*k, cin, cout) ->
    # (k, k*cin, cout), middle axis [dx-major, cin-minor] to match the packed
    # activation lane layout.
    w2b_p = (w2b.reshape(3, 3, c2[0], c2[1])
                 .reshape(3, 3 * c2[0], c2[1]).astype(bf16))
    w3b_p = (w3b.reshape(5, 5, c3[0], c3[1])
                 .reshape(5, 5 * c3[0], c3[1]).astype(bf16))

    flat_params = [w_red, b_red, w2b_p, b2b.astype(f32), w3b_p, b3b.astype(f32)]
    weight_bytes = sum(int(p.size) * p.dtype.itemsize for p in flat_params)

    # Per batch-element VMEM footprint (bf16 in/out double-buffered + scratch).
    scratch_bytes_per_elem = 2 * (
        (H + 2) * (W + 2) * c2[0]          # 3x3 zero-padded hidden
        + (H + 2) * W * 3 * c2[0]          # 3x3 column-tap packed
        + (H + 4) * (W + 4) * c3[0]        # 5x5 zero-padded hidden
        + (H + 4) * W * 5 * c3[0]          # 5x5 column-tap packed
        + (H + 2) * (W + 2) * Cin)         # maxpool -inf padded input
    io_bytes_per_elem = 2 * (H * W * Cin * 2 + H * W * c_out * 2)
    per_elem_bytes = io_bytes_per_elem + scratch_bytes_per_elem

    if batch_block is None:
        batch_block = _choose_batch_block(N, per_elem_bytes, weight_bytes)
    assert N % batch_block == 0, (N, batch_block)
    B = batch_block

    vmem_need = B * per_elem_bytes + 2 * weight_bytes + (4 << 20)
    vmem_limit = int(min(max(vmem_need, 32 << 20), 96 << 20))

    flops = 2 * N * H * W * (
        2 * Cin * c_red + 9 * c2[0] * c2[1] + 25 * c3[0] * c3[1])
    bytes_accessed = (N * H * W * Cin * 2 + N * H * W * c_out * 2
                      + weight_bytes)
    cost = pl.CostEstimate(flops=int(flops), transcendentals=0,
                           bytes_accessed=int(bytes_accessed))

    kernel = _make_kernel(B, H, W, Cin, c1, c2, c3, c4)

    def const_spec(a):
        nd = a.ndim
        return pl.BlockSpec(a.shape, lambda n, _nd=nd: (0,) * _nd)

    in_specs = ([pl.BlockSpec((B, H, W, Cin), lambda n: (n, 0, 0, 0))]
                + [const_spec(p) for p in flat_params])
    out_specs = pl.BlockSpec((B, H, W, c_out), lambda n: (n, 0, 0, 0))
    out_shape = jax.ShapeDtypeStruct((N, H, W, c_out), bf16)

    out = pl.pallas_call(
        kernel,
        out_shape=out_shape,
        grid_spec=pltpu.PrefetchScalarGridSpec(
            num_scalar_prefetch=0,
            grid=(N // B,),
            in_specs=in_specs,
            out_specs=out_specs,
            scratch_shapes=[
                pltpu.VMEM((B, H + 2, W + 2, c2[0]), bf16),     # 3x3 padded
                pltpu.VMEM((B, H + 2, W, 3 * c2[0]), bf16),     # 3x3 packed
                pltpu.VMEM((B, H + 4, W + 4, c3[0]), bf16),     # 5x5 padded
                pltpu.VMEM((B, H + 4, W, 5 * c3[0]), bf16),     # 5x5 packed
                pltpu.VMEM((B, H + 2, W + 2, Cin), bf16),       # maxpool pad
            ]),
        compiler_params=pltpu.CompilerParams(
            dimension_semantics=("parallel",),
            vmem_limit_bytes=vmem_limit),
        cost_estimate=cost,
    )(x, *flat_params)

    # bf16 output halves the writeback DMA; upcast fuses with the transpose.
    return jnp.transpose(out, (0, 3, 1, 2)).astype(f32)            # -> NCHW


def init_params(key, in_channels, c1, c2, c3, c4):
    """Deterministic synthetic parameters (bf16-exact f32 values).

    Conv weights are stored channels-last for the kernel:
      1x1 conv: (Cin, Cout);  kxk conv: (k*k, Cin, Cout);  biases: (1, Cout).
    """
    keys = jax.random.split(key, 12)

    def w(k, shape):
        v = jax.random.normal(k, shape, f32) * 0.1
        # bf16-exact so the in-kernel bf16 cast of weights is lossless.
        return v.astype(bf16).astype(f32)

    w1 = w(keys[0], (in_channels, c1));      b1 = w(keys[1], (1, c1))
    w2a = w(keys[2], (in_channels, c2[0]));  b2a = w(keys[3], (1, c2[0]))
    w2b = w(keys[4], (9, c2[0], c2[1]));     b2b = w(keys[5], (1, c2[1]))
    w3a = w(keys[6], (in_channels, c3[0]));  b3a = w(keys[7], (1, c3[0]))
    w3b = w(keys[8], (25, c3[0], c3[1]));    b3b = w(keys[9], (1, c3[1]))
    w4 = w(keys[10], (in_channels, c4));     b4 = w(keys[11], (1, c4))
    return (w1, b1, w2a, b2a, w2b, b2b, w3a, b3a, w3b, b3b, w4, b4)


def reference_forward(x_nchw, params):
    """Pure-JAX reference (matches PyTorch Inception.forward semantics)."""
    x = jnp.transpose(x_nchw, (0, 2, 3, 1)).astype(f32)
    (w1, b1, w2a, b2a, w2b, b2b, w3a, b3a, w3b, b3b, w4, b4) = params
    dn = ('NHWC', 'HWIO', 'NHWC')
    relu = lambda v: jnp.maximum(v, 0.0)

    def conv(inp, w_hwio, b, pad):
        out = lax.conv_general_dilated(inp, w_hwio, (1, 1),
                                       [(pad, pad), (pad, pad)],
                                       dimension_numbers=dn)
        return out + b.reshape(1, 1, 1, -1)

    p1 = relu(conv(x, w1.reshape(1, 1, *w1.shape), b1, 0))
    h2 = relu(conv(x, w2a.reshape(1, 1, *w2a.shape), b2a, 0))
    p2 = relu(conv(h2, w2b.reshape(3, 3, *w2b.shape[1:]), b2b, 1))
    h3 = relu(conv(x, w3a.reshape(1, 1, *w3a.shape), b3a, 0))
    p3 = relu(conv(h3, w3b.reshape(5, 5, *w3b.shape[1:]), b3b, 2))
    mp = lax.reduce_window(x, -jnp.inf, lax.max, (1, 3, 3, 1), (1, 1, 1, 1),
                           ((0, 0), (1, 1), (1, 1), (0, 0)))
    p4 = relu(conv(mp, w4.reshape(1, 1, *w4.shape), b4, 0))
    out = jnp.concatenate([p1, p2, p3, p4], axis=-1)
    return jnp.transpose(out, (0, 3, 1, 2))


if __name__ == "__main__":
    # Small shapes consistent with the module (NCHW input). Branch widths are
    # chosen so the fused output is exactly 128 lanes; N=4 gives a 4-step
    # "parallel" grid (megacore + DMA pipelining).
    N, Cin, H, W = 4, 16, 8, 8
    c1, c2, c3, c4 = 32, (16, 48), (8, 32), 16

    key = jax.random.PRNGKey(0)
    k_x, k_p = jax.random.split(key)
    x = jax.random.normal(k_x, (N, Cin, H, W), f32)
    params = init_params(k_p, Cin, c1, c2, c3, c4)

    out = inception_forward(x, params)
    out = jax.block_until_ready(out)

    ref = reference_forward(x, params)
    assert out.shape == (N, c1 + c2[1] + c3[1] + c4, H, W), out.shape
    max_err = jnp.max(jnp.abs(out - ref))
    # bf16 activations / bf16 output block feeding f32 MXU accumulation
    # (weights are bf16-exact) -> loose tolerance.
    assert jnp.allclose(out, ref, atol=3e-2, rtol=3e-2), \
        f"max abs diff = {max_err}"

    print("KERNEL_OK")
</pallas_src>

<mosaic_0001>
module attributes {stable_mosaic.version = 11 : i64} {
  func.func @kernel(%arg0: i32, %arg1: memref<1x8x8x16xbf16, #tpu.memory_space<vmem>>, %arg2: memref<32x72xbf16, #tpu.memory_space<vmem>>, %arg3: memref<1x72xf32, #tpu.memory_space<vmem>>, %arg4: memref<3x48x48xbf16, #tpu.memory_space<vmem>>, %arg5: memref<1x48xf32, #tpu.memory_space<vmem>>, %arg6: memref<5x40x32xbf16, #tpu.memory_space<vmem>>, %arg7: memref<1x32xf32, #tpu.memory_space<vmem>>, %arg8: memref<1x8x8x128xbf16, #tpu.memory_space<vmem>>, %arg9: memref<1x10x10x16xbf16, #tpu.memory_space<vmem>>, %arg10: memref<1x10x8x48xbf16, #tpu.memory_space<vmem>>, %arg11: memref<1x12x12x8xbf16, #tpu.memory_space<vmem>>, %arg12: memref<1x12x8x40xbf16, #tpu.memory_space<vmem>>, %arg13: memref<1x10x10x16xbf16, #tpu.memory_space<vmem>>) attributes {dimension_semantics = [#tpu.dimension_semantics<parallel>], iteration_bounds = array<i64: 4>, scalar_prefetch = 0 : i64, scratch_operands = 5 : i64, tpu.core_type = #tpu.core_type<tc>, window_params = [{transform_indices = @transform_0, window_bounds = array<i64: 1, 8, 8, 16>}, {pipeline_mode = #tpu.pipeline_mode<synchronous>, transform_indices = @transform_1, window_bounds = array<i64: 32, 72>}, {pipeline_mode = #tpu.pipeline_mode<synchronous>, transform_indices = @transform_2, window_bounds = array<i64: 1, 72>}, {pipeline_mode = #tpu.pipeline_mode<synchronous>, transform_indices = @transform_3, window_bounds = array<i64: 3, 48, 48>}, {pipeline_mode = #tpu.pipeline_mode<synchronous>, transform_indices = @transform_4, window_bounds = array<i64: 1, 48>}, {pipeline_mode = #tpu.pipeline_mode<synchronous>, transform_indices = @transform_5, window_bounds = array<i64: 5, 40, 32>}, {pipeline_mode = #tpu.pipeline_mode<synchronous>, transform_indices = @transform_6, window_bounds = array<i64: 1, 32>}, {transform_indices = @transform_7, window_bounds = array<i64: 1, 8, 8, 128>}]} {
    %c0 = arith.constant 0 : index
    %c0_0 = arith.constant 0 : index
    %c0_1 = arith.constant 0 : index
    %c0_2 = arith.constant 0 : index
    %0 = vector.load %arg1[%c0, %c0_0, %c0_1, %c0_2] : memref<1x8x8x16xbf16, #tpu.memory_space<vmem>>, vector<1x8x8x16xbf16>
    %1 = vector.shape_cast %0 : vector<1x8x8x16xbf16> to vector<64x16xbf16>
    %cst = arith.constant 0xFF80 : bf16
    %2 = vector.broadcast %cst : bf16 to vector<1x1x10x16xbf16>
    %c0_3 = arith.constant 0 : index
    %c0_4 = arith.constant 0 : index
    %c0_5 = arith.constant 0 : index
    %c0_6 = arith.constant 0 : index
    %3 = vector.load %arg13[%c0_3, %c0_4, %c0_5, %c0_6] : memref<1x10x10x16xbf16, #tpu.memory_space<vmem>>, vector<1x1x10x16xbf16>
    tpu.vector_store %arg13[%c0_3, %c0_4, %c0_5, %c0_6], %2 {strides = array<i32>} : memref<1x10x10x16xbf16, #tpu.memory_space<vmem>>, vector<1x1x10x16xbf16>,
    %cst_7 = arith.constant 0xFF80 : bf16
    %4 = vector.broadcast %cst_7 : bf16 to vector<1x1x10x16xbf16>
    %c0_8 = arith.constant 0 : index
    %c9 = arith.constant 9 : index
    %c0_9 = arith.constant 0 : index
    %c0_10 = arith.constant 0 : index
    %5 = vector.load %arg13[%c0_8, %c9, %c0_9, %c0_10] : memref<1x10x10x16xbf16, #tpu.memory_space<vmem>>, vector<1x1x10x16xbf16>
    tpu.vector_store %arg13[%c0_8, %c9, %c0_9, %c0_10], %4 {strides = array<i32>} : memref<1x10x10x16xbf16, #tpu.memory_space<vmem>>, vector<1x1x10x16xbf16>,
    %cst_11 = arith.constant 0xFF80 : bf16
    %6 = vector.broadcast %cst_11 : bf16 to vector<1x10x1x16xbf16>
    %c0_12 = arith.constant 0 : index
    %c0_13 = arith.constant 0 : index
    %c0_14 = arith.constant 0 : index
    %c0_15 = arith.constant 0 : index
    %7 = vector.load %arg13[%c0_12, %c0_13, %c0_14, %c0_15] : memref<1x10x10x16xbf16, #tpu.memory_space<vmem>>, vector<1x10x1x16xbf16>
    tpu.vector_store %arg13[%c0_12, %c0_13, %c0_14, %c0_15], %6 {strides = array<i32>} : memref<1x10x10x16xbf16, #tpu.memory_space<vmem>>, vector<1x10x1x16xbf16>,
    %cst_16 = arith.constant 0xFF80 : bf16
    %8 = vector.broadcast %cst_16 : bf16 to vector<1x10x1x16xbf16>
    %c0_17 = arith.constant 0 : index
    %c0_18 = arith.constant 0 : index
    %c9_19 = arith.constant 9 : index
    %c0_20 = arith.constant 0 : index
    %9 = vector.load %arg13[%c0_17, %c0_18, %c9_19, %c0_20] : memref<1x10x10x16xbf16, #tpu.memory_space<vmem>>, vector<1x10x1x16xbf16>
    tpu.vector_store %arg13[%c0_17, %c0_18, %c9_19, %c0_20], %8 {strides = array<i32>} : memref<1x10x10x16xbf16, #tpu.memory_space<vmem>>, vector<1x10x1x16xbf16>,
    %c0_21 = arith.constant 0 : index
    %c1 = arith.constant 1 : index
    %c1_22 = arith.constant 1 : index
    %c0_23 = arith.constant 0 : index
    %10 = vector.load %arg13[%c0_21, %c1, %c1_22, %c0_23] : memref<1x10x10x16xbf16, #tpu.memory_space<vmem>>, vector<1x8x8x16xbf16>
    tpu.vector_store %arg13[%c0_21, %c1, %c1_22, %c0_23], %0 {strides = array<i32>} : memref<1x10x10x16xbf16, #tpu.memory_space<vmem>>, vector<1x8x8x16xbf16>,
    %c0_24 = arith.constant 0 : index
    %c0_25 = arith.constant 0 : index
    %c0_26 = arith.constant 0 : index
    %c0_27 = arith.constant 0 : index
    %11 = vector.load %arg13[%c0_24, %c0_25, %c0_26, %c0_27] : memref<1x10x10x16xbf16, #tpu.memory_space<vmem>>, vector<1x10x8x16xbf16>
    %c0_28 = arith.constant 0 : index
    %c0_29 = arith.constant 0 : index
    %c1_30 = arith.constant 1 : index
    %c0_31 = arith.constant 0 : index
    %12 = vector.load %arg13[%c0_28, %c0_29, %c1_30, %c0_31] : memref<1x10x10x16xbf16, #tpu.memory_space<vmem>>, vector<1x10x8x16xbf16>
    %13 = arith.maximumf %11, %12 : vector<1x10x8x16xbf16>
    %c0_32 = arith.constant 0 : index
    %c0_33 = arith.constant 0 : index
    %c2 = arith.constant 2 : index
    %c0_34 = arith.constant 0 : index
    %14 = vector.load %arg13[%c0_32, %c0_33, %c2, %c0_34] : memref<1x10x10x16xbf16, #tpu.memory_space<vmem>>, vector<1x10x8x16xbf16>
    %15 = arith.maximumf %13, %14 : vector<1x10x8x16xbf16>
    %16 = vector.extract_strided_slice %15 {offsets = [0, 0, 0, 0], sizes = [1, 8, 8, 16], strides = [1, 1, 1, 1]} : vector<1x10x8x16xbf16> to vector<1x8x8x16xbf16>
    %17 = vector.extract_strided_slice %15 {offsets = [0, 1, 0, 0], sizes = [1, 8, 8, 16], strides = [1, 1, 1, 1]} : vector<1x10x8x16xbf16> to vector<1x8x8x16xbf16>
    %18 = arith.maximumf %16, %17 : vector<1x8x8x16xbf16>
    %19 = vector.extract_strided_slice %15 {offsets = [0, 2, 0, 0], sizes = [1, 8, 8, 16], strides = [1, 1, 1, 1]} : vector<1x10x8x16xbf16> to vector<1x8x8x16xbf16>
    %20 = arith.maximumf %18, %19 : vector<1x8x8x16xbf16>
    %21 = vector.shape_cast %20 : vector<1x8x8x16xbf16> to vector<64x16xbf16>
    %22 = tpu.concatenate %1, %21 in 1 : vector<64x16xbf16>, vector<64x16xbf16> -> vector<64x32xbf16>
    %c0_35 = arith.constant 0 : index
    %c0_36 = arith.constant 0 : index
    %23 = vector.load %arg2[%c0_35, %c0_36] : memref<32x72xbf16, #tpu.memory_space<vmem>>, vector<32x72xbf16>
    %cst_37 = arith.constant dense<0.000000e+00> : vector<64x72xf32>
    %24 = tpu.matmul %22, %23, %cst_37 {dimension_numbers = #tpu.dot_dimension_numbers<[1], [0], [0], [1], [0, 0, 1, 1], [], []>} : vector<64x32xbf16>, vector<32x72xbf16>, vector<64x72xf32> -> vector<64x72xf32>
    %c0_38 = arith.constant 0 : index
    %c0_39 = arith.constant 0 : index
    %25 = vector.load %arg3[%c0_38, %c0_39] : memref<1x72xf32, #tpu.memory_space<vmem>>, vector<1x72xf32>
    %26 = vector.broadcast %25 : vector<1x72xf32> to vector<64x72xf32>
    %27 = arith.addf %24, %26 : vector<64x72xf32>
    %cst_40 = arith.constant 0.000000e+00 : f32
    %28 = vector.broadcast %cst_40 : f32 to vector<64x72xf32>
    %29 = arith.maximumf %27, %28 : vector<64x72xf32>
    %30 = vector.extract_strided_slice %29 {offsets = [0, 0], sizes = [64, 32], strides = [1, 1]} : vector<64x72xf32> to vector<64x32xf32>
    %31 = vector.extract_strided_slice %29 {offsets = [0, 32], sizes = [64, 16], strides = [1, 1]} : vector<64x72xf32> to vector<64x16xf32>
    %32 = vector.extract_strided_slice %29 {offsets = [0, 48], sizes = [64, 8], strides = [1, 1]} : vector<64x72xf32> to vector<64x8xf32>
    %33 = vector.extract_strided_slice %29 {offsets = [0, 56], sizes = [64, 16], strides = [1, 1]} : vector<64x72xf32> to vector<64x16xf32>
    %cst_41 = arith.constant 0.000000e+00 : bf16
    %34 = vector.broadcast %cst_41 : bf16 to vector<1x1x10x16xbf16>
    %c0_42 = arith.constant 0 : index
    %c0_43 = arith.constant 0 : index
    %c0_44 = arith.constant 0 : index
    %c0_45 = arith.constant 0 : index
    %35 = vector.load %arg9[%c0_42, %c0_43, %c0_44, %c0_45] : memref<1x10x10x16xbf16, #tpu.memory_space<vmem>>, vector<1x1x10x16xbf16>
    tpu.vector_store %arg9[%c0_42, %c0_43, %c0_44, %c0_45], %34 {strides = array<i32>} : memref<1x10x10x16xbf16, #tpu.memory_space<vmem>>, vector<1x1x10x16xbf16>,
    %cst_46 = arith.constant 0.000000e+00 : bf16
    %36 = vector.broadcast %cst_46 : bf16 to vector<1x1x10x16xbf16>
    %c0_47 = arith.constant 0 : index
    %c9_48 = arith.constant 9 : index
    %c0_49 = arith.constant 0 : index
    %c0_50 = arith.constant 0 : index
    %37 = vector.load %arg9[%c0_47, %c9_48, %c0_49, %c0_50] : memref<1x10x10x16xbf16, #tpu.memory_space<vmem>>, vector<1x1x10x16xbf16>
    tpu.vector_store %arg9[%c0_47, %c9_48, %c0_49, %c0_50], %36 {strides = array<i32>} : memref<1x10x10x16xbf16, #tpu.memory_space<vmem>>, vector<1x1x10x16xbf16>,
    %cst_51 = arith.constant 0.000000e+00 : bf16
    %38 = vector.broadcast %cst_51 : bf16 to vector<1x10x1x16xbf16>
    %c0_52 = arith.constant 0 : index
    %c0_53 = arith.constant 0 : index
    %c0_54 = arith.constant 0 : index
    %c0_55 = arith.constant 0 : index
    %39 = vector.load %arg9[%c0_52, %c0_53, %c0_54, %c0_55] : memref<1x10x10x16xbf16, #tpu.memory_space<vmem>>, vector<1x10x1x16xbf16>
    tpu.vector_store %arg9[%c0_52, %c0_53, %c0_54, %c0_55], %38 {strides = array<i32>} : memref<1x10x10x16xbf16, #tpu.memory_space<vmem>>, vector<1x10x1x16xbf16>,
    %cst_56 = arith.constant 0.000000e+00 : bf16
    %40 = vector.broadcast %cst_56 : bf16 to vector<1x10x1x16xbf16>
    %c0_57 = arith.constant 0 : index
    %c0_58 = arith.constant 0 : index
    %c9_59 = arith.constant 9 : index
    %c0_60 = arith.constant 0 : index
    %41 = vector.load %arg9[%c0_57, %c0_58, %c9_59, %c0_60] : memref<1x10x10x16xbf16, #tpu.memory_space<vmem>>, vector<1x10x1x16xbf16>
    tpu.vector_store %arg9[%c0_57, %c0_58, %c9_59, %c0_60], %40 {strides = array<i32>} : memref<1x10x10x16xbf16, #tpu.memory_space<vmem>>, vector<1x10x1x16xbf16>,
    %42 = vector.shape_cast %31 : vector<64x16xf32> to vector<1x8x8x16xf32>
    %43 = arith.truncf %42 : vector<1x8x8x16xf32> to vector<1x8x8x16xbf16>
    %c0_61 = arith.constant 0 : index
    %c1_62 = arith.constant 1 : index
    %c1_63 = arith.constant 1 : index
    %c0_64 = arith.constant 0 : index
    %44 = vector.load %arg9[%c0_61, %c1_62, %c1_63, %c0_64] : memref<1x10x10x16xbf16, #tpu.memory_space<vmem>>, vector<1x8x8x16xbf16>
    tpu.vector_store %arg9[%c0_61, %c1_62, %c1_63, %c0_64], %43 {strides = array<i32>} : memref<1x10x10x16xbf16, #tpu.memory_space<vmem>>, vector<1x8x8x16xbf16>,
    %c0_65 = arith.constant 0 : index
    %c0_66 = arith.constant 0 : index
    %c0_67 = arith.constant 0 : index
    %c0_68 = arith.constant 0 : index
    %45 = vector.load %arg9[%c0_65, %c0_66, %c0_67, %c0_68] : memref<1x10x10x16xbf16, #tpu.memory_space<vmem>>, vector<1x10x8x16xbf16>
    %c0_69 = arith.constant 0 : index
    %c0_70 = arith.constant 0 : index
    %c1_71 = arith.constant 1 : index
    %c0_72 = arith.constant 0 : index
    %46 = vector.load %arg9[%c0_69, %c0_70, %c1_71, %c0_72] : memref<1x10x10x16xbf16, #tpu.memory_space<vmem>>, vector<1x10x8x16xbf16>
    %c0_73 = arith.constant 0 : index
    %c0_74 = arith.constant 0 : index
    %c2_75 = arith.constant 2 : index
    %c0_76 = arith.constant 0 : index
    %47 = vector.load %arg9[%c0_73, %c0_74, %c2_75, %c0_76] : memref<1x10x10x16xbf16, #tpu.memory_space<vmem>>, vector<1x10x8x16xbf16>
    %48 = tpu.concatenate %45, %46, %47 in 3 : vector<1x10x8x16xbf16>, vector<1x10x8x16xbf16>, vector<1x10x8x16xbf16> -> vector<1x10x8x48xbf16>
    %c0_77 = arith.constant 0 : index
    %c0_78 = arith.constant 0 : index
    %c0_79 = arith.constant 0 : index
    %c0_80 = arith.constant 0 : index
    %49 = vector.load %arg10[%c0_77, %c0_78, %c0_79, %c0_80] : memref<1x10x8x48xbf16, #tpu.memory_space<vmem>>, vector<1x10x8x48xbf16>
    tpu.vector_store %arg10[%c0_77, %c0_78, %c0_79, %c0_80], %48 {strides = array<i32>} : memref<1x10x8x48xbf16, #tpu.memory_space<vmem>>, vector<1x10x8x48xbf16>,
    %c0_81 = arith.constant 0 : index
    %c0_82 = arith.constant 0 : index
    %50 = vector.load %arg5[%c0_81, %c0_82] : memref<1x48xf32, #tpu.memory_space<vmem>>, vector<1x48xf32>
    %51 = vector.shape_cast %50 : vector<1x48xf32> to vector<1x48xf32>
    %52 = vector.broadcast %51 : vector<1x48xf32> to vector<64x48xf32>
    %c0_83 = arith.constant 0 : index
    %c0_84 = arith.constant 0 : index
    %c0_85 = arith.constant 0 : index
    %c0_86 = arith.constant 0 : index
    %53 = vector.load %arg10[%c0_83, %c0_84, %c0_85, %c0_86] : memref<1x10x8x48xbf16, #tpu.memory_space<vmem>>, vector<1x8x8x48xbf16>
    %54 = vector.shape_cast %53 : vector<1x8x8x48xbf16> to vector<64x48xbf16>
    %c0_87 = arith.constant 0 : index
    %c0_88 = arith.constant 0 : index
    %c0_89 = arith.constant 0 : index
    %55 = vector.load %arg4[%c0_87, %c0_88, %c0_89] : memref<3x48x48xbf16, #tpu.memory_space<vmem>>, vector<1x48x48xbf16>
    %56 = vector.shape_cast %55 : vector<1x48x48xbf16> to vector<48x48xbf16>
    %cst_90 = arith.constant dense<0.000000e+00> : vector<64x48xf32>
    %57 = tpu.matmul %54, %56, %cst_90 {dimension_numbers = #tpu.dot_dimension_numbers<[1], [0], [0], [1], [0, 0, 1, 1], [], []>} : vector<64x48xbf16>, vector<48x48xbf16>, vector<64x48xf32> -> vector<64x48xf32>
    %58 = arith.addf %52, %57 : vector<64x48xf32>
    %c0_91 = arith.constant 0 : index
    %c1_92 = arith.constant 1 : index
    %c0_93 = arith.constant 0 : index
    %c0_94 = arith.constant 0 : index
    %59 = vector.load %arg10[%c0_91, %c1_92, %c0_93, %c0_94] : memref<1x10x8x48xbf16, #tpu.memory_space<vmem>>, vector<1x8x8x48xbf16>
    %60 = vector.shape_cast %59 : vector<1x8x8x48xbf16> to vector<64x48xbf16>
    %c1_95 = arith.constant 1 : index
    %c0_96 = arith.constant 0 : index
    %c0_97 = arith.constant 0 : index
    %61 = vector.load %arg4[%c1_95, %c0_96, %c0_97] : memref<3x48x48xbf16, #tpu.memory_space<vmem>>, vector<1x48x48xbf16>
    %62 = vector.shape_cast %61 : vector<1x48x48xbf16> to vector<48x48xbf16>
    %cst_98 = arith.constant dense<0.000000e+00> : vector<64x48xf32>
    %63 = tpu.matmul %60, %62, %cst_98 {dimension_numbers = #tpu.dot_dimension_numbers<[1], [0], [0], [1], [0, 0, 1, 1], [], []>} : vector<64x48xbf16>, vector<48x48xbf16>, vector<64x48xf32> -> vector<64x48xf32>
    %64 = arith.addf %58, %63 : vector<64x48xf32>
    %c0_99 = arith.constant 0 : index
    %c2_100 = arith.constant 2 : index
    %c0_101 = arith.constant 0 : index
    %c0_102 = arith.constant 0 : index
    %65 = vector.load %arg10[%c0_99, %c2_100, %c0_101, %c0_102] : memref<1x10x8x48xbf16, #tpu.memory_space<vmem>>, vector<1x8x8x48xbf16>
    %66 = vector.shape_cast %65 : vector<1x8x8x48xbf16> to vector<64x48xbf16>
    %c2_103 = arith.constant 2 : index
    %c0_104 = arith.constant 0 : index
    %c0_105 = arith.constant 0 : index
    %67 = vector.load %arg4[%c2_103, %c0_104, %c0_105] : memref<3x48x48xbf16, #tpu.memory_space<vmem>>, vector<1x48x48xbf16>
    %68 = vector.shape_cast %67 : vector<1x48x48xbf16> to vector<48x48xbf16>
    %cst_106 = arith.constant dense<0.000000e+00> : vector<64x48xf32>
    %69 = tpu.matmul %66, %68, %cst_106 {dimension_numbers = #tpu.dot_dimension_numbers<[1], [0], [0], [1], [0, 0, 1, 1], [], []>} : vector<64x48xbf16>, vector<48x48xbf16>, vector<64x48xf32> -> vector<64x48xf32>
    %70 = arith.addf %64, %69 : vector<64x48xf32>
    %cst_107 = arith.constant 0.000000e+00 : f32
    %71 = vector.broadcast %cst_107 : f32 to vector<64x48xf32>
    %72 = arith.maximumf %70, %71 : vector<64x48xf32>
    %cst_108 = arith.constant 0.000000e+00 : bf16
    %73 = vector.broadcast %cst_108 : bf16 to vector<1x2x12x8xbf16>
    %c0_109 = arith.constant 0 : index
    %c0_110 = arith.constant 0 : index
    %c0_111 = arith.constant 0 : index
    %c0_112 = arith.constant 0 : index
    %74 = vector.load %arg11[%c0_109, %c0_110, %c0_111, %c0_112] : memref<1x12x12x8xbf16, #tpu.memory_space<vmem>>, vector<1x2x12x8xbf16>
    tpu.vector_store %arg11[%c0_109, %c0_110, %c0_111, %c0_112], %73 {strides = array<i32>} : memref<1x12x12x8xbf16, #tpu.memory_space<vmem>>, vector<1x2x12x8xbf16>,
    %cst_113 = arith.constant 0.000000e+00 : bf16
    %75 = vector.broadcast %cst_113 : bf16 to vector<1x2x12x8xbf16>
    %c0_114 = arith.constant 0 : index
    %c10 = arith.constant 10 : index
    %c0_115 = arith.constant 0 : index
    %c0_116 = arith.constant 0 : index
    %76 = vector.load %arg11[%c0_114, %c10, %c0_115, %c0_116] : memref<1x12x12x8xbf16, #tpu.memory_space<vmem>>, vector<1x2x12x8xbf16>
    tpu.vector_store %arg11[%c0_114, %c10, %c0_115, %c0_116], %75 {strides = array<i32>} : memref<1x12x12x8xbf16, #tpu.memory_space<vmem>>, vector<1x2x12x8xbf16>,
    %cst_117 = arith.constant 0.000000e+00 : bf16
    %77 = vector.broadcast %cst_117 : bf16 to vector<1x12x2x8xbf16>
    %c0_118 = arith.constant 0 : index
    %c0_119 = arith.constant 0 : index
    %c0_120 = arith.constant 0 : index
    %c0_121 = arith.constant 0 : index
    %78 = vector.load %arg11[%c0_118, %c0_119, %c0_120, %c0_121] : memref<1x12x12x8xbf16, #tpu.memory_space<vmem>>, vector<1x12x2x8xbf16>
    tpu.vector_store %arg11[%c0_118, %c0_119, %c0_120, %c0_121], %77 {strides = array<i32>} : memref<1x12x12x8xbf16, #tpu.memory_space<vmem>>, vector<1x12x2x8xbf16>,
    %cst_122 = arith.constant 0.000000e+00 : bf16
    %79 = vector.broadcast %cst_122 : bf16 to vector<1x12x2x8xbf16>
    %c0_123 = arith.constant 0 : index
    %c0_124 = arith.constant 0 : index
    %c10_125 = arith.constant 10 : index
    %c0_126 = arith.constant 0 : index
    %80 = vector.load %arg11[%c0_123, %c0_124, %c10_125, %c0_126] : memref<1x12x12x8xbf16, #tpu.memory_space<vmem>>, vector<1x12x2x8xbf16>
    tpu.vector_store %arg11[%c0_123, %c0_124, %c10_125, %c0_126], %79 {strides = array<i32>} : memref<1x12x12x8xbf16, #tpu.memory_space<vmem>>, vector<1x12x2x8xbf16>,
    %81 = vector.shape_cast %32 : vector<64x8xf32> to vector<1x8x8x8xf32>
    %82 = arith.truncf %81 : vector<1x8x8x8xf32> to vector<1x8x8x8xbf16>
    %c0_127 = arith.constant 0 : index
    %c2_128 = arith.constant 2 : index
    %c2_129 = arith.constant 2 : index
    %c0_130 = arith.constant 0 : index
    %83 = vector.load %arg11[%c0_127, %c2_128, %c2_129, %c0_130] : memref<1x12x12x8xbf16, #tpu.memory_space<vmem>>, vector<1x8x8x8xbf16>
    tpu.vector_store %arg11[%c0_127, %c2_128, %c2_129, %c0_130], %82 {strides = array<i32>} : memref<1x12x12x8xbf16, #tpu.memory_space<vmem>>, vector<1x8x8x8xbf16>,
    %c0_131 = arith.constant 0 : index
    %c0_132 = arith.constant 0 : index
    %c0_133 = arith.constant 0 : index
    %c0_134 = arith.constant 0 : index
    %84 = vector.load %arg11[%c0_131, %c0_132, %c0_133, %c0_134] : memref<1x12x12x8xbf16, #tpu.memory_space<vmem>>, vector<1x12x8x8xbf16>
    %c0_135 = arith.constant 0 : index
    %c0_136 = arith.constant 0 : index
    %c1_137 = arith.constant 1 : index
    %c0_138 = arith.constant 0 : index
    %85 = vector.load %arg11[%c0_135, %c0_136, %c1_137, %c0_138] : memref<1x12x12x8xbf16, #tpu.memory_space<vmem>>, vector<1x12x8x8xbf16>
    %c0_139 = arith.constant 0 : index
    %c0_140 = arith.constant 0 : index
    %c2_141 = arith.constant 2 : index
    %c0_142 = arith.constant 0 : index
    %86 = vector.load %arg11[%c0_139, %c0_140, %c2_141, %c0_142] : memref<1x12x12x8xbf16, #tpu.memory_space<vmem>>, vector<1x12x8x8xbf16>
    %c0_143 = arith.constant 0 : index
    %c0_144 = arith.constant 0 : index
    %c3 = arith.constant 3 : index
    %c0_145 = arith.constant 0 : index
    %87 = vector.load %arg11[%c0_143, %c0_144, %c3, %c0_145] : memref<1x12x12x8xbf16, #tpu.memory_space<vmem>>, vector<1x12x8x8xbf16>
    %c0_146 = arith.constant 0 : index
    %c0_147 = arith.constant 0 : index
    %c4 = arith.constant 4 : index
    %c0_148 = arith.constant 0 : index
    %88 = vector.load %arg11[%c0_146, %c0_147, %c4, %c0_148] : memref<1x12x12x8xbf16, #tpu.memory_space<vmem>>, vector<1x12x8x8xbf16>
    %89 = tpu.concatenate %84, %85, %86, %87, %88 in 3 : vector<1x12x8x8xbf16>, vector<1x12x8x8xbf16>, vector<1x12x8x8xbf16>, vector<1x12x8x8xbf16>, vector<1x12x8x8xbf16> -> vector<1x12x8x40xbf16>
    %c0_149 = arith.constant 0 : index
    %c0_150 = arith.constant 0 : index
    %c0_151 = arith.constant 0 : index
    %c0_152 = arith.constant 0 : index
    %90 = vector.load %arg12[%c0_149, %c0_150, %c0_151, %c0_152] : memref<1x12x8x40xbf16, #tpu.memory_space<vmem>>, vector<1x12x8x40xbf16>
    tpu.vector_store %arg12[%c0_149, %c0_150, %c0_151, %c0_152], %89 {strides = array<i32>} : memref<1x12x8x40xbf16, #tpu.memory_space<vmem>>, vector<1x12x8x40xbf16>,
    %c0_153 = arith.constant 0 : index
    %c0_154 = arith.constant 0 : index
    %91 = vector.load %arg7[%c0_153, %c0_154] : memref<1x32xf32, #tpu.memory_space<vmem>>, vector<1x32xf32>
    %92 = vector.shape_cast %91 : vector<1x32xf32> to vector<1x32xf32>
    %93 = vector.broadcast %92 : vector<1x32xf32> to vector<64x32xf32>
    %c0_155 = arith.constant 0 : index
    %c0_156 = arith.constant 0 : index
    %c0_157 = arith.constant 0 : index
    %c0_158 = arith.constant 0 : index
    %94 = vector.load %arg12[%c0_155, %c0_156, %c0_157, %c0_158] : memref<1x12x8x40xbf16, #tpu.memory_space<vmem>>, vector<1x8x8x40xbf16>
    %95 = vector.shape_cast %94 : vector<1x8x8x40xbf16> to vector<64x40xbf16>
    %c0_159 = arith.constant 0 : index
    %c0_160 = arith.constant 0 : index
    %c0_161 = arith.constant 0 : index
    %96 = vector.load %arg6[%c0_159, %c0_160, %c0_161] : memref<5x40x32xbf16, #tpu.memory_space<vmem>>, vector<1x40x32xbf16>
    %97 = vector.shape_cast %96 : vector<1x40x32xbf16> to vector<40x32xbf16>
    %cst_162 = arith.constant dense<0.000000e+00> : vector<64x32xf32>
    %98 = tpu.matmul %95, %97, %cst_162 {dimension_numbers = #tpu.dot_dimension_numbers<[1], [0], [0], [1], [0, 0, 1, 1], [], []>} : vector<64x40xbf16>, vector<40x32xbf16>, vector<64x32xf32> -> vector<64x32xf32>
    %99 = arith.addf %93, %98 : vector<64x32xf32>
    %c0_163 = arith.constant 0 : index
    %c1_164 = arith.constant 1 : index
    %c0_165 = arith.constant 0 : index
    %c0_166 = arith.constant 0 : index
    %100 = vector.load %arg12[%c0_163, %c1_164, %c0_165, %c0_166] : memref<1x12x8x40xbf16, #tpu.memory_space<vmem>>, vector<1x8x8x40xbf16>
    %101 = vector.shape_cast %100 : vector<1x8x8x40xbf16> to vector<64x40xbf16>
    %c1_167 = arith.constant 1 : index
    %c0_168 = arith.constant 0 : index
    %c0_169 = arith.constant 0 : index
    %102 = vector.load %arg6[%c1_167, %c0_168, %c0_169] : memref<5x40x32xbf16, #tpu.memory_space<vmem>>, vector<1x40x32xbf16>
    %103 = vector.shape_cast %102 : vector<1x40x32xbf16> to vector<40x32xbf16>
    %cst_170 = arith.constant dense<0.000000e+00> : vector<64x32xf32>
    %104 = tpu.matmul %101, %103, %cst_170 {dimension_numbers = #tpu.dot_dimension_numbers<[1], [0], [0], [1], [0, 0, 1, 1], [], []>} : vector<64x40xbf16>, vector<40x32xbf16>, vector<64x32xf32> -> vector<64x32xf32>
    %105 = arith.addf %99, %104 : vector<64x32xf32>
    %c0_171 = arith.constant 0 : index
    %c2_172 = arith.constant 2 : index
    %c0_173 = arith.constant 0 : index
    %c0_174 = arith.constant 0 : index
    %106 = vector.load %arg12[%c0_171, %c2_172, %c0_173, %c0_174] : memref<1x12x8x40xbf16, #tpu.memory_space<vmem>>, vector<1x8x8x40xbf16>
    %107 = vector.shape_cast %106 : vector<1x8x8x40xbf16> to vector<64x40xbf16>
    %c2_175 = arith.constant 2 : index
    %c0_176 = arith.constant 0 : index
    %c0_177 = arith.constant 0 : index
    %108 = vector.load %arg6[%c2_175, %c0_176, %c0_177] : memref<5x40x32xbf16, #tpu.memory_space<vmem>>, vector<1x40x32xbf16>
    %109 = vector.shape_cast %108 : vector<1x40x32xbf16> to vector<40x32xbf16>
    %cst_178 = arith.constant dense<0.000000e+00> : vector<64x32xf32>
    %110 = tpu.matmul %107, %109, %cst_178 {dimension_numbers = #tpu.dot_dimension_numbers<[1], [0], [0], [1], [0, 0, 1, 1], [], []>} : vector<64x40xbf16>, vector<40x32xbf16>, vector<64x32xf32> -> vector<64x32xf32>
    %111 = arith.addf %105, %110 : vector<64x32xf32>
    %c0_179 = arith.constant 0 : index
    %c3_180 = arith.constant 3 : index
    %c0_181 = arith.constant 0 : index
    %c0_182 = arith.constant 0 : index
    %112 = vector.load %arg12[%c0_179, %c3_180, %c0_181, %c0_182] : memref<1x12x8x40xbf16, #tpu.memory_space<vmem>>, vector<1x8x8x40xbf16>
    %113 = vector.shape_cast %112 : vector<1x8x8x40xbf16> to vector<64x40xbf16>
    %c3_183 = arith.constant 3 : index
    %c0_184 = arith.constant 0 : index
    %c0_185 = arith.constant 0 : index
    %114 = vector.load %arg6[%c3_183, %c0_184, %c0_185] : memref<5x40x32xbf16, #tpu.memory_space<vmem>>, vector<1x40x32xbf16>
    %115 = vector.shape_cast %114 : vector<1x40x32xbf16> to vector<40x32xbf16>
    %cst_186 = arith.constant dense<0.000000e+00> : vector<64x32xf32>
    %116 = tpu.matmul %113, %115, %cst_186 {dimension_numbers = #tpu.dot_dimension_numbers<[1], [0], [0], [1], [0, 0, 1, 1], [], []>} : vector<64x40xbf16>, vector<40x32xbf16>, vector<64x32xf32> -> vector<64x32xf32>
    %117 = arith.addf %111, %116 : vector<64x32xf32>
    %c0_187 = arith.constant 0 : index
    %c4_188 = arith.constant 4 : index
    %c0_189 = arith.constant 0 : index
    %c0_190 = arith.constant 0 : index
    %118 = vector.load %arg12[%c0_187, %c4_188, %c0_189, %c0_190] : memref<1x12x8x40xbf16, #tpu.memory_space<vmem>>, vector<1x8x8x40xbf16>
    %119 = vector.shape_cast %118 : vector<1x8x8x40xbf16> to vector<64x40xbf16>
    %c4_191 = arith.constant 4 : index
    %c0_192 = arith.constant 0 : index
    %c0_193 = arith.constant 0 : index
    %120 = vector.load %arg6[%c4_191, %c0_192, %c0_193] : memref<5x40x32xbf16, #tpu.memory_space<vmem>>, vector<1x40x32xbf16>
    %121 = vector.shape_cast %120 : vector<1x40x32xbf16> to vector<40x32xbf16>
    %cst_194 = arith.constant dense<0.000000e+00> : vector<64x32xf32>
    %122 = tpu.matmul %119, %121, %cst_194 {dimension_numbers = #tpu.dot_dimension_numbers<[1], [0], [0], [1], [0, 0, 1, 1], [], []>} : vector<64x40xbf16>, vector<40x32xbf16>, vector<64x32xf32> -> vector<64x32xf32>
    %123 = arith.addf %117, %122 : vector<64x32xf32>
    %cst_195 = arith.constant 0.000000e+00 : f32
    %124 = vector.broadcast %cst_195 : f32 to vector<64x32xf32>
    %125 = arith.maximumf %123, %124 : vector<64x32xf32>
    %126 = tpu.concatenate %30, %72, %125, %33 in 1 : vector<64x32xf32>, vector<64x48xf32>, vector<64x32xf32>, vector<64x16xf32> -> vector<64x128xf32>
    %127 = vector.shape_cast %126 : vector<64x128xf32> to vector<1x8x8x128xf32>
    %128 = arith.truncf %127 : vector<1x8x8x128xf32> to vector<1x8x8x128xbf16>
    %c0_196 = arith.constant 0 : index
    %c0_197 = arith.constant 0 : index
    %c0_198 = arith.constant 0 : index
    %c0_199 = arith.constant 0 : index
    %129 = vector.load %arg8[%c0_196, %c0_197, %c0_198, %c0_199] : memref<1x8x8x128xbf16, #tpu.memory_space<vmem>>, vector<1x8x8x128xbf16>
    tpu.vector_store %arg8[%c0_196, %c0_197, %c0_198, %c0_199], %128 {strides = array<i32>} : memref<1x8x8x128xbf16, #tpu.memory_space<vmem>>, vector<1x8x8x128xbf16>,
    return
  }
  func.func @transform_0(%arg0: i32) -> (i32, i32, i32, i32) {
    %c0_i32 = arith.constant 0 : i32
    %c0_i32_0 = arith.constant 0 : i32
    %c0_i32_1 = arith.constant 0 : i32
    %c0_i32_2 = arith.constant 0 : i32
    return %arg0, %c0_i32, %c0_i32_0, %c0_i32_1 : i32, i32, i32, i32
  }
  func.func @transform_1(%arg0: i32) -> (i32, i32) {
    %c0_i32 = arith.constant 0 : i32
    %c0_i32_0 = arith.constant 0 : i32
    %c0_i32_1 = arith.constant 0 : i32
    return %c0_i32, %c0_i32_0 : i32, i32
  }
  func.func @transform_2(%arg0: i32) -> (i32, i32) {
    %c0_i32 = arith.constant 0 : i32
    %c0_i32_0 = arith.constant 0 : i32
    %c0_i32_1 = arith.constant 0 : i32
    return %c0_i32, %c0_i32_0 : i32, i32
  }
  func.func @transform_3(%arg0: i32) -> (i32, i32, i32) {
    %c0_i32 = arith.constant 0 : i32
    %c0_i32_0 = arith.constant 0 : i32
    %c0_i32_1 = arith.constant 0 : i32
    %c0_i32_2 = arith.constant 0 : i32
    return %c0_i32, %c0_i32_0, %c0_i32_1 : i32, i32, i32
  }
  func.func @transform_4(%arg0: i32) -> (i32, i32) {
    %c0_i32 = arith.constant 0 : i32
    %c0_i32_0 = arith.constant 0 : i32
    %c0_i32_1 = arith.constant 0 : i32
    return %c0_i32, %c0_i32_0 : i32, i32
  }
  func.func @transform_5(%arg0: i32) -> (i32, i32, i32) {
    %c0_i32 = arith.constant 0 : i32
    %c0_i32_0 = arith.constant 0 : i32
    %c0_i32_1 = arith.constant 0 : i32
    %c0_i32_2 = arith.constant 0 : i32
    return %c0_i32, %c0_i32_0, %c0_i32_1 : i32, i32, i32
  }
  func.func @transform_6(%arg0: i32) -> (i32, i32) {
    %c0_i32 = arith.constant 0 : i32
    %c0_i32_0 = arith.constant 0 : i32
    %c0_i32_1 = arith.constant 0 : i32
    return %c0_i32, %c0_i32_0 : i32, i32
  }
  func.func @transform_7(%arg0: i32) -> (i32, i32, i32, i32) {
    %c0_i32 = arith.constant 0 : i32
    %c0_i32_0 = arith.constant 0 : i32
    %c0_i32_1 = arith.constant 0 : i32
    %c0_i32_2 = arith.constant 0 : i32
    return %arg0, %c0_i32, %c0_i32_0, %c0_i32_1 : i32, i32, i32, i32
  }
}

</mosaic_0001>

<bundles_post_ra>
// kernel: tpu_custom_call.1
= control target key start
LH: loop header
LB: loop body
LE: loop exit
PB: predicated region body
PF: predicated region fallthrough
CT: control target
= control target key end

     0   :  { %12 = vsyncpa [#allocation8], 0  ;;  %s5078_s0 = inlined_call_operand.vmem [shape: bf16[4,8,8,16], index: 0, kind: input, shape index: {}]   ;;  %s5079_s1 = inlined_call_operand.vmem [shape: bf16[32,72], index: 1, kind: input, shape index: {}]   ;;  %s5080_s2 = inlined_call_operand.vmem [shape: f32[1,72], index: 2, kind: input, shape index: {}]   ;;  %s5081_s3 = inlined_call_operand.hbm [shape: bf16[3,48,48], index: 3, kind: input, shape index: {}]   ;;  %s5082_s4 = inlined_call_operand.vmem [shape: f32[1,48], index: 4, kind: input, shape index: {}]   ;;  %s5083_s5 = inlined_call_operand.vmem [shape: bf16[5,40,32], index: 5, kind: input, shape index: {}]   ;;  %s5084_s6 = inlined_call_operand.vmem [shape: f32[1,32], index: 6, kind: input, shape index: {}]   ;;  %s5085_s7 = inlined_call_operand.hbm [shape: bf16[4,8,8,128], index: 7, kind: output, shape index: {}]  }
   0x1   :  { %13 = vsyncpa [#allocation9], 0 }
   0x2   :  { %15 = vsyncpa [#allocation9 + $0x1], 0  ;;  %s3965_s24 = smov 0   ;;  %s3967_s25 = smov 0  }
   0x3   :  { %s3969_s26 = smov 0   ;;  %s3971_s27 = smov 0  }
   0x4 LB: > { %s3986_s28 = sadd.s32 4294967295, %s3909_s27   ;;  %s3301_s29 = sadd.s32 4294967294, %s3909_s27   ;;  %s3909_s27 = sphi %s3971_s27, %s5097_s27   ;;  %s3905_s26 = sphi %s3969_s26, %s5096_s26   ;;  %s3901_s25 = sphi %s3967_s25, %s5095_s25   ;;  %s3897_s24 = sphi %s3965_s24, %s5094_s24  }
   0x5   : > { %s3990_s30 = sadd.s32 1, %s3909_s27   ;;  %s180_s8 = sadd.s32 1, %s3905_s26 }
   0x6   : > { %s177_s9 = ssub.s32 %s3909_s27, %s3990_s30  ;;  %p190_p0 = scmp.ne.s32.totalorder %s3905_s26, %s3901_s25 }
   0x7   : > { %p178_p1 = scmp.eq.s32.totalorder %s177_s9, 0  ;;  %p191_p2 = scmp.eq.s32.totalorder %s3986_s28, 3 }
   0x8   : > { %p196_p3 = scmp.ne.s32.totalorder %s3901_s25, %s3897_s24  ;;  %p197_p4 = scmp.eq.s32.totalorder %s3301_s29, 3 }
   0x9   : > { %s4001_s10 = scalar_select %p178_p1, %s3905_s26, %s180_s8  }
   0xa   : > { %p4003_p5 = por %p191_p2, %p190_p0  ;;  %p4007_p6 = por %p197_p4, %p196_p3 }
   0xb   : > { %p3302_p7 = scmp.ge.s32.totalorder %s3909_s27, 1  ;;  %p204_p8 = scmp.lt.s32.totalorder %s3909_s27, 5 }
   0xc   : > { %p3701_p9 = scmp.eq.s32.totalorder %s3986_s28, 0  ;;  %s221_s15 = sshll.u32 %s5081_s3, 4  ;;  %s222_s15 = int_to_ptr.hbm [resolvable:$true] %s221_s15 }
   0xd   : > { %p205_p10 = pnand %p3302_p7, %p204_p8  ;;  %s3911_s16 = smov [#allocation7]  }
   0xe   : > { %s223_s17 = sshll.u32 %s3911_s16, 4  ;;  %s3912_s18 = smov 64   ;;  %s224_s17 = int_to_ptr.vmem [resolvable:$true] %s223_s17 }
   0xf   : > { %p3693_p11 = pneg %p205_p10  ;;  %s3913_s19 = smov 4  }
  0x10   : > { %256 = sbr.rel (%p205_p10) target bundleno = 1135 (0x46f), region = 48 }
  0x11   : > { %p3694_p12 = pnand %p3701_p9, %p3693_p11 }
  0x13   : > { %3696 = dma.hbm_to_vmem [thread:$0]  (!%p3694_p12), %s222_s15, 1152, %s224_s17, [#allocation8], %s3912_s18, %s3912_s18, %s3913_s19  }
  0x15   : > { %3888 = dma.done.wait (%p3701_p9), [#allocation8], 1152  }
  0x16   : > { %3890 = vsyncadd (%p3701_p9), [#allocation8], 4294966144  ;;  %p289_p13 = scmp.lt.s32.totalorder %s3986_s28, 3  ;;  %vm304_vm0 = vcmask 125952   ;;  %vm306_vm1 = vcmask 122880   ;;  %vm567_vm7 = vcmask 1046528  }
  0x17   : > { %v3914_v0 = vmov 4286644096   ;;  %vm312_vm2 = vsmask.f32 256  ;;  %vm344_vm4 = vsmask.f32 7938 }
  0x18   : > { %s290_s20 = scalar_select %p289_p13, %s3986_s28, 3  ;;  %305 = vst.msk [vmem:[#allocation6] sm:$0xf] %vm304_vm0, %v3914_v0  ;;  %vm4030_vm3 = vmand %vm306_vm1, %vm312_vm2  ;;  %v326_v2 = vld [vmem:[#allocation6 + $0x20] sm:$0x1]  ;;  %vm668_vm8 = vcmask 1045504  }
  0x19   : > { %307 = vst.msk [vmem:[#allocation6 + $0x4] sm:$0x1] %vm306_vm1, %v3914_v0  ;;  %v329_v3 = vld [vmem:[#allocation6 + $0x28] sm:$0x1]  ;;  %v327_v4 = vsel %vm4030_vm3, 4286644096, %v326_v2  ;;  %vm4045_vm5 = vmand %vm306_vm1, %vm344_vm4 }
  0x1a   : > { %s3599_s21 = sshll.u32 %s290_s20, 5  ;;  %309 = vst.msk [vmem:[#allocation6 + $0x48] sm:$0xf] %vm304_vm0, %v3914_v0  ;;  %v330_v5 = vsel %vm4030_vm3, 4286644096, %v329_v3  ;;  %vm4067_vm6 = vmand %vm304_vm0, %vm344_vm4  ;;  %s3915_s8 = smov 16  }
  0x1b   : > { %310 = vst.msk [vmem:[#allocation6 + $0x4c] sm:$0x1] %vm306_vm1, %v3914_v0  ;;  %s4037_s29 = scalar_lea.vmem %s5078_s0, %s3599_s21  ;;  %v332_v6 = vld [vmem:[#allocation6 + $0x30] sm:$0x1]  ;;  %v335_v10 = vld [vmem:[#allocation6 + $0x38] sm:$0x1] }
  0x1c   : > { %v299_v8 = vld [vmem:[%s4037_s29 + $0xc] sm:$0xf]  ;;  %328 = vst [vmem:[#allocation6 + $0x20] sm:$0x1] %v327_v4  ;;  %v333_v9 = vsel %vm4030_vm3, 4286644096, %v332_v6 }
  0x1d   : > { %v300_v11 = vld [vmem:[%s4037_s29 + $0x10] sm:$0xf]  ;;  %v301_v12 = vld [vmem:[%s4037_s29 + $0x14] sm:$0xf]  ;;  %331 = vst [vmem:[#allocation6 + $0x28] sm:$0x1] %v330_v5 }
  0x1e   : > { %v336_v13 = vsel %vm4030_vm3, 4286644096, %v335_v10  ;;  %v358_v14 = vld [vmem:[#allocation6 + $0x24] sm:$0x1]  ;;  %v302_v15 = vld [vmem:[%s4037_s29 + $0x18] sm:$0xf] }
  0x1f   : > { %334 = vst [vmem:[#allocation6 + $0x30] sm:$0x1] %v333_v9  ;;  %v359_v16 = vsel %vm4045_vm5, 4286644096, %v358_v14  ;;  %v361_v17 = vld [vmem:[#allocation6 + $0x2c] sm:$0x1] }
  0x20   : > { %337 = vst [vmem:[#allocation6 + $0x38] sm:$0x1] %v336_v13  ;;  %v362_v18 = vsel %vm4045_vm5, 4286644096, %v361_v17  ;;  %v364_v19 = vld [vmem:[#allocation6 + $0x34] sm:$0x1] }
  0x21   : > { %360 = vst [vmem:[#allocation6 + $0x24] sm:$0x1] %v359_v16  ;;  %v365_v20 = vsel %vm4045_vm5, 4286644096, %v364_v19  ;;  %v367_v21 = vld [vmem:[#allocation6 + $0x3c] sm:$0x1] }
  0x22   : > { %363 = vst [vmem:[#allocation6 + $0x2c] sm:$0x1] %v362_v18  ;;  %v368_v22 = vsel %vm4045_vm5, 4286644096, %v367_v21  ;;  %v401_v23 = vshrl.u32 %v299_v8, 16  ;;  %v404_v24 = vshll.u32 %v299_v8, 16 }
  0x23   : > { %366 = vst [vmem:[#allocation6 + $0x34] sm:$0x1] %v365_v20  ;;  %v409_v25 = vshrl.u32 %v300_v11, 16  ;;  %v412_v26 = vshll.u32 %v300_v11, 16  ;;  %v417_v27 = vshrl.u32 %v301_v12, 16  ;;  %v420_v28 = vshll.u32 %v301_v12, 16 }
  0x24   : > { %369 = vst [vmem:[#allocation6 + $0x3c] sm:$0x1] %v368_v22  ;;  %v403_v29 = vrot.slane %v401_v23, 7  ;;  %v425_v30 = vshrl.u32 %v302_v15, 16  ;;  %v428_v31 = vshll.u32 %v302_v15, 16  ;;  %vm827_vm9 = vcmask 130048  }
  0x25   : > { %v411_v32 = vrot.slane %v409_v25, 7  ;;  %v419_v33 = vrot.slane %v417_v27, 7  ;;  %v477_v35 = vld [vmem:[#allocation6 + $0x20] sm:$0xf]  ;;  %v483_v39 = vld [vmem:[#allocation6 + $0x28] sm:$0xf] }
  0x26   : > { %v406_v36 = vor.u32 %v404_v24, %v403_v29  ;;  %v407_v37 = vrot.slane %v403_v29, 4  ;;  %v427_v38 = vrot.slane %v425_v30, 7  ;;  %v4072_v40 = vld [vmem:[%s4037_s29] sm:$0xf]  ;;  %v489_v45 = vld [vmem:[#allocation6 + $0x30] sm:$0xf] }
  0x27   : > { %v414_v41 = vor.u32 %v412_v26, %v411_v32  ;;  %v415_v42 = vrot.slane %v411_v32, 4  ;;  %v422_v43 = vor.u32 %v420_v28, %v419_v33  ;;  %v423_v44 = vrot.slane %v419_v33, 4  ;;  %v495_v50 = vld [vmem:[#allocation6 + $0x38] sm:$0xf]  ;;  %v314_v55 = vld [vmem:[#allocation6] sm:$0x1] }
  0x28   : > { %v430_v46 = vor.u32 %v428_v31, %v427_v38  ;;  %v431_v47 = vrot.slane %v427_v38, 4  ;;  %v478_v48 = vsel %vm4067_vm6, %v406_v36, %v477_v35  ;;  %v480_v49 = vld [vmem:[#allocation6 + $0x24] sm:$0x1]  ;;  %v377_v51 = vshrl.u32 %v4072_v40, 16  ;;  %v317_v62 = vld [vmem:[#allocation6 + $0x8] sm:$0x1] }
  0x29   : > { %479 = vst [vmem:[#allocation6 + $0x20] sm:$0xf] %v478_v48  ;;  %v481_v52 = vsel %vm4030_vm3, %v407_v37, %v480_v49  ;;  %v484_v53 = vsel %vm4067_vm6, %v414_v41, %v483_v39  ;;  %v486_v54 = vld [vmem:[#allocation6 + $0x2c] sm:$0x1]  ;;  %v490_v57 = vsel %vm4067_vm6, %v422_v43, %v489_v45  ;;  %v315_v59 = vsel %vm4030_vm3, 4286644096, %v314_v55 }
  0x2a   : > { %482 = vst [vmem:[#allocation6 + $0x24] sm:$0x1] %v481_v52  ;;  %v487_v56 = vsel %vm4030_vm3, %v415_v42, %v486_v54  ;;  %v492_v58 = vld [vmem:[#allocation6 + $0x34] sm:$0x1]  ;;  %v496_v63 = vsel %vm4067_vm6, %v430_v46, %v495_v50  ;;  %v318_v0 = vsel %vm4030_vm3, 4286644096, %v317_v62 }
  0x2b   : > { %485 = vst [vmem:[#allocation6 + $0x28] sm:$0xf] %v484_v53  ;;  %v493_v60 = vsel %vm4030_vm3, %v423_v44, %v492_v58  ;;  %v498_v61 = vld [vmem:[#allocation6 + $0x3c] sm:$0x1]  ;;  %v320_v2 = vld [vmem:[#allocation6 + $0x10] sm:$0x1] }
  0x2c   : > { %488 = vst [vmem:[#allocation6 + $0x2c] sm:$0x1] %v487_v56  ;;  %v499_v3 = vsel %vm4030_vm3, %v431_v47, %v498_v61  ;;  %v321_v4 = vsel %vm4030_vm3, 4286644096, %v320_v2  ;;  %v323_v5 = vld [vmem:[#allocation6 + $0x18] sm:$0x1] }
  0x2d   : > { %491 = vst [vmem:[#allocation6 + $0x30] sm:$0xf] %v490_v57  ;;  %v324_v6 = vsel %vm4030_vm3, 4286644096, %v323_v5  ;;  %v346_v8 = vld [vmem:[#allocation6 + $0x4] sm:$0x1] }
  0x2e   : > { %494 = vst [vmem:[#allocation6 + $0x34] sm:$0x1] %v493_v60  ;;  %v347_v9 = vsel %vm4045_vm5, 4286644096, %v346_v8  ;;  %v349_v10 = vld [vmem:[#allocation6 + $0xc] sm:$0x1] }
  0x2f   : > { %497 = vst [vmem:[#allocation6 + $0x38] sm:$0xf] %v496_v63  ;;  %v350_v16 = vsel %vm4045_vm5, 4286644096, %v349_v10  ;;  %v352_v53 = vld [vmem:[#allocation6 + $0x14] sm:$0x1] }
  0x30   : > { %500 = vst [vmem:[#allocation6 + $0x3c] sm:$0x1] %v499_v3  ;;  %v511_v11 = vld [vmem:[#allocation6 + $0x20] sm:$0xf]  ;;  %v355_v58 = vld [vmem:[#allocation6 + $0x1c] sm:$0x1] }
  0x31   : > { %v632_v12 = vld [vmem:[#allocation6 + $0x20] sm:$0xe]  ;;  %v521_v13 = vld [vmem:[#allocation6 + $0x24] sm:$0x1]  ;;  %v531_v14 = vunpack.c.l.bf16 %v511_v11  ;;  %316 = vst [vmem:[#allocation6] sm:$0x1] %v315_v59 }
  0x32   : > { %v652_v15 = vunpack.c.l.bf16 %v632_v12  ;;  %v512_v17 = vld [vmem:[#allocation6 + $0x28] sm:$0xf]  ;;  %v541_v18 = vunpack.c.l.bf16 %v521_v13  ;;  %319 = vst [vmem:[#allocation6 + $0x8] sm:$0x1] %v318_v0  ;;  %v298_v8 = vld [vmem:[%s4037_s29 + $0x8] sm:$0xf] }
  0x33   : > { %v633_v19 = vld [vmem:[#allocation6 + $0x28] sm:$0xe]  ;;  %v522_v20 = vld [vmem:[#allocation6 + $0x2c] sm:$0x1]  ;;  %v532_v21 = vunpack.c.l.bf16 %v512_v17  ;;  %v580_v22 = vrot.slane %v531_v14, 1  ;;  %vm860_vm10 = vcmask 261120  }
  0x34   : > { %v653_v23 = vunpack.c.l.bf16 %v633_v19  ;;  %v681_v24 = vrot.slane %v652_v15, 2  ;;  %322 = vst [vmem:[#allocation6 + $0x10] sm:$0x1] %v321_v4  ;;  %v513_v25 = vld [vmem:[#allocation6 + $0x30] sm:$0xf]  ;;  %v542_v26 = vunpack.c.l.bf16 %v522_v20  ;;  %v581_v27 = vrot.slane %v541_v18, 1 }
  0x35   : > { %v634_v28 = vld [vmem:[#allocation6 + $0x30] sm:$0xe]  ;;  %v682_v29 = vrot.slane %v541_v18, 2  ;;  %v523_v30 = vld [vmem:[#allocation6 + $0x34] sm:$0x1]  ;;  %v533_v31 = vunpack.c.l.bf16 %v513_v25  ;;  %v583_v32 = vrot.slane %v532_v21, 1 }
  0x36   : > { %v654_v33 = vunpack.c.l.bf16 %v634_v28  ;;  %v684_v35 = vrot.slane %v653_v23, 2  ;;  %325 = vst [vmem:[#allocation6 + $0x18] sm:$0x1] %v324_v6  ;;  %v514_v36 = vld [vmem:[#allocation6 + $0x38] sm:$0xf]  ;;  %v543_v37 = vunpack.c.l.bf16 %v523_v30  ;;  %v582_v38 = vsel %vm567_vm7, %v580_v22, %v581_v27  ;;  %s3917_s16 = smov 32  }
  0x37   : > { %v584_v39 = vrot.slane %v542_v26, 1  ;;  %v635_v41 = vld [vmem:[#allocation6 + $0x38] sm:$0xe]  ;;  %v683_v42 = vsel %vm668_vm8, %v681_v24, %v682_v29  ;;  %v524_v43 = vld [vmem:[#allocation6 + $0x3c] sm:$0x1]  ;;  %v534_v44 = vunpack.c.l.bf16 %v514_v36  ;;  %v586_v45 = vrot.slane %v533_v31, 1 }
  0x38   : > { %v612_v46 = vmax.f32 %v531_v14, %v582_v38  ;;  %v655_v47 = vunpack.c.l.bf16 %v635_v41  ;;  %348 = vst [vmem:[#allocation6 + $0x4] sm:$0x1] %v347_v9  ;;  %v544_v48 = vunpack.c.l.bf16 %v524_v43  ;;  %v587_v50 = vrot.slane %v543_v37, 1  ;;  %v297_v4 = vld [vmem:[%s4037_s29 + $0x4] sm:$0xf]  ;;  %s3918_s17 = smov 8  }
  0x39   : > { %v585_v49 = vsel %vm567_vm7, %v583_v32, %v584_v39  ;;  %v685_v52 = vrot.slane %v542_v26, 2  ;;  %351 = vst [vmem:[#allocation6 + $0xc] sm:$0x1] %v350_v16  ;;  %v589_v54 = vrot.slane %v534_v44, 1  ;;  %v687_v56 = vrot.slane %v654_v33, 2  ;;  %s3919_s18 = smov 24  }
  0x3a   : > { %v613_v55 = vmax.f32 %v532_v21, %v585_v49  ;;  %v688_v57 = vrot.slane %v543_v37, 2  ;;  %v588_v59 = vsel %vm567_vm7, %v586_v45, %v587_v50  ;;  %v590_v60 = vrot.slane %v544_v48, 1  ;;  %v459_v15 = vld [vmem:[#allocation6 + $0x8] sm:$0xf]  ;;  %v4125_v16 = vld [vmem:[#allocation6] sm:$0xf] }
  0x3b   : > { %v686_v61 = vsel %vm668_vm8, %v684_v35, %v685_v52  ;;  %v690_v62 = vrot.slane %v655_v47, 2  ;;  %v614_v63 = vmax.f32 %v533_v31, %v588_v59  ;;  %v691_v2 = vrot.slane %v544_v48, 2  ;;  %v628_v31 = vld [vmem:[#allocation6] sm:$0xe]  ;;  %v338_v37 = vld [vmem:[#allocation6 + $0x40] sm:$0x1] }
  0x3c   : > { %v689_v0 = vsel %vm668_vm8, %v687_v56, %v688_v57  ;;  %v4109_v3 = vmax.f32 %v612_v46, %v683_v42  ;;  %v591_v5 = vsel %vm567_vm7, %v589_v54, %v590_v60  ;;  %v4113_v6 = vmax.f32 %v613_v55, %v686_v61  ;;  %v341_v43 = vld [vmem:[#allocation6 + $0x48] sm:$0x1]  ;;  %v303_v49 = vld [vmem:[%s4037_s29 + $0x1c] sm:$0xf]  ;;  %v373_v50 = vld [vmem:[#allocation6 + $0x4c] sm:$0x1] }
  0x3d   : > { %v353_v9 = vsel %vm4045_vm5, 4286644096, %v352_v53  ;;  %v356_v10 = vsel %vm4045_vm5, 4286644096, %v355_v58  ;;  %v615_v11 = vmax.f32 %v534_v44, %v591_v5  ;;  %v692_v12 = vsel %vm668_vm8, %v690_v62, %v691_v2  ;;  %v471_v35 = vld [vmem:[#allocation6 + $0x18] sm:$0xf] }
  0x3e   : > { %v4121_v13 = vmax.f32 %v614_v63, %v689_v0  ;;  %354 = vst [vmem:[#allocation6 + $0x14] sm:$0x1] %v353_v9  ;;  %v379_v14 = vrot.slane %v377_v51, 7  ;;  %v742_v17 = vmax.f32 %v4109_v3, %v4113_v6  ;;  %v380_v18 = vshll.u32 %v4072_v40, 16  ;;  %v465_v51 = vld [vmem:[#allocation6 + $0x10] sm:$0xf] }
  0x3f   : > { %357 = vst [vmem:[#allocation6 + $0x1c] sm:$0x1] %v356_v10  ;;  %v385_v19 = vshrl.u32 %v297_v4, 16  ;;  %v388_v20 = vshll.u32 %v297_v4, 16  ;;  %v4130_v21 = vmax.f32 %v615_v11, %v692_v12  ;;  %v393_v24 = vshrl.u32 %v298_v8, 16  ;;  %s3920_s21 = smov 80  }
  0x40   : > { %v743_v22 = vmax.f32 %v4113_v6, %v4121_v13  ;;  %v383_v23 = vrot.slane %v379_v14, 4  ;;  %v462_v25 = vld [vmem:[#allocation6 + $0xc] sm:$0x1]  ;;  %v767_v26 = vmax.f32 %v742_v17, %v4121_v13  ;;  %v382_v27 = vor.u32 %v380_v18, %v379_v14  ;;  %v517_v30 = vld [vmem:[#allocation6 + $0x4] sm:$0x1]  ;;  %s3921_s22 = smov 96  }
  0x41   : > { %v387_v28 = vrot.slane %v385_v19, 7  ;;  %v396_v29 = vshll.u32 %v298_v8, 16  ;;  %v395_v32 = vrot.slane %v393_v24, 7  ;;  %v527_v36 = vunpack.c.l.bf16 %v4125_v16  ;;  %v370_v44 = vld [vmem:[#allocation6 + $0x44] sm:$0x1]  ;;  %s3657_s19 = sshll.u32 %s3986_s28, 5 }
  0x42   : > { %v768_v40 = vmax.f32 %v743_v22, %v4130_v21  ;;  %v463_v33 = vsel %vm4030_vm3, %v383_v23, %v462_v25  ;;  %v775_v38 = vpack.c.bf16 %v767_v26, %v767_v26  ;;  %v460_v42 = vsel %vm4067_vm6, %v382_v27, %v459_v15  ;;  %s3223_s23 = scalar_lea.hbm %s5085_s7, %s3657_s19  ;;  %s3863_s14 = scalar_lea.hbm %s5085_s7, 128 }
  0x43   : > { %v390_v39 = vor.u32 %v388_v20, %v387_v28  ;;  %v391_v41 = vrot.slane %v387_v28, 4  ;;  %464 = vst [vmem:[#allocation6 + $0xc] sm:$0x1] %v463_v33  ;;  %v398_v46 = vor.u32 %v396_v29, %v395_v32  ;;  %v399_v47 = vrot.slane %v395_v32, 4  ;;  %s3226_s28 = sshll.u32 %s3223_s23, 4  ;;  %s3227_s28 = int_to_ptr.hbm [resolvable:$true] %s3226_s28 }
  0x44   : > { %v776_v45 = vpack.c.bf16 %v768_v40, %v768_v40  ;;  %461 = vst [vmem:[#allocation6 + $0x8] sm:$0xf] %v460_v42  ;;  %v537_v48 = vunpack.c.l.bf16 %v517_v30  ;;  %v811_v52 = vunpack.c.l.b16 %v775_v38  ;;  %v568_v55 = vrot.slane %v527_v36, 1 }
  0x45   : > { %v466_v53 = vsel %vm4067_vm6, %v390_v39, %v465_v51  ;;  %v468_v54 = vld [vmem:[#allocation6 + $0x14] sm:$0x1]  ;;  %v648_v56 = vunpack.c.l.bf16 %v628_v31  ;;  %v472_v59 = vsel %vm4067_vm6, %v398_v46, %v471_v35  ;;  %v339_v2 = vsel %vm4030_vm3, 4286644096, %v338_v37 }
  0x46   : > { %v812_v57 = vunpack.c.l.b16 %v776_v45  ;;  %467 = vst [vmem:[#allocation6 + $0x10] sm:$0xf] %v466_v53  ;;  %v469_v58 = vsel %vm4030_vm3, %v391_v41, %v468_v54  ;;  %v474_v60 = vld [vmem:[#allocation6 + $0x1c] sm:$0x1]  ;;  %v569_v61 = vrot.slane %v537_v48, 1  ;;  %v670_v0 = vrot.slane %v537_v48, 2 }
  0x47   : > { %470 = vst [vmem:[#allocation6 + $0x14] sm:$0x1] %v469_v58  ;;  %v475_v62 = vsel %vm4030_vm3, %v399_v47, %v474_v60  ;;  %v669_v63 = vrot.slane %v648_v56, 2  ;;  %v342_v8 = vsel %vm4030_vm3, 4286644096, %v341_v43  ;;  %v433_v11 = vshrl.u32 %v303_v49, 16 }
  0x48   : > { %v817_v4 = vpack.c.b16 %v812_v57, %v811_v52  ;;  %473 = vst [vmem:[#allocation6 + $0x18] sm:$0xf] %v472_v59  ;;  %v570_v5 = vsel %vm567_vm7, %v568_v55, %v569_v61  ;;  %v371_v9 = vsel %vm4045_vm5, 4286644096, %v370_v44  ;;  %v374_v10 = vsel %vm4045_vm5, 4286644096, %v373_v50 }
  0x49   : > { %476 = vst [vmem:[#allocation6 + $0x1c] sm:$0x1] %v475_v62  ;;  %v436_v14 = vshll.u32 %v303_v49, 16  ;;  %v608_v17 = vmax.f32 %v527_v36, %v570_v5  ;;  %v671_v22 = vsel %vm668_vm8, %v669_v63, %v670_v0  ;;  %v435_v23 = vrot.slane %v433_v11, 7  ;;  %v3605_v49 = vld [vmem:[%s5079_s1 + $0x8] sm:$0xff]  ;;  %v3604_v61 = vld [vmem:[%s5079_s1] sm:$0xff] }
  0x4a   : > { %823 = vrot.lane.b32.xlu1 %v817_v4, %s3915_s8  ;;  %v518_v12 = vld [vmem:[#allocation6 + $0xc] sm:$0x1]  ;;  %340 = vst [vmem:[#allocation6 + $0x40] sm:$0x1] %v339_v2  ;;  %875 = vmatpush.bf16.msra.mxu0 %v3605_v49  ;;  %v637_v11 = vld [vmem:[#allocation6 + $0x48] sm:$0xe] }
  0x4b   : > { %v508_v15 = vld [vmem:[#allocation6 + $0x8] sm:$0xf]  ;;  %v538_v16 = vunpack.c.l.bf16 %v518_v12  ;;  %343 = vst [vmem:[#allocation6 + $0x48] sm:$0x1] %v342_v8  ;;  %v709_v35 = vmax.f32 %v608_v17, %v671_v22  ;;  %v438_v36 = vor.u32 %v436_v14, %v435_v23  ;;  %v439_v37 = vrot.slane %v435_v23, 4  ;;  %3682 = vmatpush.bf16.msra.mxu2 %v3605_v49  ;;  %3681 = vmatpush.bf16.msra.mxu1 %v3605_v49 }
  0x4c   : > { %v629_v18 = vld [vmem:[#allocation6 + $0x8] sm:$0xe]  ;;  %v528_v19 = vunpack.c.l.bf16 %v508_v15  ;;  %372 = vst [vmem:[#allocation6 + $0x44] sm:$0x1] %v371_v9  ;;  %3683 = vmatpush.bf16.msra.mxu3 %v3605_v49  ;;  %vm1761_vm11 = vcmask 60416   ;;  %vm1763_vm12 = vcmask 58368  }
  0x4d   : > { %v649_v20 = vunpack.c.l.bf16 %v629_v18  ;;  %v509_v24 = vld [vmem:[#allocation6 + $0x10] sm:$0xf]  ;;  %v572_v25 = vrot.slane %v538_v16, 1  ;;  %v673_v26 = vrot.slane %v538_v16, 2  ;;  %375 = vst [vmem:[#allocation6 + $0x4c] sm:$0x1] %v374_v10 }
  0x4e   : > { %v630_v51 = vld [vmem:[#allocation6 + $0x10] sm:$0xe]  ;;  %v519_v27 = vld [vmem:[#allocation6 + $0x14] sm:$0x1]  ;;  %v529_v28 = vunpack.c.l.bf16 %v509_v24  ;;  %v571_v29 = vrot.slane %v528_v19, 1  ;;  %876 = vmatpush.bf16.msra.mxu0 %v3604_v61  ;;  %vm1772_vm13 = vcmask 57344  }
  0x4f   : > { %v650_v30 = vunpack.c.l.bf16 %v630_v51  ;;  %v672_v31 = vrot.slane %v649_v20, 2  ;;  %v510_v40 = vld [vmem:[#allocation6 + $0x18] sm:$0xf]  ;;  %v539_v32 = vunpack.c.l.bf16 %v519_v27  ;;  %3685 = vmatpush.bf16.msra.mxu2 %v3604_v61  ;;  %3684 = vmatpush.bf16.msra.mxu1 %v3604_v61  ;;  %vm1785_vm14 = vcmask 58369  }
  0x50   : > { %v631_v33 = vld [vmem:[#allocation6 + $0x18] sm:$0xe]  ;;  %v520_v38 = vld [vmem:[#allocation6 + $0x1c] sm:$0x1]  ;;  %v530_v39 = vunpack.c.l.bf16 %v510_v40  ;;  %v573_v41 = vsel %vm567_vm7, %v571_v29, %v572_v25  ;;  %v574_v42 = vrot.slane %v529_v28, 1  ;;  %3686 = vmatpush.bf16.msra.mxu3 %v3604_v61  ;;  %vm1430_vm15 = vcmask 388096  }
  0x51   : > { %v651_v43 = vunpack.c.l.bf16 %v631_v33  ;;  %v540_v44 = vunpack.c.l.bf16 %v520_v38  ;;  %v575_v45 = vrot.slane %v539_v32, 1  ;;  %v609_v46 = vmax.f32 %v528_v19, %v573_v41  ;;  %v501_v48 = vld [vmem:[#allocation6 + $0x40] sm:$0xf] }
  0x52   : > { %v674_v47 = vsel %vm668_vm8, %v672_v31, %v673_v26  ;;  %v577_v50 = vrot.slane %v530_v39, 1  ;;  %v675_v52 = vrot.slane %v650_v30, 2  ;;  %v676_v53 = vrot.slane %v539_v32, 2  ;;  %v516_v55 = vld [vmem:[#allocation6 + $0x48] sm:$0xf] }
  0x53   : > { %v678_v54 = vrot.slane %v651_v43, 2  ;;  %v576_v56 = vsel %vm567_vm7, %v574_v42, %v575_v45  ;;  %v578_v57 = vrot.slane %v540_v44, 1  ;;  %v679_v58 = vrot.slane %v540_v44, 2  ;;  %v504_v60 = vld [vmem:[#allocation6 + $0x44] sm:$0x1] }
  0x54   : > { %v710_v59 = vmax.f32 %v609_v46, %v674_v47  ;;  %v610_v62 = vmax.f32 %v529_v28, %v576_v56  ;;  %v677_v63 = vsel %vm668_vm8, %v675_v52, %v676_v53  ;;  %v502_v0 = vsel %vm4067_vm6, %v438_v36, %v501_v48  ;;  %v526_v9 = vld [vmem:[#allocation6 + $0x4c] sm:$0x1] }
  0x55   : > { %v505_v2 = vsel %vm4030_vm3, %v439_v37, %v504_v60  ;;  %v579_v4 = vsel %vm567_vm7, %v577_v50, %v578_v57  ;;  %v680_v5 = vsel %vm668_vm8, %v678_v54, %v679_v58  ;;  %503 = vst [vmem:[#allocation6 + $0x40] sm:$0xf] %v502_v0  ;;  %v536_v10 = vunpack.c.l.bf16 %v516_v55 }
  0x56   : > { %v738_v8 = vmax.f32 %v709_v35, %v710_v59  ;;  %v611_v12 = vmax.f32 %v530_v39, %v579_v4  ;;  %v711_v14 = vmax.f32 %v610_v62, %v677_v63  ;;  %506 = vst [vmem:[#allocation6 + $0x44] sm:$0x1] %v505_v2  ;;  %v546_v15 = vunpack.c.l.bf16 %v526_v9  ;;  %v3602_v4 = vld [vmem:[%s4037_s29 + $0x10] sm:$0xff] }
  0x57   : > { %v657_v19 = vunpack.c.l.bf16 %v637_v11  ;;  %v595_v20 = vrot.slane %v536_v10, 1  ;;  %v744_v54 = vmax.f32 %v4121_v13, %v4130_v21  ;;  %vm2538_vm2 = vcmask 322560  }
  0x58   : > { %v712_v16 = vmax.f32 %v611_v12, %v680_v5  ;;  %v739_v17 = vmax.f32 %v710_v59, %v711_v14  ;;  %v763_v18 = vmax.f32 %v738_v8, %v711_v14  ;;  %v596_v24 = vrot.slane %v546_v15, 1 }
  0x59   : > { %v696_v30 = vrot.slane %v657_v19, 2  ;;  %v697_v35 = vrot.slane %v546_v15, 2  ;;  %vm2616_vm4 = vcmask 1043456  }
  0x5a   : > { %v764_v22 = vmax.f32 %v739_v17, %v712_v16  ;;  %v771_v23 = vpack.c.bf16 %v763_v18, %v763_v18  ;;  %v740_v25 = vmax.f32 %v711_v14, %v712_v16  ;;  %v741_v51 = vmax.f32 %v712_v16, %v4109_v3 }
  0x5b   : > { %v597_v39 = vsel %vm567_vm7, %v595_v20, %v596_v24 }
  0x5c   : > { %v772_v26 = vpack.c.bf16 %v764_v22, %v764_v22  ;;  %v807_v27 = vunpack.c.l.b16 %v771_v23  ;;  %v515_v28 = vld [vmem:[#allocation6 + $0x40] sm:$0xf]  ;;  %v765_v31 = vmax.f32 %v740_v25, %v4109_v3  ;;  %v766_v36 = vmax.f32 %v741_v51, %v4113_v6 }
  0x5d   : > { %v636_v29 = vld [vmem:[#allocation6 + $0x40] sm:$0xe]  ;;  %v525_v40 = vld [vmem:[#allocation6 + $0x44] sm:$0x1]  ;;  %v535_v32 = vunpack.c.l.bf16 %v515_v28  ;;  %v617_v48 = vmax.f32 %v536_v10, %v597_v39  ;;  %v698_v3 = vsel %vm668_vm8, %v696_v30, %v697_v35  ;;  %v3600_v10 = vld [vmem:[%s4037_s29] sm:$0xff] }
  0x5e   : > { %v656_v33 = vunpack.c.l.bf16 %v636_v29  ;;  %v808_v37 = vunpack.c.l.b16 %v772_v26  ;;  %v545_v38 = vunpack.c.l.bf16 %v525_v40  ;;  %v773_v41 = vpack.c.bf16 %v765_v31, %v765_v31  ;;  %v3601_v28 = vld [vmem:[%s4037_s29 + $0x8] sm:$0xff] }
  0x5f   : > { %v592_v42 = vrot.slane %v535_v32, 1  ;;  %v774_v44 = vpack.c.bf16 %v766_v36, %v766_v36  ;;  %v718_v56 = vmax.f32 %v617_v48, %v698_v3 }
  0x60   : > { %v693_v43 = vrot.slane %v656_v33, 2  ;;  %v815_v45 = vpack.c.b16 %v808_v37, %v807_v27  ;;  %v593_v46 = vrot.slane %v545_v38, 1  ;;  %v694_v47 = vrot.slane %v545_v38, 2 }
  0x61   : > { %v809_v50 = vunpack.c.l.b16 %v773_v41  ;;  %v810_v52 = vunpack.c.l.b16 %v774_v44 }
  0x62   : > { %819 = vrot.lane.b32.xlu0 %v815_v45, %s3915_s8  ;;  %v594_v49 = vsel %vm567_vm7, %v592_v42, %v593_v46  ;;  %v695_v6 = vsel %vm668_vm8, %v693_v43, %v694_v47  ;;  %v3603_v43 = vld [vmem:[%s4037_s29 + $0x18] sm:$0xff]  ;;  %vm2603_vm7 = vcmask 326656   ;;  %vm1871_vm8 = vcmask 60417  }
  0x63   : > { %v616_v53 = vmax.f32 %v535_v32, %v594_v49  ;;  %v816_v57 = vpack.c.b16 %v810_v52, %v809_v50 }
  0x65   : > { %v717_v55 = vmax.f32 %v616_v53, %v695_v6 }
  0x67   : > { %v745_v58 = vmax.f32 %v4130_v21, %v717_v55  ;;  %v769_v59 = vmax.f32 %v744_v54, %v717_v55  ;;  %v3916_v21 = vmov 0  }
  0x68   : > { %906 = vst.msk [vmem:[#allocation2] sm:$0xf] %vm304_vm0, %v3916_v21 }
  0x69   : > { %v770_v60 = vmax.f32 %v745_v58, %v718_v56  ;;  %v777_v61 = vpack.c.bf16 %v769_v59, %v769_v59  ;;  %907 = vst.msk [vmem:[#allocation2 + $0x4] sm:$0x1] %vm306_vm1, %v3916_v21 }
  0x6a   : > { %821 = vrot.lane.b32.xlu0 %v816_v57, %s3915_s8  ;;  %909 = vst.msk [vmem:[#allocation2 + $0x48] sm:$0xf] %vm304_vm0, %v3916_v21  ;;  %vm2416_vm0 = vcmask 64512  }
  0x6b   : > { %v778_v62 = vpack.c.bf16 %v770_v60, %v770_v60  ;;  %v813_v63 = vunpack.c.l.b16 %v777_v61  ;;  %910 = vst.msk [vmem:[#allocation2 + $0x4c] sm:$0x1] %vm306_vm1, %v3916_v21  ;;  %vm2477_vm1 = vcmask 195584  }
  0x6c   : > { %1762 = vst.msk [vmem:[#allocation4] sm:$0xf] %vm1761_vm11, %v3916_v21 }
  0x6d   : > { %v814_v0 = vunpack.c.l.b16 %v778_v62  ;;  %1764 = vst.msk [vmem:[#allocation4 + $0x4] sm:$0x3] %vm1763_vm12, %v3916_v21 }
  0x6e   : > { %1773 = vst.msk [vmem:[#allocation4] sm:$0x1] %vm1772_vm13, %v3916_v21 }
  0x6f   : > { %v818_v2 = vpack.c.b16 %v814_v0, %v813_v63  ;;  %1765 = vst.msk [vmem:[#allocation4 + $0x8] sm:$0xf] %vm1761_vm11, %v3916_v21  ;;  %v1160_v12 = vld [vmem:[#allocation2] sm:$0xe]  ;;  %v911_v29 = vld [vmem:[#allocation2] sm:$0x1] }
  0x70   : > { %v941_v8 = vld [vmem:[#allocation2 + $0x4] sm:$0x1]  ;;  %1766 = vst.msk [vmem:[#allocation4 + $0xc] sm:$0x3] %vm1763_vm12, %v3916_v21  ;;  %v1320_v19 = vunpack.c.l.b16 %v1160_v12  ;;  %v912_v38 = vsel %vm4030_vm3, 0, %v911_v29 }
  0x71   : > { %825 = vrot.lane.b32.xlu1 %v818_v2, %s3915_s8  ;;  %v942_v9 = vsel %vm4045_vm5, 0, %v941_v8  ;;  %1768 = vst.msk [vmem:[#allocation4 + $0x50] sm:$0xf] %vm1761_vm11, %v3916_v21 }
  0x72   : > { %943 = vst [vmem:[#allocation2 + $0x4] sm:$0x1] %v942_v9 }
  0x73   : > { %1769 = vst.msk [vmem:[#allocation4 + $0x54] sm:$0x3] %vm1763_vm12, %v3916_v21  ;;  %v4233_v22 = vld [vmem:[#allocation4] sm:$0xe] }
  0x74   : > { %v1900_v11 = vld [vmem:[#allocation4 + $0x4] sm:$0x1]  ;;  %1770 = vst.msk [vmem:[#allocation4 + $0x58] sm:$0xf] %vm1761_vm11, %v3916_v21  ;;  %v2128_v40 = vunpack.c.l.b16 %v4233_v22  ;;  %v1936_v3 = vld [vmem:[#allocation4] sm:$0xc] }
  0x75   : > { %v4220_v14 = vld [vmem:[#allocation4] sm:$0xf]  ;;  %v1973_v15 = vunpack.c.l.b16 %v1900_v11  ;;  %1771 = vst.msk [vmem:[#allocation4 + $0x5c] sm:$0x3] %vm1763_vm12, %v3916_v21  ;;  %v2356_v53 = vunpack.c.l.b16 %v1936_v3  ;;  %v4310_v22 = vld [vmem:[%s5080_s2] ss:$0 sm:$0xff] }
  0x76   : > { %v1972_v17 = vunpack.c.l.b16 %v4220_v14  ;;  %1775 = vst.msk [vmem:[#allocation4 + $0x10] sm:$0x1] %vm1772_vm13, %v3916_v21  ;;  %v4237_v24 = vld [vmem:[#allocation4 + $0x8] sm:$0xe] }
  0x77   : > { %1776 = vst.msk [vmem:[#allocation4 + $0x18] sm:$0x1] %vm1772_vm13, %v3916_v21  ;;  %v1901_v27 = vld [vmem:[#allocation4 + $0xc] sm:$0x1]  ;;  %v2129_v33 = vunpack.c.l.b16 %v4237_v24  ;;  %v2140_v41 = vpack.c.b16 %v1973_v15, %v2128_v40 }
  0x78   : > { %v1996_v20 = vpack.c.b16 %v1973_v15, %v1972_v17  ;;  %1777 = vst.msk [vmem:[#allocation4 + $0x20] sm:$0x1] %vm1772_vm13, %v3916_v21  ;;  %v1975_v32 = vunpack.c.l.b16 %v1901_v27 }
  0x79   : > { %v1150_v23 = vld [vmem:[#allocation2 + $0x4] sm:$0x1]  ;;  %1778 = vst.msk [vmem:[#allocation4 + $0x28] sm:$0x1] %vm1772_vm13, %v3916_v21  ;;  %v2152_v44 = vrot.slane %v2140_v41, 1 }
  0x7a   : > { %v1191_v25 = vunpack.c.l.b16 %v1150_v23  ;;  %v2009_v51 = vshrl.u32 %v1996_v20, 16  ;;  %v2011_v26 = vshll.u32 %v1996_v20, 16  ;;  %1779 = vst.msk [vmem:[#allocation4 + $0x30] sm:$0x1] %vm1772_vm13, %v3916_v21  ;;  %v2141_v42 = vpack.c.b16 %v1975_v32, %v2129_v33  ;;  %v1937_v23 = vld [vmem:[#allocation4 + $0x8] sm:$0xc] }
  0x7b   : > { %1780 = vst.msk [vmem:[#allocation4 + $0x38] sm:$0x1] %vm1772_vm13, %v3916_v21  ;;  %v2357_v24 = vunpack.c.l.b16 %v1937_v23 }
  0x7c   : > { %v1330_v30 = vpack.c.b16 %v1191_v25, %v1320_v19  ;;  %v2013_v31 = vrot.slane %v2011_v26, 1  ;;  %1781 = vst.msk [vmem:[#allocation4 + $0x40] sm:$0x1] %vm1772_vm13, %v3916_v21  ;;  %v2153_v46 = vrot.slane %v2141_v42, 1 }
  0x7d   : > { %1782 = vst.msk [vmem:[#allocation4 + $0x48] sm:$0x1] %vm1772_vm13, %v3916_v21 }
  0x7e   : > { %v1340_v36 = vrot.slane %v1330_v30, 1  ;;  %v2014_v37 = vor.u32 %v2013_v31, %v2009_v51  ;;  %1774 = vst.msk [vmem:[#allocation4 + $0x8] sm:$0x1] %vm1772_vm13, %v3916_v21 }
  0x7f   : > { %1783 = vst.msk [vmem:[#allocation4 + $0x50] sm:$0x1] %vm1772_vm13, %v3916_v21 }
  0x80   : > { %1350 = vrot.lane.b32.xlu0 %v1340_v36, %s3917_s16  ;;  %1784 = vst.msk [vmem:[#allocation4 + $0x58] sm:$0x1] %vm1772_vm13, %v3916_v21  ;;  %2092 = vrot.lane.b32.xlu1 %v2014_v37, %s3918_s17 }
  0x81   : > { %913 = vst [vmem:[#allocation2] sm:$0x1] %v912_v38 }
  0x82   : > { %1787 = vst.msk [vmem:[#allocation4 + $0xc] sm:$0x2] %vm1785_vm14, %v3916_v21 }
  0x83   : > { %1786 = vst.msk [vmem:[#allocation4 + $0x4] sm:$0x2] %vm1785_vm14, %v3916_v21 }
  0x84   : > { %1788 = vst.msk [vmem:[#allocation4 + $0x14] sm:$0x2] %vm1785_vm14, %v3916_v21 }
  0x85   : > { %1789 = vst.msk [vmem:[#allocation4 + $0x1c] sm:$0x2] %vm1785_vm14, %v3916_v21  ;;  %v4273_v47 = vld [vmem:[#allocation4 + $0x8] sm:$0xf] }
  0x86   : > { %1790 = vst.msk [vmem:[#allocation4 + $0x24] sm:$0x2] %vm1785_vm14, %v3916_v21  ;;  %v1974_v49 = vunpack.c.l.b16 %v4273_v47 }
  0x87   : > { %1791 = vst.msk [vmem:[#allocation4 + $0x2c] sm:$0x2] %vm1785_vm14, %v3916_v21 }
  0x88   : > { %2164 = vrot.lane.b32.xlu0 %v2152_v44, %s3915_s8  ;;  %v4283_v6 = vld [vmem:[#allocation2] sm:$0xf]  ;;  %1792 = vst.msk [vmem:[#allocation4 + $0x34] sm:$0x2] %vm1785_vm14, %v3916_v21  ;;  %2166 = vrot.lane.b32.xlu1 %v2153_v46, %s3915_s8  ;;  %v1997_v58 = vpack.c.b16 %v1975_v32, %v1974_v49 }
  0x89   : > { %v1190_v50 = vunpack.c.l.b16 %v4283_v6  ;;  %v1925_v52 = vld [vmem:[#allocation4 + $0xc] sm:$0x3]  ;;  %1793 = vst.msk [vmem:[#allocation4 + $0x3c] sm:$0x2] %vm1785_vm14, %v3916_v21 }
  0x8a   : > { %v2201_v54 = vunpack.c.l.b16 %v1925_v52  ;;  %1794 = vst.msk [vmem:[#allocation4 + $0x44] sm:$0x2] %vm1785_vm14, %v3916_v21  ;;  %v1924_v55 = vld [vmem:[#allocation4 + $0x4] sm:$0x3]  ;;  %v2016_v11 = vshrl.u32 %v1997_v58, 16 }
  0x8b   : > { %v1210_v56 = vpack.c.b16 %v1191_v25, %v1190_v50  ;;  %1795 = vst.msk [vmem:[#allocation4 + $0x4c] sm:$0x2] %vm1785_vm14, %v3916_v21  ;;  %v2200_v57 = vunpack.c.l.b16 %v1924_v55 }
  0x8c   : > { %v2213_v59 = vpack.c.b16 %v2201_v54, %v2129_v33  ;;  %1796 = vst.msk [vmem:[#allocation4 + $0x54] sm:$0x2] %vm1785_vm14, %v3916_v21  ;;  %v2369_v25 = vpack.c.b16 %v2201_v54, %v2357_v24 }
  0x8d   : > { %v1221_v60 = vshrl.u32 %v1210_v56, 16  ;;  %v1223_v61 = vshll.u32 %v1210_v56, 16  ;;  %1797 = vst.msk [vmem:[#allocation4 + $0x5c] sm:$0x2] %vm1785_vm14, %v3916_v21  ;;  %v2368_v62 = vpack.c.b16 %v2200_v57, %v2356_v53  ;;  %v2212_v15 = vpack.c.b16 %v2200_v57, %v2128_v40 }
  0x8e   : > { %v2233_v63 = vshrl.u32 %v2213_v59, 16  ;;  %v2236_v0 = vshll.u32 %v2213_v59, 16  ;;  %v2381_v51 = vrot.slane %v2369_v25, 2 }
  0x8f   : > { %v1225_v2 = vrot.slane %v1223_v61, 1  ;;  %v2228_v17 = vshll.u32 %v2212_v15, 16 }
  0x90   : > { %v2238_v8 = vrot.slane %v2236_v0, 2 }
  0x91   : > { %v1226_v9 = vor.u32 %v1225_v2, %v1221_v60  ;;  %v2230_v19 = vrot.slane %v2228_v17, 2 }
  0x93   : > { %1290 = vrot.lane.b32.xlu2 %v1226_v9, %s3915_s8 }
  0xbc   : > { %v824_v13 = vpop.permute.xlu1 %823 }
  0xbd   : > { %v836_v5 = vsel %vm827_vm9, %v3602_v4, %v824_v13  ;;  %v2380_v4 = vrot.slane %v2368_v62, 2  ;;  %v2018_v13 = vshll.u32 %v1997_v58, 16 }
  0xbe   : > { %3336 = vmatmul.msk.bf16.vlgmr.msra.gmra.mxu2 %vm860_vm10, %v836_v5  ;;  %v2235_v5 = vrot.slane %v2233_v63, 1 }
  0xbf   : > { %2392 = vrot.lane.b32.xlu1 %v2380_v4, %s3917_s16  ;;  %v2020_v12 = vrot.slane %v2018_v13, 1 }
  0xc1   : > { %v2021_v21 = vor.u32 %v2020_v12, %v2016_v11 }
  0xc3   : > { %2094 = vrot.lane.b32.xlu2 %v2021_v21, %s3918_s17 }
  0xd4   : > { %v820_v16 = vpop.permute.xlu0 %819 }
  0xd5   : > { %v830_v18 = vsel %vm827_vm9, %v3600_v10, %v820_v16  ;;  %v2239_v10 = vor.u32 %v2238_v8, %v2235_v5  ;;  %v2225_v16 = vshrl.u32 %v2212_v15, 16 }
  0xd6   : > { %3334 = vmatmul.msk.bf16.vlgmr.msra.gmra.mxu0 %vm860_vm10, %v830_v18 }
  0xd7   : > { %2322 = vrot.lane.b32.xlu0 %v2239_v10, %s3919_s18  ;;  %v2227_v18 = vrot.slane %v2225_v16, 1 }
  0xd9   : > { %v2231_v20 = vor.u32 %v2230_v19, %v2227_v18 }
  0xdb   : > { %2320 = vrot.lane.b32.xlu2 %v2231_v20, %s3919_s18 }
  0xdc   : > { %v822_v35 = vpop.permute.xlu0 %821 }
  0xdd   : > { %v833_v39 = vsel %vm827_vm9, %v3601_v28, %v822_v35 }
  0xde   : > { %3335 = vmatmul.msk.bf16.vlgmr.msra.gmra.mxu1 %vm860_vm10, %v833_v39 }
  0xe3   : > { %v826_v45 = vpop.permute.xlu1 %825  ;;  %2394 = vrot.lane.b32.xlu2 %v2381_v51, %s3917_s16 }
  0xe4   : > { %v839_v48 = vsel %vm827_vm9, %v3603_v43, %v826_v45 }
  0xe5   : > { %3337 = vmatmul.msk.bf16.vlgmr.msra.gmra.mxu3 %vm860_vm10, %v839_v48 }
  0xed   : > { %v1291_v10 = vpop.permute.xlu2 %1290 }
  0xee   : > { %v1372_v17 = vsel %vm827_vm9, %v4283_v6, %v1291_v10 }
  0xf2   : > { %v1351_v20 = vpop.permute.xlu0 %1350  ;;  %v2093_v23 = vpop.permute.xlu1 %2092 }
  0xf3   : > { %v1401_v25 = vsel %vm860_vm10, %v1372_v17, %v1351_v20 }
  0xf4   : > { %1431 = vst.msk [vmem:[#allocation3] sm:$0xf] %vm1430_vm15, %v1401_v25 }
 0x11d   : > { %v2095_v51 = vpop.permute.xlu2 %2094 }
 0x141   : > { %v888_v33 = vpop.f32.mrf.mxu2 }
 0x142   : > { %v889_v35 = vadd.f32 %v4310_v22, %v888_v33  ;;  %v2167_v33 = vpop.permute.xlu1 %2166 }
 0x144   : > { %v4325_v38 = vmax.f32 %v889_v35, 0.0 }
 0x146   : > { %v975_v48 = vpack.c.bf16 %v4325_v38, %v4325_v38 }
 0x148   : > { %v1814_v52 = vrot.slane %v975_v48, 7  ;;  %v1012_v63 = vshrl.u32 %v975_v48, 16  ;;  %v1015_v13 = vshll.u32 %v975_v48, 16 }
 0x149   : > { %v890_v24 = vpop.f32.mrf.mxu2 }
 0x14a   : > { %v1014_v4 = vrot.slane %v1012_v63, 7 }
 0x14c   : > { %v1017_v9 = vor.u32 %v1015_v13, %v1014_v4  ;;  %v1018_v6 = vrot.slane %v1014_v4, 4 }
 0x153   : > { %v878_v26 = vpop.f32.mrf.mxu0 }
 0x154   : > { %v879_v27 = vadd.f32 %v4310_v22, %v878_v26  ;;  %v891_v26 = vadd.f32 %v4310_v22, %v890_v24 }
 0x156   : > { %v4313_v28 = vmax.f32 %v879_v27, 0.0 }
 0x158   : > { %v971_v29 = vpack.c.bf16 %v4313_v28, %v4313_v28 }
 0x15a   : > { %v1806_v30 = vrot.slane %v971_v29, 7  ;;  %v980_v46 = vshrl.u32 %v971_v29, 16  ;;  %v983_v56 = vshll.u32 %v971_v29, 16  ;;  %v1815_v29 = vrot.slane %v1814_v52, 4 }
 0x15b   : > { %v883_v31 = vpop.f32.mrf.mxu1  ;;  %v880_v57 = vpop.f32.mrf.mxu0 }
 0x15c   : > { %v884_v40 = vadd.f32 %v4310_v22, %v883_v31  ;;  %1822 = vrot.lane.b32.xlu2 %v1806_v30, %s3920_s21  ;;  %v1807_v32 = vrot.slane %v1806_v30, 4  ;;  %v982_v53 = vrot.slane %v980_v46, 7  ;;  %v881_v60 = vadd.f32 %v4310_v22, %v880_v57 }
 0x15d   : > { %v4379_v31 = vmax.f32 %v891_v26, 0.0  ;;  %v2422_v46 = vsel %vm2416_vm0, %v4273_v47, %v2095_v51 }
 0x15e   : > { %v4320_v36 = vmax.f32 %v884_v40, 0.0  ;;  %1824 = vrot.lane.b32.xlu0 %v1807_v32, %s3920_s21  ;;  %v985_v59 = vor.u32 %v983_v56, %v982_v53  ;;  %v4352_v2 = vmax.f32 %v881_v60, 0.0  ;;  %v986_v5 = vrot.slane %v982_v53, 4  ;;  %v2165_v32 = vpop.permute.xlu0 %2164 }
 0x15f   : > { %v2456_v47 = vsel %vm827_vm9, %v2422_v46, %v2167_v33 }
 0x160   : > { %v973_v37 = vpack.c.bf16 %v4320_v36, %v4320_v36  ;;  %v4357_v8 = vpack.c.bf16 %v4352_v2, %v4352_v2 }
 0x162   : > { %v1810_v39 = vrot.slane %v973_v37, 7  ;;  %v996_v41 = vshrl.u32 %v973_v37, 16  ;;  %v1808_v12 = vrot.slane %v4357_v8, 7  ;;  %v999_v15 = vshll.u32 %v973_v37, 16 }
 0x163   : > { %v885_v42 = vpop.f32.mrf.mxu1  ;;  %v988_v19 = vshrl.u32 %v4357_v8, 16  ;;  %v991_v30 = vshll.u32 %v4357_v8, 16  ;;  %v2419_v37 = vsel %vm2416_vm0, %v4220_v14, %v2093_v23  ;;  %v2393_v14 = vpop.permute.xlu1 %2392 }
 0x164   : > { %v886_v43 = vadd.f32 %v4310_v22, %v885_v42  ;;  %1830 = vrot.lane.b32.xlu1 %v1810_v39, %s3920_s21  ;;  %v1811_v44 = vrot.slane %v1810_v39, 4  ;;  %v998_v45 = vrot.slane %v996_v41, 7  ;;  %v976_v39 = vpack.c.bf16 %v4379_v31, %v4379_v31  ;;  %v2321_v42 = vpop.permute.xlu2 %2320 }
 0x165   : > { %v990_v27 = vrot.slane %v988_v19, 7 }
 0x166   : > { %v4331_v3 = vmax.f32 %v886_v43, 0.0  ;;  %1832 = vrot.lane.b32.xlu2 %v1811_v44, %s3920_s21  ;;  %v1002_v49 = vrot.slane %v998_v45, 4  ;;  %v1001_v21 = vor.u32 %v999_v15, %v998_v45  ;;  %v2454_v45 = vsel %vm827_vm9, %v2419_v37, %v2165_v32  ;;  %v920_v32 = vld [vmem:[#allocation2 + $0x18] sm:$0x1] }
 0x167   : > { %v993_v40 = vor.u32 %v991_v30, %v990_v27  ;;  %v1816_v48 = vrot.slane %v976_v39, 7  ;;  %v921_v33 = vsel %vm4030_vm3, 0, %v920_v32 }
 0x168   : > { %v893_v50 = vpop.f32.mrf.mxu3  ;;  %1053 = vrot.lane.b32.xlu0 %v1002_v49, %s3921_s22  ;;  %v4338_v55 = vpack.c.bf16 %v4331_v3, %v4331_v3  ;;  %v1020_v49 = vshrl.u32 %v976_v39, 16  ;;  %922 = vst [vmem:[#allocation2 + $0x18] sm:$0x1] %v921_v33 }
 0x169   : > { %v894_v54 = vadd.f32 %v4310_v22, %v893_v50  ;;  %v2567_v50 = vld [vmem:[%s5083_s5 + $0x10] sm:$0xf]  ;;  %v1817_v25 = vrot.slane %v1816_v48, 4 }
 0x16a   : > { %v1812_v62 = vrot.slane %v4338_v55, 7  ;;  %v1022_v60 = vrot.slane %v1020_v49, 7  ;;  %v1004_v63 = vshrl.u32 %v4338_v55, 16  ;;  %v1007_v17 = vshll.u32 %v4338_v55, 16 }
 0x16b   : > { %v4340_v58 = vmax.f32 %v894_v54, 0.0  ;;  %v2323_v54 = vpop.permute.xlu0 %2322 }
 0x16c   : > { %1838 = vrot.lane.b32.xlu1 %v1814_v52, %s3920_s21  ;;  %v1813_v41 = vrot.slane %v1812_v62, 4  ;;  %v2597_v52 = vunpack.c.l.b16 %v2567_v50  ;;  %v2395_v10 = vpop.permute.xlu2 %2394  ;;  %v1006_v15 = vrot.slane %v1004_v63, 7 }
 0x16d   : > { %v4346_v61 = vpack.c.bf16 %v4340_v58, %v4340_v58 }
 0x16e   : > { %1043 = vrot.lane.b32.xlu2 %v985_v59, %s3921_s22  ;;  %v2600_v57 = vpack.c.b16 %v2597_v52, %v2597_v52  ;;  %v994_v59 = vrot.slane %v990_v27, 4  ;;  %v1009_v19 = vor.u32 %v1007_v17, %v1006_v15  ;;  %v944_v27 = vld [vmem:[#allocation2 + $0xc] sm:$0x1] }
 0x16f   : > { %v1818_v0 = vrot.slane %v4346_v61, 7  ;;  %v1028_v11 = vshrl.u32 %v4346_v61, 16  ;;  %v1031_v8 = vshll.u32 %v4346_v61, 16  ;;  %v914_v61 = vld [vmem:[#allocation2 + $0x8] sm:$0x1] }
 0x170   : > { %1834 = vrot.lane.b32.xlu0 %v1812_v62, %s3920_s21  ;;  %v895_v35 = vpop.f32.mrf.mxu3  ;;  %v1023_v62 = vshll.u32 %v976_v39, 16  ;;  %v2618_v4 = vsel %vm2616_vm4, %v2600_v57, 0  ;;  %v915_v51 = vsel %vm4030_vm3, 0, %v914_v61  ;;  %v956_v52 = vld [vmem:[#allocation2 + $0x2c] sm:$0x1] }
 0x171   : > { %v4366_v16 = vrot.slane %v1028_v11, 7  ;;  %v896_v43 = vadd.f32 %v4310_v22, %v895_v35  ;;  %v1819_v44 = vrot.slane %v1818_v0, 4  ;;  %v2479_v22 = vsel %vm2477_vm1, %v2454_v45, %v2321_v42  ;;  %2625 = vmatpush.bf16.msrb.mxu0 %v2618_v4  ;;  %916 = vst [vmem:[#allocation2 + $0x8] sm:$0x1] %v915_v51  ;;  %v950_v35 = vld [vmem:[#allocation2 + $0x1c] sm:$0x1] }
 0x172   : > { %v2503_v56 = vsel %vm860_vm10, %v2479_v22, %v2393_v14  ;;  %v1025_v11 = vor.u32 %v1023_v62, %v1022_v60  ;;  %v951_v37 = vsel %vm4045_vm5, 0, %v950_v35  ;;  %v962_v14 = vld [vmem:[#allocation2 + $0x3c] sm:$0x1] }
 0x173   : > { %v1034_v18 = vrot.slane %v4366_v16, 4  ;;  %v4397_v53 = vmax.f32 %v896_v43, 0.0  ;;  %2539 = vst.msk [vmem:[#allocation5] sm:$0xf] %vm2538_vm2, %v2503_v56  ;;  %v1033_v20 = vor.u32 %v1031_v8, %v4366_v16  ;;  %v1010_v16 = vrot.slane %v1006_v15, 4 }
 0x174   : > { %1846 = vrot.lane.b32.xlu1 %v1818_v0, %s3920_s21  ;;  %v2481_v0 = vsel %vm2477_vm1, %v2456_v47, %v2323_v54  ;;  %952 = vst [vmem:[#allocation2 + $0x1c] sm:$0x1] %v951_v37  ;;  %v926_v43 = vld [vmem:[#allocation2 + $0x28] sm:$0x1]  ;;  %v963_v22 = vsel %vm4045_vm5, 0, %v962_v14  ;;  %v957_v56 = vsel %vm4045_vm5, 0, %v956_v52 }
 0x175   : > { %v4408_v13 = vpack.c.bf16 %v4397_v53, %v4397_v53  ;;  %v927_v45 = vsel %vm4030_vm3, 0, %v926_v43  ;;  %964 = vst [vmem:[#allocation2 + $0x3c] sm:$0x1] %v963_v22  ;;  %v917_v8 = vld [vmem:[#allocation2 + $0x10] sm:$0x1] }
 0x176   : > { %1045 = vrot.lane.b32.xlu2 %v986_v5, %s3921_s22  ;;  %v1809_v5 = vrot.slane %v1808_v12, 4  ;;  %928 = vst [vmem:[#allocation2 + $0x28] sm:$0x1] %v927_v45  ;;  %v953_v43 = vld [vmem:[#allocation2 + $0x24] sm:$0x1] }
 0x177   : > { %v1039_v26 = vshll.u32 %v4408_v13, 16  ;;  %958 = vst [vmem:[#allocation2 + $0x2c] sm:$0x1] %v957_v56  ;;  %v954_v56 = vsel %vm4045_vm5, 0, %v953_v43 }
 0x178   : > { %1059 = vrot.lane.b32.xlu0 %v1017_v9, %s3921_s22  ;;  %v3632_v9 = vld [vmem:[%s5083_s5 + $0x8] sm:$0xff]  ;;  %955 = vst [vmem:[#allocation2 + $0x24] sm:$0x1] %v954_v56 }
 0x179   : > { %2626 = vmatpush.bf16.msrb.mxu0 %v3632_v9 }
 0x17b   : > { %v1107_v62 = vld [vmem:[#allocation2 + $0x1c] sm:$0x1] }
 0x17c   : > { %1826 = vrot.lane.b32.xlu1 %v1808_v12, %s3920_s21  ;;  %v1036_v12 = vshrl.u32 %v4408_v13, 16 }
 0x17e   : > { %1051 = vrot.lane.b32.xlu2 %v1001_v21, %s3921_s22  ;;  %v2506_v21 = vsel %vm860_vm10, %v2481_v0, %v2395_v10  ;;  %v1038_v23 = vrot.slane %v1036_v12, 7 }
 0x17f   : > { %2540 = vst.msk [vmem:[#allocation5 + $0x4] sm:$0xf] %vm2538_vm2, %v2506_v21 }
 0x180   : > { %1069 = vrot.lane.b32.xlu0 %v1034_v18, %s3921_s22  ;;  %v3631_v18 = vld [vmem:[%s5083_s5] sm:$0xff]  ;;  %v1042_v55 = vrot.slane %v1038_v23, 4  ;;  %v1041_v30 = vor.u32 %v1039_v26, %v1038_v23 }
 0x181   : > { %2627 = vmatpush.bf16.msrb.mxu0 %v3631_v18  ;;  %v918_v18 = vsel %vm4030_vm3, 0, %v917_v8 }
 0x182   : > { %919 = vst [vmem:[#allocation2 + $0x10] sm:$0x1] %v918_v18 }
 0x184   : > { %1061 = vrot.lane.b32.xlu1 %v1018_v6, %s3921_s22  ;;  %v1026_v6 = vrot.slane %v1022_v60, 4  ;;  %v932_v60 = vld [vmem:[#allocation2 + $0x38] sm:$0x1] }
 0x185   : > { %v933_v63 = vsel %vm4030_vm3, 0, %v932_v60 }
 0x186   : > { %1840 = vrot.lane.b32.xlu2 %v1815_v29, %s3920_s21  ;;  %v3627_v24 = vld [vmem:[#allocation5] sm:$0xff]  ;;  %v945_v29 = vsel %vm4045_vm5, 0, %v944_v27  ;;  %934 = vst [vmem:[#allocation2 + $0x38] sm:$0x1] %v933_v63 }
 0x187   : > { %3458 = vmatmul.msk.bf16.vlgmr.msrb.gmra.mxu0 %vm2603_vm7, %v3627_v24  ;;  %946 = vst [vmem:[#allocation2 + $0xc] sm:$0x1] %v945_v29 }
 0x188   : > { %1047 = vrot.lane.b32.xlu0 %v993_v40, %s3921_s22 }
 0x18c   : > { %1836 = vrot.lane.b32.xlu1 %v1813_v41, %s3920_s21  ;;  %v1092_v41 = vld [vmem:[#allocation2 + $0x8] sm:$0xf] }
 0x18e   : > { %1848 = vrot.lane.b32.xlu2 %v1819_v44, %s3920_s21  ;;  %v1095_v46 = vld [vmem:[#allocation2 + $0xc] sm:$0x1] }
 0x190   : > { %1842 = vrot.lane.b32.xlu0 %v1816_v48, %s3920_s21 }
 0x194   : > { %1049 = vrot.lane.b32.xlu1 %v994_v59, %s3921_s22  ;;  %v1104_v59 = vld [vmem:[#allocation2 + $0x18] sm:$0xf] }
 0x196   : > { %1828 = vrot.lane.b32.xlu2 %v1809_v5, %s3920_s21 }
 0x198   : > { %1063 = vrot.lane.b32.xlu0 %v1025_v11, %s3921_s22 }
 0x19c   : > { %1055 = vrot.lane.b32.xlu1 %v1009_v19, %s3921_s22 }
 0x19e   : > { %1067 = vrot.lane.b32.xlu2 %v1033_v20, %s3921_s22 }
 0x1a0   : > { %1073 = vrot.lane.b32.xlu0 %v1042_v55, %s3921_s22 }
 0x1a4   : > { %1844 = vrot.lane.b32.xlu1 %v1817_v25, %s3920_s21 }
 0x1a6   : > { %1057 = vrot.lane.b32.xlu2 %v1010_v16, %s3921_s22 }
 0x1ac   : > { %1065 = vrot.lane.b32.xlu1 %v1026_v6, %s3921_s22 }
 0x1ae   : > { %1071 = vrot.lane.b32.xlu2 %v1041_v30, %s3921_s22 }
 0x1b6   : > { %v1823_v40 = vpop.permute.xlu2 %1822 }
 0x1b7   : > { %1872 = vst.msk [vmem:[#allocation4 + $0x10] sm:$0xe] %vm1871_vm8, %v1823_v40 }
 0x1be   : > { %v1938_v47 = vld [vmem:[#allocation4 + $0x10] sm:$0xc] }
 0x1bf   : > { %v1914_v54 = vld [vmem:[#allocation4 + $0x10] sm:$0xe]  ;;  %v2358_v5 = vunpack.c.l.b16 %v1938_v47 }
 0x1c0   : > { %v1833_v39 = vpop.permute.xlu2 %1832  ;;  %v2130_v21 = vunpack.c.l.b16 %v1914_v54 }
 0x1c1   : > { %1877 = vst.msk [vmem:[#allocation4 + $0x24] sm:$0x1] %vm1772_vm13, %v1833_v39 }
 0x1c8   : > { %v1044_v42 = vpop.permute.xlu2 %1043  ;;  %v1904_v24 = vld [vmem:[#allocation4 + $0x24] sm:$0x1] }
 0x1c9   : > { %v1093_v44 = vsel %vm4067_vm6, %v1044_v42, %v1092_v41  ;;  %v1981_v30 = vunpack.c.l.b16 %v1904_v24 }
 0x1ca   : > { %1094 = vst [vmem:[#allocation2 + $0x8] sm:$0xf] %v1093_v44 }
 0x1d0   : > { %v1046_v48 = vpop.permute.xlu2 %1045  ;;  %v1825_v49 = vpop.permute.xlu0 %1824 }
 0x1d1   : > { %v1096_v50 = vsel %vm4030_vm3, %v1046_v48, %v1095_v46  ;;  %1873 = vst.msk [vmem:[#allocation4 + $0x14] sm:$0x1] %vm1772_vm13, %v1825_v49  ;;  %v1161_v55 = vld [vmem:[#allocation2 + $0x8] sm:$0xe] }
 0x1d2   : > { %1097 = vst [vmem:[#allocation2 + $0xc] sm:$0x1] %v1096_v50  ;;  %v1321_v6 = vunpack.c.l.b16 %v1161_v55  ;;  %v4480_v37 = vld [vmem:[#allocation2 + $0x8] sm:$0xf] }
 0x1d3   : > { %v4487_v48 = vld [vmem:[#allocation4 + $0x10] sm:$0xf]  ;;  %v1192_v54 = vunpack.c.l.b16 %v4480_v37 }
 0x1d6   : > { %v1831_v57 = vpop.permute.xlu1 %1830 }
 0x1d7   : > { %1876 = vst.msk [vmem:[#allocation4 + $0x20] sm:$0xe] %vm1871_vm8, %v1831_v57  ;;  %v947_v57 = vld [vmem:[#allocation2 + $0x14] sm:$0x1] }
 0x1d8   : > { %v1052_v0 = vpop.permute.xlu2 %1051  ;;  %v1926_v4 = vld [vmem:[#allocation4 + $0x14] sm:$0x3]  ;;  %v948_v63 = vsel %vm4045_vm5, 0, %v947_v57 }
 0x1d9   : > { %v4460_v9 = vld [vmem:[#allocation4 + $0x14] sm:$0x1]  ;;  %v1105_v10 = vsel %vm4067_vm6, %v1052_v0, %v1104_v59  ;;  %v2202_v11 = vunpack.c.l.b16 %v1926_v4  ;;  %949 = vst [vmem:[#allocation2 + $0x14] sm:$0x1] %v948_v63 }
 0x1da   : > { %v1977_v15 = vunpack.c.l.b16 %v4460_v9  ;;  %v1151_v17 = vld [vmem:[#allocation2 + $0xc] sm:$0x1]  ;;  %1106 = vst [vmem:[#allocation2 + $0x18] sm:$0xf] %v1105_v10  ;;  %v1054_v12 = vpop.permute.xlu0 %1053 }
 0x1db   : > { %v1108_v19 = vsel %vm4030_vm3, %v1054_v12, %v1107_v62  ;;  %v2370_v20 = vpack.c.b16 %v2202_v11, %v2358_v5  ;;  %v1193_v61 = vunpack.c.l.b16 %v1151_v17  ;;  %v2214_v29 = vpack.c.b16 %v2202_v11, %v2130_v21 }
 0x1dc   : > { %v2142_v23 = vpack.c.b16 %v1977_v15, %v2130_v21  ;;  %1109 = vst [vmem:[#allocation2 + $0x1c] sm:$0x1] %v1108_v19  ;;  %v1976_v11 = vunpack.c.l.b16 %v4487_v48  ;;  %v935_v21 = vld [vmem:[#allocation2 + $0x40] sm:$0x1] }
 0x1dd   : > { %v2382_v25 = vrot.slane %v2370_v20, 2  ;;  %v1331_v35 = vpack.c.b16 %v1193_v61, %v1321_v6  ;;  %v2241_v45 = vshrl.u32 %v2214_v29, 16  ;;  %v2244_v46 = vshll.u32 %v2214_v29, 16  ;;  %v1116_v20 = vld [vmem:[#allocation2 + $0x28] sm:$0xf] }
 0x1de   : > { %v2154_v51 = vrot.slane %v2142_v23, 1  ;;  %v1839_v16 = vpop.permute.xlu1 %1838  ;;  %v4471_v26 = vld [vmem:[#allocation4 + $0x20] sm:$0xe]  ;;  %v1211_v10 = vpack.c.b16 %v1193_v61, %v1192_v54  ;;  %v936_v18 = vsel %vm4030_vm3, 0, %v935_v21  ;;  %v929_v23 = vld [vmem:[#allocation2 + $0x30] sm:$0x1]  ;;  %v1998_v61 = vpack.c.b16 %v1977_v15, %v1976_v11 }
 0x1df   : > { %v4473_v27 = vld [vmem:[#allocation4 + $0x20] sm:$0xf]  ;;  %1880 = vst.msk [vmem:[#allocation4 + $0x30] sm:$0xe] %vm1871_vm8, %v1839_v16  ;;  %2396 = vrot.lane.b32.xlu1 %v2382_v25, %s3917_s16  ;;  %v2132_v40 = vunpack.c.l.b16 %v4471_v26  ;;  %v1341_v22 = vrot.slane %v1331_v35, 1  ;;  %v2243_v4 = vrot.slane %v2241_v45, 1 }
 0x1e0   : > { %2168 = vrot.lane.b32.xlu0 %v2154_v51, %s3915_s8  ;;  %v1980_v32 = vunpack.c.l.b16 %v4473_v27  ;;  %v1841_v33 = vpop.permute.xlu2 %1840  ;;  %v2246_v5 = vrot.slane %v2244_v46, 2  ;;  %937 = vst [vmem:[#allocation2 + $0x40] sm:$0x1] %v936_v18  ;;  %v930_v25 = vsel %vm4030_vm3, 0, %v929_v23  ;;  %v2025_v15 = vshll.u32 %v1998_v61, 16 }
 0x1e1   : > { %1881 = vst.msk [vmem:[#allocation4 + $0x34] sm:$0x1] %vm1772_vm13, %v1841_v33  ;;  %v2144_v39 = vpack.c.b16 %v1981_v30, %v2132_v40  ;;  %v4485_v42 = vld [vmem:[#allocation2 + $0x18] sm:$0xf]  ;;  %v923_v33 = vld [vmem:[#allocation2 + $0x20] sm:$0x1] }
 0x1e2   : > { %v2000_v41 = vpack.c.b16 %v1981_v30, %v1980_v32  ;;  %v1835_v44 = vpop.permute.xlu0 %1834  ;;  %v1163_v50 = vld [vmem:[#allocation2 + $0x18] sm:$0xe]  ;;  %v1196_v47 = vunpack.c.l.b16 %v4485_v42  ;;  %931 = vst [vmem:[#allocation2 + $0x30] sm:$0x1] %v930_v25  ;;  %v2247_v6 = vor.u32 %v2246_v5, %v2243_v4  ;;  %v1230_v30 = vshll.u32 %v1211_v10, 16 }
 0x1e3   : > { %1878 = vst.msk [vmem:[#allocation4 + $0x28] sm:$0xe] %vm1871_vm8, %v1835_v44  ;;  %v2156_v49 = vrot.slane %v2144_v39, 1  ;;  %v1153_v52 = vld [vmem:[#allocation2 + $0x1c] sm:$0x1]  ;;  %v1323_v8 = vunpack.c.l.b16 %v1163_v50  ;;  %v924_v39 = vsel %vm4030_vm3, 0, %v923_v33 }
 0x1e4   : > { %v2039_v14 = vshll.u32 %v2000_v41, 16  ;;  %v2037_v59 = vshrl.u32 %v2000_v41, 16  ;;  %v1197_v62 = vunpack.c.l.b16 %v1153_v52  ;;  %v4510_v32 = vld [vmem:[#allocation4 + $0x24] sm:$0x3]  ;;  %925 = vst [vmem:[#allocation2 + $0x20] sm:$0x1] %v924_v39 }
 0x1e5   : > { %2172 = vrot.lane.b32.xlu2 %v2156_v49, %s3915_s8  ;;  %v2204_v43 = vunpack.c.l.b16 %v4510_v32  ;;  %v1232_v45 = vrot.slane %v1230_v30, 1  ;;  %v1131_v49 = vld [vmem:[#allocation2 + $0x3c] sm:$0x1]  ;;  %v965_v50 = vld [vmem:[#allocation2 + $0x44] sm:$0x1]  ;;  %v2027_v52 = vrot.slane %v2025_v15, 1 }
 0x1e6   : > { %v2041_v60 = vrot.slane %v2039_v14, 1  ;;  %v1847_v0 = vpop.permute.xlu1 %1846  ;;  %v1213_v12 = vpack.c.b16 %v1197_v62, %v1196_v47  ;;  %v1333_v55 = vpack.c.b16 %v1197_v62, %v1323_v8  ;;  %v966_v47 = vsel %vm4045_vm5, 0, %v965_v50  ;;  %v959_v25 = vld [vmem:[#allocation2 + $0x34] sm:$0x1]  ;;  %v1113_v33 = vld [vmem:[#allocation2 + $0x24] sm:$0x1] }
 0x1e7   : > { %1884 = vst.msk [vmem:[#allocation4 + $0x40] sm:$0xe] %vm1871_vm8, %v1847_v0  ;;  %1352 = vrot.lane.b32.xlu1 %v1341_v22, %s3917_s16  ;;  %v2216_v14 = vpack.c.b16 %v2204_v43, %v2132_v40  ;;  %v1228_v22 = vshrl.u32 %v1211_v10, 16  ;;  %v2023_v26 = vshrl.u32 %v1998_v61, 16  ;;  %v1128_v0 = vld [vmem:[#allocation2 + $0x38] sm:$0xf] }
 0x1e8   : > { %v2042_v17 = vor.u32 %v2041_v60, %v2037_v59  ;;  %v1849_v19 = vpop.permute.xlu2 %1848  ;;  %v1244_v24 = vshll.u32 %v1213_v12, 16  ;;  %v1343_v35 = vrot.slane %v1333_v55, 1  ;;  %v1242_v9 = vshrl.u32 %v1213_v12, 16  ;;  %967 = vst [vmem:[#allocation2 + $0x44] sm:$0x1] %v966_v47 }
 0x1e9   : > { %1885 = vst.msk [vmem:[#allocation4 + $0x44] sm:$0x1] %vm1772_vm13, %v1849_v19  ;;  %v1233_v57 = vor.u32 %v1232_v45, %v1228_v22  ;;  %v1119_v59 = vld [vmem:[#allocation2 + $0x2c] sm:$0x1]  ;;  %v2257_v40 = vshrl.u32 %v2216_v14, 16  ;;  %v2028_v60 = vor.u32 %v2027_v52, %v2023_v26  ;;  %v2260_v62 = vshll.u32 %v2216_v14, 16 }
 0x1ea   : > { %2100 = vrot.lane.b32.xlu0 %v2042_v17, %s3918_s17  ;;  %v1060_v51 = vpop.permute.xlu0 %1059  ;;  %v1246_v29 = vrot.slane %v1244_v24, 1  ;;  %v1098_v10 = vld [vmem:[#allocation2 + $0x10] sm:$0xf]  ;;  %v4554_v45 = vld [vmem:[#allocation4 + $0x28] sm:$0xe] }
 0x1eb   : > { %v1117_v16 = vsel %vm4067_vm6, %v1060_v51, %v1116_v20  ;;  %v2259_v17 = vrot.slane %v2257_v40, 1  ;;  %v2262_v19 = vrot.slane %v2260_v62, 2  ;;  %v1134_v14 = vld [vmem:[#allocation2 + $0x40] sm:$0xf]  ;;  %v2133_v47 = vunpack.c.l.b16 %v4554_v45 }
 0x1ec   : > { %1118 = vst [vmem:[#allocation2 + $0x28] sm:$0xf] %v1117_v16  ;;  %v1247_v44 = vor.u32 %v1246_v29, %v1242_v9  ;;  %v960_v29 = vsel %vm4045_vm5, 0, %v959_v25 }
 0x1ed   : > { %2324 = vrot.lane.b32.xlu2 %v2247_v6, %s3919_s18  ;;  %v2263_v16 = vor.u32 %v2262_v19, %v2259_v17  ;;  %961 = vst [vmem:[#allocation2 + $0x34] sm:$0x1] %v960_v29 }
 0x1ee   : > { %v1827_v41 = vpop.permute.xlu1 %1826 }
 0x1ef   : > { %1874 = vst.msk [vmem:[#allocation4 + $0x18] sm:$0xe] %vm1871_vm8, %v1827_v41  ;;  %1356 = vrot.lane.b32.xlu1 %v1343_v35, %s3917_s16 }
 0x1f0   : > { %v1829_v46 = vpop.permute.xlu2 %1828 }
 0x1f1   : > { %1875 = vst.msk [vmem:[#allocation4 + $0x1c] sm:$0x1] %vm1772_vm13, %v1829_v46 }
 0x1f2   : > { %1296 = vrot.lane.b32.xlu0 %v1247_v44, %s3915_s8  ;;  %v1070_v54 = vpop.permute.xlu0 %1069  ;;  %v1101_v44 = vld [vmem:[#allocation2 + $0x14] sm:$0x1] }
 0x1f3   : > { %v1132_v56 = vsel %vm4030_vm3, %v1070_v54, %v1131_v49 }
 0x1f4   : > { %1133 = vst [vmem:[#allocation2 + $0x3c] sm:$0x1] %v1132_v56  ;;  %v1122_v56 = vld [vmem:[#allocation2 + $0x30] sm:$0xf] }
 0x1f5   : > { %1292 = vrot.lane.b32.xlu2 %v1233_v57, %s3915_s8 }
 0x1f6   : > { %v1062_v63 = vpop.permute.xlu1 %1061  ;;  %v1939_v4 = vld [vmem:[#allocation4 + $0x18] sm:$0xc] }
 0x1f7   : > { %v1120_v5 = vsel %vm4030_vm3, %v1062_v63, %v1119_v59  ;;  %2096 = vrot.lane.b32.xlu1 %v2028_v60, %s3918_s17  ;;  %v2359_v18 = vunpack.c.l.b16 %v1939_v4  ;;  %v4541_v61 = vld [vmem:[#allocation4 + $0x18] sm:$0xe]  ;;  %v1165_v60 = vld [vmem:[#allocation2 + $0x28] sm:$0xe] }
 0x1f8   : > { %1121 = vst [vmem:[#allocation2 + $0x2c] sm:$0x1] %v1120_v5  ;;  %v1068_v11 = vpop.permute.xlu2 %1067  ;;  %v4532_v21 = vld [vmem:[#allocation4 + $0x1c] sm:$0x3]  ;;  %v2131_v35 = vunpack.c.l.b16 %v4541_v61  ;;  %v4564_v62 = vld [vmem:[#allocation4 + $0x18] sm:$0xf] }
 0x1f9   : > { %v1129_v8 = vsel %vm4067_vm6, %v1068_v11, %v1128_v0  ;;  %v2203_v12 = vunpack.c.l.b16 %v4532_v21  ;;  %v1903_v23 = vld [vmem:[#allocation4 + $0x1c] sm:$0x1]  ;;  %v1110_v5 = vld [vmem:[#allocation2 + $0x20] sm:$0xf]  ;;  %v1978_v17 = vunpack.c.l.b16 %v4564_v62  ;;  %v968_v61 = vld [vmem:[#allocation2 + $0x4c] sm:$0x1] }
 0x1fa   : > { %1130 = vst [vmem:[#allocation2 + $0x38] sm:$0xf] %v1129_v8  ;;  %v1048_v20 = vpop.permute.xlu0 %1047  ;;  %v1979_v6 = vunpack.c.l.b16 %v1903_v23  ;;  %v969_v21 = vsel %vm4045_vm5, 0, %v968_v61  ;;  %v1940_v61 = vld [vmem:[#allocation4 + $0x20] sm:$0xc]  ;;  %vm3177_vm5 = vcmask 654336  }
 0x1fb   : > { %v1099_v55 = vsel %vm4067_vm6, %v1048_v20, %v1098_v10  ;;  %v2371_v24 = vpack.c.b16 %v2203_v12, %v2359_v18  ;;  %v1325_v10 = vunpack.c.l.b16 %v1165_v60  ;;  %970 = vst [vmem:[#allocation2 + $0x4c] sm:$0x1] %v969_v21 }
 0x1fc   : > { %1100 = vst [vmem:[#allocation2 + $0x10] sm:$0xf] %v1099_v55  ;;  %v2143_v39 = vpack.c.b16 %v1979_v6, %v2131_v35  ;;  %v1999_v23 = vpack.c.b16 %v1979_v6, %v1978_v17  ;;  %v1137_v55 = vld [vmem:[#allocation2 + $0x44] sm:$0x1]  ;;  %v4606_v17 = vld [vmem:[#allocation2 + $0x28] sm:$0xf] }
 0x1fd   : > { %v2383_v51 = vrot.slane %v2371_v24, 2 }
 0x1fe   : > { %v1837_v30 = vpop.permute.xlu1 %1836  ;;  %v2155_v46 = vrot.slane %v2143_v39, 1  ;;  %v2032_v39 = vshll.u32 %v1999_v23, 16 }
 0x1ff   : > { %1879 = vst.msk [vmem:[#allocation4 + $0x2c] sm:$0x1] %vm1772_vm13, %v1837_v30  ;;  %2398 = vrot.lane.b32.xlu2 %v2383_v51, %s3917_s16  ;;  %2328 = vrot.lane.b32.xlu1 %v2263_v16, %s3919_s18  ;;  %v4560_v57 = vld [vmem:[#allocation2 + $0x2c] sm:$0x1] }
 0x200   : > { %v1058_v9 = vpop.permute.xlu2 %1057  ;;  %v1201_v4 = vunpack.c.l.b16 %v4560_v57 }
 0x201   : > { %v1114_v15 = vsel %vm4030_vm3, %v1058_v9, %v1113_v33  ;;  %v1167_v51 = vld [vmem:[#allocation2 + $0x38] sm:$0xe]  ;;  %v4577_v33 = vld [vmem:[#allocation2 + $0x3c] sm:$0x1] }
 0x202   : > { %1115 = vst [vmem:[#allocation2 + $0x24] sm:$0x1] %v1114_v15  ;;  %v1843_v41 = vpop.permute.xlu0 %1842  ;;  %v1335_v19 = vpack.c.b16 %v1201_v4, %v1325_v10  ;;  %v1327_v15 = vunpack.c.l.b16 %v1167_v51  ;;  %v1205_v45 = vunpack.c.l.b16 %v4577_v33 }
 0x203   : > { %1882 = vst.msk [vmem:[#allocation4 + $0x38] sm:$0xe] %vm1871_vm8, %v1843_v41  ;;  %v1162_v11 = vld [vmem:[#allocation2 + $0x10] sm:$0xe]  ;;  %v4581_v41 = vld [vmem:[#allocation4 + $0x28] sm:$0xf] }
 0x204   : > { %v1322_v25 = vunpack.c.l.b16 %v1162_v11  ;;  %v1345_v9 = vrot.slane %v1335_v19, 1 }
 0x206   : > { %v1050_v49 = vpop.permute.xlu1 %1049  ;;  %v1905_v50 = vld [vmem:[#allocation4 + $0x2c] sm:$0x1] }
 0x207   : > { %v1102_v22 = vsel %vm4030_vm3, %v1050_v49, %v1101_v44  ;;  %2170 = vrot.lane.b32.xlu1 %v2155_v46, %s3915_s8  ;;  %v1983_v52 = vunpack.c.l.b16 %v1905_v50  ;;  %v4575_v16 = vld [vmem:[#allocation4 + $0x2c] sm:$0x3]  ;;  %v1982_v50 = vunpack.c.l.b16 %v4581_v41 }
 0x208   : > { %1103 = vst [vmem:[#allocation2 + $0x14] sm:$0x1] %v1102_v22  ;;  %v1072_v54 = vpop.permute.xlu2 %1071  ;;  %v2205_v44 = vunpack.c.l.b16 %v4575_v16  ;;  %v1337_v22 = vpack.c.b16 %v1205_v45, %v1327_v15 }
 0x209   : > { %v1135_v26 = vsel %vm4067_vm6, %v1072_v54, %v1134_v14  ;;  %v2145_v59 = vpack.c.b16 %v1983_v52, %v2133_v47  ;;  %v4586_v46 = vld [vmem:[#allocation2 + $0x24] sm:$0x1]  ;;  %v2215_v14 = vpack.c.b16 %v2203_v12, %v2131_v35 }
 0x20a   : > { %1136 = vst [vmem:[#allocation2 + $0x40] sm:$0xf] %v1135_v26  ;;  %v1064_v40 = vpop.permute.xlu0 %1063  ;;  %v1199_v26 = vunpack.c.l.b16 %v4586_v46  ;;  %v2217_v60 = vpack.c.b16 %v2205_v44, %v2133_v47 }
 0x20b   : > { %v1123_v63 = vsel %vm4067_vm6, %v1064_v40, %v1122_v56  ;;  %v2157_v0 = vrot.slane %v2145_v59, 1  ;;  %v2034_v56 = vrot.slane %v2032_v39, 1  ;;  %v2001_v40 = vpack.c.b16 %v1983_v52, %v1982_v50  ;;  %v1125_v52 = vld [vmem:[#allocation2 + $0x34] sm:$0x1] }
 0x20c   : > { %1124 = vst [vmem:[#allocation2 + $0x30] sm:$0xf] %v1123_v63  ;;  %v2030_v63 = vshrl.u32 %v1999_v23, 16  ;;  %v2249_v35 = vshrl.u32 %v2215_v14, 16  ;;  %v2252_v11 = vshll.u32 %v2215_v14, 16  ;;  %v2268_v19 = vshll.u32 %v2217_v60, 16 }
 0x20d   : > { %2174 = vrot.lane.b32.xlu0 %v2157_v0, %s3915_s8  ;;  %v4604_v0 = vld [vmem:[#allocation2 + $0x10] sm:$0xf]  ;;  %v2046_v47 = vshll.u32 %v2001_v40, 16  ;;  %v2044_v14 = vshrl.u32 %v2001_v40, 16 }
 0x20e   : > { %v1056_v8 = vpop.permute.xlu1 %1055  ;;  %v2035_v10 = vor.u32 %v2034_v56, %v2030_v63  ;;  %v1194_v7 = vunpack.c.l.b16 %v4604_v0  ;;  %v2251_v23 = vrot.slane %v2249_v35, 1  ;;  %v2270_v39 = vrot.slane %v2268_v19, 2 }
 0x20f   : > { %v1111_v18 = vsel %vm4067_vm6, %v1056_v8, %v1110_v5  ;;  %v1152_v20 = vld [vmem:[#allocation2 + $0x14] sm:$0x1]  ;;  %v1347_v5 = vrot.slane %v1337_v22, 1  ;;  %vm3186_vm6 = vcmask 916480  }
 0x210   : > { %1112 = vst [vmem:[#allocation2 + $0x20] sm:$0xf] %v1111_v18  ;;  %v1195_v24 = vunpack.c.l.b16 %v1152_v20  ;;  %v2265_v18 = vshrl.u32 %v2217_v60, 16 }
 0x212   : > { %v1074_v29 = vpop.permute.xlu0 %1073  ;;  %v1332_v30 = vpack.c.b16 %v1195_v24, %v1322_v25  ;;  %v938_v25 = vld [vmem:[#allocation2 + $0x48] sm:$0x1]  ;;  %v2267_v15 = vrot.slane %v2265_v18, 1 }
 0x213   : > { %v1138_v34 = vsel %vm4030_vm3, %v1074_v29, %v1137_v55  ;;  %v1200_v55 = vunpack.c.l.b16 %v4606_v17  ;;  %v2254_v29 = vrot.slane %v2252_v11, 2  ;;  %v2360_v11 = vunpack.c.l.b16 %v1940_v61 }
 0x214   : > { %1139 = vst [vmem:[#allocation2 + $0x44] sm:$0x1] %v1138_v34  ;;  %v1342_v6 = vrot.slane %v1332_v30, 1  ;;  %v1212_v30 = vpack.c.b16 %v1195_v24, %v1194_v7  ;;  %v939_v34 = vsel %vm4030_vm3, 0, %v938_v25  ;;  %v1159_v7 = vld [vmem:[#allocation2 + $0x4c] sm:$0x1] }
 0x215   : > { %1360 = vrot.lane.b32.xlu0 %v1345_v9, %s3917_s16  ;;  %v2048_v9 = vrot.slane %v2046_v47, 1  ;;  %940 = vst [vmem:[#allocation2 + $0x48] sm:$0x1] %v939_v34  ;;  %v2255_v50 = vor.u32 %v2254_v29, %v2251_v23  ;;  %v1209_v29 = vunpack.c.l.b16 %v1159_v7 }
 0x216   : > { %v1845_v49 = vpop.permute.xlu1 %1844  ;;  %1354 = vrot.lane.b32.xlu2 %v1342_v6, %s3917_s16  ;;  %v1215_v6 = vpack.c.b16 %v1201_v4, %v1200_v55  ;;  %v1237_v22 = vshll.u32 %v1212_v30, 16 }
 0x217   : > { %1883 = vst.msk [vmem:[#allocation4 + $0x3c] sm:$0x1] %vm1772_vm13, %v1845_v49  ;;  %v1164_v54 = vld [vmem:[#allocation2 + $0x20] sm:$0xe]  ;;  %v4619_v49 = vld [vmem:[#allocation2 + $0x38] sm:$0xf]  ;;  %v2049_v56 = vor.u32 %v2048_v9, %v2044_v14 }
 0x218   : > { %v1324_v59 = vunpack.c.l.b16 %v1164_v54  ;;  %v1941_v54 = vld [vmem:[#allocation4 + $0x28] sm:$0xc]  ;;  %v1258_v24 = vshll.u32 %v1215_v6, 16  ;;  %v1204_v1 = vunpack.c.l.b16 %v4619_v49  ;;  %v1239_v4 = vrot.slane %v1237_v22, 1  ;;  %v1906_v22 = vld [vmem:[#allocation4 + $0x34] sm:$0x1] }
 0x219   : > { %v2361_v57 = vunpack.c.l.b16 %v1941_v54  ;;  %v4629_v21 = vld [vmem:[#allocation2 + $0x20] sm:$0xf] }
 0x21a   : > { %v1334_v12 = vpack.c.b16 %v1199_v26, %v1324_v59  ;;  %v2271_v59 = vor.u32 %v2270_v39, %v2267_v15  ;;  %v1260_v40 = vrot.slane %v1258_v24, 1  ;;  %v1217_v63 = vpack.c.b16 %v1205_v45, %v1204_v1  ;;  %v4639_v15 = vld [vmem:[#allocation2 + $0x40] sm:$0xf]  ;;  %v4647_v1 = vld [vmem:[#allocation4 + $0x30] sm:$0xf] }
 0x21b   : > { %v2373_v60 = vpack.c.b16 %v2205_v44, %v2361_v57  ;;  %v2372_v44 = vpack.c.b16 %v2204_v43, %v2360_v11  ;;  %v1158_v25 = vld [vmem:[#allocation2 + $0x44] sm:$0x1]  ;;  %v1206_v43 = vunpack.c.l.b16 %v4639_v15  ;;  %v1168_v24 = vld [vmem:[#allocation2 + $0x40] sm:$0xe]  ;;  %v3612_v57 = vld [vmem:[#allocation7 + $0x10] sm:$0xff] }
 0x21c   : > { %v1344_v8 = vrot.slane %v1334_v12, 1  ;;  %v1235_v12 = vshrl.u32 %v1212_v30, 16  ;;  %v1272_v19 = vshll.u32 %v1217_v63, 16  ;;  %v1207_v14 = vunpack.c.l.b16 %v1158_v25  ;;  %1515 = vmatpush.bf16.msrb.mxu1 %v3612_v57 }
 0x21d   : > { %1364 = vrot.lane.b32.xlu0 %v1347_v5, %s3917_s16  ;;  %v1256_v5 = vshrl.u32 %v1215_v6, 16  ;;  %v2385_v47 = vrot.slane %v2373_v60, 2  ;;  %v2384_v34 = vrot.slane %v2372_v44, 2  ;;  %v1918_v44 = vld [vmem:[#allocation4 + $0x30] sm:$0xe] }
 0x21e   : > { %v1066_v20 = vpop.permute.xlu1 %1065  ;;  %1358 = vrot.lane.b32.xlu1 %v1344_v8, %s3917_s16  ;;  %2098 = vrot.lane.b32.xlu2 %v2035_v10, %s3918_s17  ;;  %v1240_v10 = vor.u32 %v1239_v4, %v1235_v12  ;;  %v1198_v8 = vunpack.c.l.b16 %v4629_v21  ;;  %v1274_v23 = vrot.slane %v1272_v19, 1  ;;  %v1820_v4 = vrot.slane %v4408_v13, 7 }
 0x21f   : > { %v1126_v51 = vsel %vm4030_vm3, %v1066_v20, %v1125_v52  ;;  %v1166_v52 = vld [vmem:[#allocation2 + $0x30] sm:$0xe]  ;;  %v1261_v18 = vor.u32 %v1260_v40, %v1256_v5  ;;  %v1169_v20 = vld [vmem:[#allocation2 + $0x48] sm:$0xe]  ;;  %v1985_v40 = vunpack.c.l.b16 %v1906_v22  ;;  %v1328_v12 = vunpack.c.l.b16 %v1168_v24  ;;  %v4672_v24 = vld [vmem:[#allocation4 + $0x40] sm:$0xf] }
 0x220   : > { %1127 = vst [vmem:[#allocation2 + $0x34] sm:$0x1] %v1126_v51  ;;  %v1326_v33 = vunpack.c.l.b16 %v1166_v52  ;;  %v1214_v45 = vpack.c.b16 %v1199_v26, %v1198_v8  ;;  %v1270_v51 = vshrl.u32 %v1217_v63, 16  ;;  %v1329_v30 = vunpack.c.l.b16 %v1169_v20  ;;  %v3611_v63 = vld [vmem:[#allocation7 + $0x8] sm:$0xff]  ;;  %v4655_v5 = vld [vmem:[#allocation2 + $0x48] sm:$0xf] }
 0x221   : > { %v1218_v26 = vpack.c.b16 %v1207_v14, %v1206_v43  ;;  %v1338_v11 = vpack.c.b16 %v1207_v14, %v1328_v12  ;;  %v1208_v8 = vunpack.c.l.b16 %v4655_v5  ;;  %1516 = vmatpush.bf16.msrb.mxu1 %v3611_v63  ;;  %v1919_v20 = vld [vmem:[#allocation4 + $0x38] sm:$0xe]  ;;  %v1907_v14 = vld [vmem:[#allocation4 + $0x3c] sm:$0x1]  ;;  %vm1497_vm3 = vcmask 392192  }
 0x222   : > { %v1251_v9 = vshll.u32 %v1214_v45, 16  ;;  %v1275_v39 = vor.u32 %v1274_v23, %v1270_v51  ;;  %v1339_v32 = vpack.c.b16 %v1209_v29, %v1329_v30  ;;  %v2134_v51 = vunpack.c.l.b16 %v1918_v44  ;;  %v4670_v22 = vld [vmem:[#allocation4 + $0x38] sm:$0xf] }
 0x223   : > { %v1279_v60 = vshll.u32 %v1218_v26, 16  ;;  %v1348_v23 = vrot.slane %v1338_v11, 1  ;;  %v1219_v30 = vpack.c.b16 %v1209_v29, %v1208_v8 }
 0x224   : > { %v1253_v46 = vrot.slane %v1251_v9, 1  ;;  %v1349_v54 = vrot.slane %v1339_v32, 1 }
 0x225   : > { %2326 = vrot.lane.b32.xlu0 %v2255_v50, %s3919_s18  ;;  %v1249_v50 = vshrl.u32 %v1214_v45, 16  ;;  %v1281_v13 = vrot.slane %v1279_v60, 1  ;;  %v1821_v45 = vrot.slane %v1820_v4, 4  ;;  %v1284_v63 = vshrl.u32 %v1219_v30, 16 }
 0x226   : > { %2102 = vrot.lane.b32.xlu1 %v2049_v56, %s3918_s17  ;;  %2330 = vrot.lane.b32.xlu2 %v2271_v59, %s3919_s18  ;;  %v4645_v56 = vld [vmem:[#allocation2 + $0x30] sm:$0xf] }
 0x227   : > { %v1156_v35 = vld [vmem:[#allocation2 + $0x34] sm:$0x1]  ;;  %v1254_v59 = vor.u32 %v1253_v46, %v1249_v50  ;;  %v1202_v61 = vunpack.c.l.b16 %v4645_v56  ;;  %v1286_v46 = vshll.u32 %v1219_v30, 16 }
 0x228   : > { %v1203_v16 = vunpack.c.l.b16 %v1156_v35  ;;  %v1984_v35 = vunpack.c.l.b16 %v4647_v1 }
 0x229   : > { %v1288_v12 = vrot.slane %v1286_v46, 1 }
 0x22a   : > { %v1336_v55 = vpack.c.b16 %v1203_v16, %v1326_v33  ;;  %v2002_v52 = vpack.c.b16 %v1985_v40, %v1984_v35  ;;  %v1277_v33 = vshrl.u32 %v1218_v26, 16  ;;  %v4668_v26 = vld [vmem:[#allocation4 + $0x44] sm:$0x1]  ;;  %v1986_v35 = vunpack.c.l.b16 %v4670_v22 }
 0x22c   : > { %v1346_v6 = vrot.slane %v1336_v55, 1  ;;  %v1282_v55 = vor.u32 %v1281_v13, %v1277_v33  ;;  %v2053_v25 = vshll.u32 %v2002_v52, 16  ;;  %v2051_v50 = vshrl.u32 %v2002_v52, 16  ;;  %v1930_v13 = vld [vmem:[#allocation4 + $0x34] sm:$0x3] }
 0x22d   : > { %1294 = vrot.lane.b32.xlu0 %v1240_v10, %s3915_s8  ;;  %v1216_v10 = vpack.c.b16 %v1203_v16, %v1202_v61  ;;  %v1989_v61 = vunpack.c.l.b16 %v4668_v26 }
 0x22e   : > { %2402 = vrot.lane.b32.xlu1 %v2385_v47, %s3917_s16  ;;  %1300 = vrot.lane.b32.xlu2 %v1261_v18, %s3915_s8  ;;  %v4658_v47 = vld [vmem:[#allocation4 + $0x3c] sm:$0x3]  ;;  %v3610_v18 = vld [vmem:[#allocation7] sm:$0xff] }
 0x22f   : > { %v1265_v7 = vshll.u32 %v1216_v10, 16  ;;  %v2207_v16 = vunpack.c.l.b16 %v4658_v47  ;;  %1517 = vmatpush.bf16.msrb.mxu1 %v3610_v18  ;;  %v1263_v43 = vshrl.u32 %v1216_v10, 16  ;;  %v1988_v10 = vunpack.c.l.b16 %v4672_v24 }
 0x231   : > { %v1267_v9 = vrot.slane %v1265_v7, 1  ;;  %v2004_v33 = vpack.c.b16 %v1989_v61, %v1988_v10  ;;  %v2206_v7 = vunpack.c.l.b16 %v1930_v13 }
 0x233   : > { %v1268_v29 = vor.u32 %v1267_v9, %v1263_v43  ;;  %v2067_v9 = vshll.u32 %v2004_v33, 16 }
 0x235   : > { %2400 = vrot.lane.b32.xlu0 %v2384_v34, %s3917_s16  ;;  %v2135_v34 = vunpack.c.l.b16 %v1919_v20  ;;  %v2069_v43 = vrot.slane %v2067_v9, 1 }
 0x236   : > { %1304 = vrot.lane.b32.xlu2 %v1275_v39, %s3915_s8  ;;  %1362 = vrot.lane.b32.xlu1 %v1346_v6, %s3917_s16  ;;  %v2146_v39 = vpack.c.b16 %v1985_v40, %v2134_v51  ;;  %v2055_v6 = vrot.slane %v2053_v25, 1 }
 0x237   : > { %v2219_v32 = vpack.c.b16 %v2207_v16, %v2135_v34 }
 0x239   : > { %v2281_v60 = vshrl.u32 %v2219_v32, 16  ;;  %v2284_v40 = vshll.u32 %v2219_v32, 16 }
 0x23b   : > { %v2283_v8 = vrot.slane %v2281_v60, 1  ;;  %v2286_v18 = vrot.slane %v2284_v40, 2 }
 0x23d   : > { %1298 = vrot.lane.b32.xlu0 %v1254_v59, %s3915_s8  ;;  %v1987_v59 = vunpack.c.l.b16 %v1907_v14  ;;  %v2287_v30 = vor.u32 %v2286_v18, %v2283_v8 }
 0x23e   : > { %1850 = vrot.lane.b32.xlu2 %v1820_v4, %s3920_s21  ;;  %1368 = vrot.lane.b32.xlu1 %v1349_v54, %s3917_s16  ;;  %v2158_v54 = vrot.slane %v2146_v39, 1  ;;  %v2056_v4 = vor.u32 %v2055_v6, %v2051_v50  ;;  %v2218_v6 = vpack.c.b16 %v2206_v7, %v2134_v51  ;;  %v1944_v51 = vld [vmem:[#allocation4 + $0x40] sm:$0xc] }
 0x23f   : > { %v4660_v19 = vpop.permute.xlu2 %2172  ;;  %v2003_v11 = vpack.c.b16 %v1987_v59, %v1986_v35  ;;  %v2147_v52 = vpack.c.b16 %v1987_v59, %v2135_v34  ;;  %v2065_v59 = vshrl.u32 %v2004_v33, 16  ;;  %v2364_v8 = vunpack.c.l.b16 %v1944_v51  ;;  %v3626_v51 = vld [vmem:[#allocation7 + $0x40] sm:$0xff] }
 0x240   : > { %v2276_v60 = vshll.u32 %v2218_v6, 16  ;;  %1721 = vmatpush.bf16.msrb.mxu3 %v3626_v51 }
 0x241   : > { %v2159_v25 = vrot.slane %v2147_v52, 1  ;;  %v2058_v50 = vshrl.u32 %v2003_v11, 16  ;;  %v2070_v13 = vor.u32 %v2069_v43, %v2065_v59 }
 0x242   : > { %v2278_v33 = vrot.slane %v2276_v60, 2 }
 0x245   : > { %1852 = vrot.lane.b32.xlu0 %v1821_v45, %s3920_s21  ;;  %v1289_v45 = vor.u32 %v1288_v12, %v1284_v63  ;;  %v1920_v12 = vld [vmem:[#allocation4 + $0x40] sm:$0xe] }
 0x246   : > { %1366 = vrot.lane.b32.xlu2 %v1348_v23, %s3917_s16  ;;  %1306 = vrot.lane.b32.xlu1 %v1282_v55, %s3915_s8  ;;  %v2060_v23 = vshll.u32 %v2003_v11, 16  ;;  %v1942_v55 = vld [vmem:[#allocation4 + $0x30] sm:$0xc]  ;;  %v2136_v52 = vunpack.c.l.b16 %v1920_v12  ;;  %v3619_v12 = vld [vmem:[#allocation7 + $0x28] sm:$0xff] }
 0x247   : > { %v4674_v57 = vpop.permute.xlu2 %2324  ;;  %v2362_v34 = vunpack.c.l.b16 %v1942_v55  ;;  %v1943_v55 = vld [vmem:[#allocation4 + $0x38] sm:$0xc]  ;;  %1618 = vmatpush.bf16.msrb.mxu2 %v3619_v12 }
 0x248   : > { %v2062_v14 = vrot.slane %v2060_v23, 1 }
 0x249   : > { %v2374_v32 = vpack.c.b16 %v2206_v7, %v2362_v34 }
 0x24a   : > { %v2063_v63 = vor.u32 %v2062_v14, %v2058_v50 }
 0x24b   : > { %v2386_v10 = vrot.slane %v2374_v32, 2 }
 0x24d   : > { %1302 = vrot.lane.b32.xlu0 %v1268_v29, %s3915_s8  ;;  %v1932_v29 = vld [vmem:[#allocation4 + $0x44] sm:$0x3] }
 0x24e   : > { %2104 = vrot.lane.b32.xlu2 %v2056_v4, %s3918_s17  ;;  %2176 = vrot.lane.b32.xlu1 %v2158_v54, %s3915_s8  ;;  %v2273_v4 = vshrl.u32 %v2218_v6, 16  ;;  %v2363_v6 = vunpack.c.l.b16 %v1943_v55 }
 0x24f   : > { %v1293_v39 = vpop.permute.xlu2 %1292 }
 0x250   : > { %v1375_v46 = vsel %vm827_vm9, %v4480_v37, %v1293_v39  ;;  %v2208_v37 = vunpack.c.l.b16 %v1932_v29  ;;  %v2275_v18 = vrot.slane %v2273_v4, 1 }
 0x251   : > { %v4682_v44 = vpop.permute.xlu1 %2396 }
 0x252   : > { %v4684_v20 = vpop.permute.xlu0 %2168  ;;  %v2376_v7 = vpack.c.b16 %v2208_v37, %v2364_v8  ;;  %v2220_v14 = vpack.c.b16 %v2208_v37, %v2136_v52  ;;  %v3624_v8 = vld [vmem:[#allocation7 + $0x30] sm:$0xff] }
 0x254   : > { %v2388_v39 = vrot.slane %v2376_v7, 2  ;;  %v2289_v50 = vshrl.u32 %v2220_v14, 16  ;;  %v2292_v29 = vshll.u32 %v2220_v14, 16 }
 0x255   : > { %1308 = vrot.lane.b32.xlu0 %v1289_v45, %s3915_s8  ;;  %v2148_v45 = vpack.c.b16 %v1989_v61, %v2136_v52  ;;  %v2375_v61 = vpack.c.b16 %v2207_v16, %v2363_v6  ;;  %v3617_v52 = vld [vmem:[#allocation7 + $0x18] sm:$0xff] }
 0x256   : > { %2178 = vrot.lane.b32.xlu2 %v2159_v25, %s3915_s8  ;;  %2334 = vrot.lane.b32.xlu1 %v2287_v30, %s3919_s18  ;;  %v2279_v30 = vor.u32 %v2278_v33, %v2275_v18  ;;  %v2291_v47 = vrot.slane %v2289_v50, 1  ;;  %v2294_v16 = vrot.slane %v2292_v29, 2 }
 0x257   : > { %v2160_v9 = vrot.slane %v2148_v45, 1 }
 0x259   : > { %v1353_v26 = vpop.permute.xlu1 %1352 }
 0x25a   : > { %v1404_v54 = vsel %vm860_vm10, %v1375_v46, %v1353_v26  ;;  %v2387_v26 = vrot.slane %v2375_v61, 2 }
 0x25b   : > { %1432 = vst.msk [vmem:[#allocation3 + $0x4] sm:$0xf] %vm1430_vm15, %v1404_v54 }
 0x25c   : > { %v2101_v40 = vpop.permute.xlu0 %2100 }
 0x25d   : > { %v2431_v35 = vsel %vm2416_vm0, %v4473_v27, %v2101_v40  ;;  %2106 = vrot.lane.b32.xlu0 %v2063_v63, %s3918_s17 }
 0x25e   : > { %v4698_v11 = vsel %vm827_vm9, %v2431_v35, %v4660_v19  ;;  %2404 = vrot.lane.b32.xlu2 %v2386_v10, %s3917_s16  ;;  %2108 = vrot.lane.b32.xlu1 %v2070_v13, %s3918_s17 }
 0x261   : > { %v1357_v27 = vpop.permute.xlu1 %1356 }
 0x262   : > { %v3606_v23 = vld [vmem:[#allocation3] sm:$0xff] }
 0x263   : > { %3366 = vmatmul.msk.bf16.vlgmr.msrb.gmra.mxu1 %vm1497_vm3, %v3606_v23 }
 0x264   : > { %v1297_v25 = vpop.permute.xlu0 %1296 }
 0x265   : > { %v1381_v19 = vsel %vm827_vm9, %v4485_v42, %v1297_v25  ;;  %2332 = vrot.lane.b32.xlu0 %v2279_v30, %s3919_s18  ;;  %v2399_v42 = vpop.permute.xlu2 %2398 }
 0x266   : > { %v1410_v34 = vsel %vm860_vm10, %v1381_v19, %v1357_v27  ;;  %2180 = vrot.lane.b32.xlu2 %v2160_v9, %s3915_s8  ;;  %2408 = vrot.lane.b32.xlu1 %v2388_v39, %s3917_s16 }
 0x267   : > { %1434 = vst.msk [vmem:[#allocation3 + $0xc] sm:$0xf] %vm1430_vm15, %v1410_v34 }
 0x269   : > { %v2097_v32 = vpop.permute.xlu1 %2096 }
 0x26a   : > { %v2425_v43 = vsel %vm2416_vm0, %v4487_v48, %v2097_v32  ;;  %v2295_v48 = vor.u32 %v2294_v16, %v2291_v47 }
 0x26b   : > { %v2458_v46 = vsel %vm827_vm9, %v2425_v43, %v4684_v20 }
 0x26c   : > { %v2483_v54 = vsel %vm2477_vm1, %v2458_v46, %v4674_v57  ;;  %v3618_v57 = vld [vmem:[#allocation7 + $0x20] sm:$0xff] }
 0x26d   : > { %v2509_v59 = vsel %vm860_vm10, %v2483_v54, %v4682_v44  ;;  %2406 = vrot.lane.b32.xlu0 %v2387_v26, %s3917_s16  ;;  %v3625_v44 = vld [vmem:[#allocation7 + $0x38] sm:$0xff]  ;;  %1619 = vmatpush.bf16.msrb.mxu2 %v3618_v57  ;;  %v3638_v57 = vld [vmem:[%s5083_s5 + $0x1c] sm:$0xff] }
 0x26e   : > { %2541 = vst.msk [vmem:[#allocation5 + $0x8] sm:$0xf] %vm2538_vm2, %v2509_v59  ;;  %1722 = vmatpush.bf16.msrb.mxu3 %v3625_v44 }
 0x270   : > { %v1355_v4 = vpop.permute.xlu2 %1354 }
 0x271   : > { %v2329_v60 = vpop.permute.xlu1 %2328  ;;  %1620 = vmatpush.bf16.msrb.mxu2 %v3617_v52 }
 0x272   : > { %1723 = vmatpush.bf16.msrb.mxu3 %v3624_v8 }
 0x275   : > { %2336 = vrot.lane.b32.xlu0 %v2295_v48, %s3919_s18  ;;  %v3466_v48 = vld [vmem:[%s5083_s5 + $0x24] sm:$0xf] }
 0x278   : > { %v2099_v20 = vpop.permute.xlu2 %2098 }
 0x279   : > { %v2171_v10 = vpop.permute.xlu1 %2170 }
 0x27f   : > { %v2175_v40 = vpop.permute.xlu0 %2174 }
 0x280   : > { %v2331_v63 = vpop.permute.xlu2 %2330 }
 0x287   : > { %v1361_v35 = vpop.permute.xlu0 %1360 }
 0x288   : > { %v1301_v13 = vpop.permute.xlu2 %1300 }
 0x289   : > { %v1387_v37 = vsel %vm827_vm9, %v4606_v17, %v1301_v13  ;;  %v2428_v17 = vsel %vm2416_vm0, %v4564_v62, %v2099_v20  ;;  %v2701_v20 = vunpack.c.l.b16 %v3466_v48 }
 0x28a   : > { %v1416_v18 = vsel %vm860_vm10, %v1387_v37, %v1361_v35  ;;  %v2460_v55 = vsel %vm827_vm9, %v2428_v17, %v2171_v10 }
 0x28b   : > { %1436 = vst.msk [vmem:[#allocation3 + $0x14] sm:$0xf] %vm1430_vm15, %v1416_v18 }
 0x28f   : > { %v1365_v33 = vpop.permute.xlu0 %1364 }
 0x290   : > { %v1359_v45 = vpop.permute.xlu1 %1358  ;;  %v1305_v7 = vpop.permute.xlu2 %1304 }
 0x291   : > { %v1393_v27 = vsel %vm827_vm9, %v4619_v49, %v1305_v7 }
 0x292   : > { %v1422_v23 = vsel %vm860_vm10, %v1393_v27, %v1365_v33 }
 0x293   : > { %1438 = vst.msk [vmem:[#allocation3 + $0x1c] sm:$0xf] %vm1430_vm15, %v1422_v23 }
 0x297   : > { %v2327_v25 = vpop.permute.xlu0 %2326 }
 0x298   : > { %v2485_v30 = vsel %vm2477_vm1, %v2460_v55, %v2327_v25  ;;  %v2103_v19 = vpop.permute.xlu1 %2102  ;;  %v1851_v9 = vpop.permute.xlu2 %1850 }
 0x299   : > { %v2512_v39 = vsel %vm860_vm10, %v2485_v30, %v2399_v42  ;;  %1886 = vst.msk [vmem:[#allocation4 + $0x48] sm:$0xe] %vm1871_vm8, %v1851_v9  ;;  %v2434_v49 = vsel %vm2416_vm0, %v4581_v41, %v2103_v19  ;;  %v2487_v41 = vsel %vm2477_vm1, %v4698_v11, %v2329_v60  ;;  %v2704_v60 = vpack.c.b16 %v2701_v20, %v2701_v20 }
 0x29a   : > { %2542 = vst.msk [vmem:[#allocation5 + $0xc] sm:$0xf] %vm2538_vm2, %v2512_v39  ;;  %v2464_v34 = vsel %vm827_vm9, %v2434_v49, %v2175_v40  ;;  %v4766_v40 = vld [vmem:[#allocation4 + $0x50] sm:$0xf] }
 0x29b   : > { %v2489_v14 = vsel %vm2477_vm1, %v2464_v34, %v2331_v63  ;;  %v4768_v63 = vld [vmem:[#allocation4 + $0x54] sm:$0x1]  ;;  %v1992_v52 = vunpack.c.l.b16 %v4766_v40  ;;  %v1922_v39 = vld [vmem:[#allocation4 + $0x50] sm:$0xe] }
 0x29c   : > { %v1993_v8 = vunpack.c.l.b16 %v4768_v63 }
 0x29e   : > { %v2006_v7 = vpack.c.b16 %v1993_v8, %v1992_v52 }
 0x29f   : > { %v1295_v6 = vpop.permute.xlu0 %1294 }
 0x2a0   : > { %v1378_v62 = vsel %vm827_vm9, %v4604_v0, %v1295_v6  ;;  %v2403_v61 = vpop.permute.xlu1 %2402  ;;  %v1367_v44 = vpop.permute.xlu2 %1366  ;;  %v1921_v33 = vld [vmem:[#allocation4 + $0x48] sm:$0xe]  ;;  %v2081_v34 = vshll.u32 %v2006_v7, 16  ;;  %v3499_v6 = vld [vmem:[%s5083_s5 + $0x38] sm:$0xf] }
 0x2a1   : > { %v1407_v32 = vsel %vm860_vm10, %v1378_v62, %v1355_v4  ;;  %v2518_v42 = vsel %vm860_vm10, %v2489_v14, %v2403_v61  ;;  %v3628_v43 = vld [vmem:[#allocation5 + $0x8] sm:$0xff]  ;;  %v2137_v17 = vunpack.c.l.b16 %v1921_v33  ;;  %v4802_v14 = vld [vmem:[#allocation4 + $0x58] sm:$0xf] }
 0x2a2   : > { %1433 = vst.msk [vmem:[#allocation3 + $0x8] sm:$0xf] %vm1430_vm15, %v1407_v32  ;;  %3459 = vmatmul.msk.bf16.gmra.mxu0 %vm2603_vm7, %v3628_v43  ;;  %v2138_v32 = vunpack.c.l.b16 %v1922_v39  ;;  %v2803_v43 = vunpack.c.l.b16 %v3499_v6 }
 0x2a3   : > { %2544 = vst.msk [vmem:[#allocation5 + $0x14] sm:$0xf] %vm2538_vm2, %v2518_v42  ;;  %v4804_v42 = vld [vmem:[#allocation4 + $0x5c] sm:$0x1] }
 0x2a4   : > { %v1995_v63 = vunpack.c.l.b16 %v4804_v42 }
 0x2a7   : > { %v2401_v46 = vpop.permute.xlu0 %2400 }
 0x2a8   : > { %v2515_v0 = vsel %vm860_vm10, %v2487_v41, %v2401_v46  ;;  %v1363_v26 = vpop.permute.xlu1 %1362  ;;  %v3532_v41 = vld [vmem:[%s5083_s5 + $0x4c] sm:$0xf]  ;;  %v4809_v46 = vpop.permute.xlu2 %2104 }
 0x2a9   : > { %2543 = vst.msk [vmem:[#allocation5 + $0x10] sm:$0xf] %vm2538_vm2, %v2515_v0  ;;  %v3607_v50 = vld [vmem:[#allocation3 + $0x8] sm:$0xff] }
 0x2aa   : > { %v3613_v29 = vld [vmem:[#allocation3 + $0x4] sm:$0xff]  ;;  %3367 = vmatmul.msk.bf16.gmra.mxu1 %vm1497_vm3, %v3607_v50 }
 0x2ab   : > { %v3620_v54 = vld [vmem:[#allocation3 + $0x8] sm:$0xff]  ;;  %3398 = vmatmul.msk.bf16.vlgmr.msrb.gmra.mxu2 %vm1497_vm3, %v3613_v29  ;;  %v2079_v29 = vshrl.u32 %v2006_v7, 16  ;;  %v3644_v7 = vld [vmem:[%s5083_s5 + $0x30] sm:$0xff] }
 0x2ac   : > { %3430 = vmatmul.msk.bf16.vlgmr.msrb.gmra.mxu3 %vm1497_vm3, %v3620_v54 }
 0x2af   : > { %v1299_v59 = vpop.permute.xlu0 %1298 }
 0x2b0   : > { %v1384_v47 = vsel %vm827_vm9, %v4629_v21, %v1299_v59  ;;  %v4758_v11 = vpop.permute.xlu1 %1368  ;;  %v3629_v16 = vld [vmem:[#allocation5 + $0x10] sm:$0xff]  ;;  %v2720_v21 = vsel %vm2616_vm4, %v2704_v60, 0  ;;  %v2083_v59 = vrot.slane %v2081_v34, 1 }
 0x2b1   : > { %v1413_v4 = vsel %vm860_vm10, %v1384_v47, %v1359_v45  ;;  %2727 = vmatpush.bf16.msra.mxu1 %v2720_v21  ;;  %v4787_v45 = vld [vmem:[#allocation4 + $0x48] sm:$0xf]  ;;  %v1934_v47 = vld [vmem:[#allocation4 + $0x54] sm:$0x3]  ;;  %v1946_v60 = vld [vmem:[#allocation4 + $0x50] sm:$0xc] }
 0x2b2   : > { %1435 = vst.msk [vmem:[#allocation3 + $0x10] sm:$0xf] %vm1430_vm15, %v1413_v4  ;;  %3460 = vmatmul.msk.bf16.gmra.mxu0 %vm2603_vm7, %v3629_v16  ;;  %v1990_v9 = vunpack.c.l.b16 %v4787_v45  ;;  %v1994_v16 = vunpack.c.l.b16 %v4802_v14  ;;  %v2806_v4 = vpack.c.b16 %v2803_v43, %v2803_v43  ;;  %v4814_v21 = vld [vmem:[#allocation4 + $0x58] sm:$0xe]  ;;  %v2210_v33 = vunpack.c.l.b16 %v1934_v47 }
 0x2b5   : > { %2728 = vmatpush.bf16.msra.mxu1 %v3638_v57 }
 0x2b7   : > { %v1853_v12 = vpop.permute.xlu0 %1852 }
 0x2b8   : > { %1887 = vst.msk [vmem:[#allocation4 + $0x4c] sm:$0x1] %vm1772_vm13, %v1853_v12  ;;  %v1307_v51 = vpop.permute.xlu1 %1306  ;;  %v2905_v12 = vunpack.c.l.b16 %v3532_v41  ;;  %v3650_v41 = vld [vmem:[%s5083_s5 + $0x44] sm:$0xff] }
 0x2b9   : > { %v1396_v35 = vsel %vm827_vm9, %v4639_v15, %v1307_v51  ;;  %v3608_v10 = vld [vmem:[#allocation3 + $0x10] sm:$0xff]  ;;  %v3637_v15 = vld [vmem:[%s5083_s5 + $0x14] sm:$0xff] }
 0x2ba   : > { %v3614_v13 = vld [vmem:[#allocation3 + $0xc] sm:$0xff]  ;;  %v1425_v18 = vsel %vm860_vm10, %v1396_v35, %v1367_v44  ;;  %3368 = vmatmul.msk.bf16.gmra.mxu1 %vm1497_vm3, %v3608_v10  ;;  %v2150_v35 = vpack.c.b16 %v1993_v8, %v2138_v32  ;;  %v4816_v10 = vld [vmem:[#allocation4 + $0x5c] sm:$0x3] }
 0x2bb   : > { %v3621_v37 = vld [vmem:[#allocation3 + $0x10] sm:$0xff]  ;;  %1439 = vst.msk [vmem:[#allocation3 + $0x20] sm:$0xf] %vm1430_vm15, %v1425_v18  ;;  %3399 = vmatmul.msk.bf16.gmra.mxu2 %vm1497_vm3, %v3614_v13  ;;  %2729 = vmatpush.bf16.msra.mxu1 %v3637_v15  ;;  %v2822_v13 = vsel %vm2616_vm4, %v2806_v4, 0  ;;  %v2908_v15 = vpack.c.b16 %v2905_v12, %v2905_v12  ;;  %v2211_v34 = vunpack.c.l.b16 %v4816_v10 }
 0x2bc   : > { %3431 = vmatmul.msk.bf16.gmra.mxu3 %vm1497_vm3, %v3621_v37  ;;  %v1945_v18 = vld [vmem:[#allocation4 + $0x48] sm:$0xc]  ;;  %2829 = vmatpush.bf16.msra.mxu2 %v2822_v13 }
 0x2bd   : > { %v2365_v6 = vunpack.c.l.b16 %v1945_v18  ;;  %v2437_v18 = vsel %vm2416_vm0, %v4647_v1, %v4809_v46 }
 0x2bf   : > { %v1303_v27 = vpop.permute.xlu0 %1302  ;;  %v1909_v23 = vld [vmem:[#allocation4 + $0x4c] sm:$0x1] }
 0x2c0   : > { %v4789_v55 = vld [vmem:[#allocation4 + $0x4c] sm:$0x3]  ;;  %v1390_v25 = vsel %vm827_vm9, %v4645_v56, %v1303_v27  ;;  %v1991_v30 = vunpack.c.l.b16 %v1909_v23  ;;  %v2177_v39 = vpop.permute.xlu1 %2176  ;;  %2830 = vmatpush.bf16.msra.mxu2 %v3644_v7 }
 0x2c1   : > { %v2209_v19 = vunpack.c.l.b16 %v4789_v55  ;;  %v1419_v49 = vsel %vm860_vm10, %v1390_v25, %v1363_v26 }
 0x2c2   : > { %1437 = vst.msk [vmem:[#allocation3 + $0x18] sm:$0xf] %vm1430_vm15, %v1419_v49  ;;  %v2149_v62 = vpack.c.b16 %v1991_v30, %v2137_v17  ;;  %v2005_v61 = vpack.c.b16 %v1991_v30, %v1990_v9  ;;  %v2084_v30 = vor.u32 %v2083_v59, %v2079_v29  ;;  %v2366_v9 = vunpack.c.l.b16 %v1946_v60 }
 0x2c3   : > { %v2221_v56 = vpack.c.b16 %v2209_v19, %v2137_v17  ;;  %v2139_v49 = vunpack.c.l.b16 %v4814_v21 }
 0x2c4   : > { %v2161_v0 = vrot.slane %v2149_v62, 1  ;;  %v2074_v54 = vshll.u32 %v2005_v61, 16  ;;  %v2072_v57 = vshrl.u32 %v2005_v61, 16  ;;  %v2222_v62 = vpack.c.b16 %v2210_v33, %v2138_v32  ;;  %v3643_v32 = vld [vmem:[%s5083_s5 + $0x28] sm:$0xff] }
 0x2c5   : > { %v2297_v26 = vshrl.u32 %v2221_v56, 16  ;;  %v2300_v50 = vshll.u32 %v2221_v56, 16  ;;  %v3565_v56 = vld [vmem:[%s5083_s5 + $0x60] sm:$0xf]  ;;  %v2377_v61 = vpack.c.b16 %v2209_v19, %v2365_v6  ;;  %v2378_v43 = vpack.c.b16 %v2210_v33, %v2366_v9  ;;  %2831 = vmatpush.bf16.msra.mxu2 %v3643_v32 }
 0x2c6   : > { %2182 = vrot.lane.b32.xlu0 %v2161_v0, %s3915_s8  ;;  %v2076_v44 = vrot.slane %v2074_v54, 1  ;;  %v3007_v0 = vunpack.c.l.b16 %v3565_v56  ;;  %v2223_v55 = vpack.c.b16 %v2211_v34, %v2139_v49  ;;  %v2305_v54 = vshrl.u32 %v2222_v62, 16 }
 0x2c7   : > { %v2299_v48 = vrot.slane %v2297_v26, 1  ;;  %v2302_v20 = vrot.slane %v2300_v50, 2  ;;  %v1309_v51 = vpop.permute.xlu0 %1308  ;;  %v2179_v26 = vpop.permute.xlu2 %2178  ;;  %v2162_v50 = vrot.slane %v2150_v35, 1  ;;  %v2308_v59 = vshll.u32 %v2222_v62, 16  ;;  %v1947_v35 = vld [vmem:[#allocation4 + $0x58] sm:$0xc] }
 0x2c8   : > { %v1399_v37 = vsel %vm827_vm9, %v4655_v5, %v1309_v51  ;;  %v2077_v8 = vor.u32 %v2076_v44, %v2072_v57  ;;  %v2007_v5 = vpack.c.b16 %v1995_v63, %v1994_v16  ;;  %v3010_v47 = vpack.c.b16 %v3007_v0, %v3007_v0  ;;  %v3656_v44 = vld [vmem:[%s5083_s5 + $0x58] sm:$0xff] }
 0x2c9   : > { %v2303_v52 = vor.u32 %v2302_v20, %v2299_v48  ;;  %v1428_v27 = vsel %vm860_vm10, %v1399_v37, %v4758_v11  ;;  %v3609_v23 = vld [vmem:[#allocation3 + $0x18] sm:$0xff]  ;;  %v2924_v11 = vsel %vm2616_vm4, %v2908_v15, 0  ;;  %v2389_v16 = vrot.slane %v2377_v61, 2  ;;  %v3649_v48 = vld [vmem:[%s5083_s5 + $0x3c] sm:$0xff] }
 0x2ca   : > { %v3615_v17 = vld [vmem:[#allocation3 + $0x14] sm:$0xff]  ;;  %1440 = vst.msk [vmem:[#allocation3 + $0x24] sm:$0xf] %vm1430_vm15, %v1428_v27  ;;  %2110 = vrot.lane.b32.xlu2 %v2077_v8, %s3918_s17  ;;  %3369 = vmatmul.msk.bf16.gmra.mxu1 %vm1497_vm3, %v3609_v23  ;;  %v2088_v29 = vshll.u32 %v2007_v5, 16  ;;  %v2390_v4 = vrot.slane %v2378_v43, 2  ;;  %v3026_v20 = vsel %vm2616_vm4, %v3010_v47, 0  ;;  %v2367_v27 = vunpack.c.l.b16 %v1947_v35 }
 0x2cb   : > { %v3622_v25 = vld [vmem:[#allocation3 + $0x18] sm:$0xff]  ;;  %2338 = vrot.lane.b32.xlu1 %v2303_v52, %s3919_s18  ;;  %3400 = vmatmul.msk.bf16.gmra.mxu2 %vm1497_vm3, %v3615_v17  ;;  %v2086_v60 = vshrl.u32 %v2007_v5, 16  ;;  %v2313_v51 = vshrl.u32 %v2223_v55, 16  ;;  %v2316_v57 = vshll.u32 %v2223_v55, 16  ;;  %v2307_v13 = vrot.slane %v2305_v54, 1  ;;  %v2335_v52 = vpop.permute.xlu1 %2334  ;;  %v3655_v8 = vld [vmem:[%s5083_s5 + $0x50] sm:$0xff] }
 0x2cc   : > { %3432 = vmatmul.msk.bf16.gmra.mxu3 %vm1497_vm3, %v3622_v25  ;;  %v2090_v12 = vrot.slane %v2088_v29, 1  ;;  %3033 = vmatpush.bf16.msra.mxu0 %v3026_v20  ;;  %v2310_v37 = vrot.slane %v2308_v59, 2  ;;  %v2466_v23 = vsel %vm827_vm9, %v2437_v18, %v2177_v39  ;;  %v3633_v5 = vld [vmem:[#allocation5 + $0x4] sm:$0xff]  ;;  %v2379_v39 = vpack.c.b16 %v2211_v34, %v2367_v27  ;;  %v3645_v54 = vld [vmem:[#allocation5 + $0xc] sm:$0xff] }
 0x2cd   : > { %2931 = vmatpush.bf16.msra.mxu3 %v2924_v11  ;;  %v2315_v15 = vrot.slane %v2313_v51, 1  ;;  %v2318_v7 = vrot.slane %v2316_v57, 2  ;;  %v3616_v11 = vld [vmem:[#allocation3 + $0x1c] sm:$0xff]  ;;  %v4917_v35 = vld [vmem:[%s5082_s4] ss:$0 sm:$0xff] }
 0x2ce   : > { %2112 = vrot.lane.b32.xlu0 %v2084_v30, %s3918_s17  ;;  %v2091_v33 = vor.u32 %v2090_v12, %v2086_v60  ;;  %v2311_v25 = vor.u32 %v2310_v37, %v2307_v13  ;;  %v2391_v10 = vrot.slane %v2379_v39, 2  ;;  %v3651_v59 = vld [vmem:[#allocation5 + $0x10] sm:$0xff] }
 0x2cf   : > { %v2107_v19 = vpop.permute.xlu0 %2106  ;;  %v2405_v30 = vpop.permute.xlu2 %2404  ;;  %v2319_v62 = vor.u32 %v2318_v7, %v2315_v15 }
 0x2d0   : > { %3034 = vmatpush.bf16.msra.mxu0 %v3656_v44  ;;  %v2440_v1 = vsel %vm2416_vm0, %v4670_v22, %v2107_v19  ;;  %v2151_v22 = vpack.c.b16 %v1995_v63, %v2139_v49  ;;  %v3634_v19 = vld [vmem:[#allocation5 + $0xc] sm:$0xff] }
 0x2d1   : > { %2932 = vmatpush.bf16.msra.mxu3 %v3650_v41  ;;  %v3623_v6 = vld [vmem:[#allocation3 + $0x20] sm:$0xff]  ;;  %v2468_v56 = vsel %vm827_vm9, %v2440_v1, %v2179_v26 }
 0x2d2   : > { %2410 = vrot.lane.b32.xlu2 %v2389_v16, %s3917_s16  ;;  %v2493_v34 = vsel %vm2477_vm1, %v2468_v56, %v2335_v52  ;;  %v2163_v41 = vrot.slane %v2151_v22, 1  ;;  %v3640_v16 = vld [vmem:[#allocation5 + $0x10] sm:$0xff]  ;;  %v4919_v52 = vpop.f32.mrf.mxu0 }
 0x2d3   : > { %2184 = vrot.lane.b32.xlu1 %v2162_v50, %s3915_s8  ;;  %v2109_v61 = vpop.permute.xlu1 %2108  ;;  %v3750_v50 = vpack.i.bf16 %v4352_v2, %v4313_v28 }
 0x2d4   : > { %3035 = vmatpush.bf16.msra.mxu0 %v3655_v8  ;;  %v2443_v42 = vsel %vm2416_vm0, %v4672_v24, %v2109_v61  ;;  %v3639_v24 = vld [vmem:[#allocation5 + $0x8] sm:$0xff] }
 0x2d5   : > { %2933 = vmatpush.bf16.msra.mxu3 %v3649_v48 }
 0x2d6   : > { %2412 = vrot.lane.b32.xlu0 %v2390_v4, %s3917_s16 }
 0x2d7   : > { %v2333_v17 = vpop.permute.xlu0 %2332  ;;  %v2181_v63 = vpop.permute.xlu2 %2180 }
 0x2d8   : > { %v2491_v9 = vsel %vm2477_vm1, %v2466_v23, %v2333_v17  ;;  %v2470_v21 = vsel %vm827_vm9, %v2443_v42, %v2181_v63 }
 0x2d9   : > { %v2521_v46 = vsel %vm860_vm10, %v2491_v9, %v2405_v30 }
 0x2da   : > { %2545 = vst.msk [vmem:[#allocation5 + $0x18] sm:$0xf] %vm2538_vm2, %v2521_v46  ;;  %3491 = vmatmul.msk.bf16.vlgmr.msra.gmra.mxu1 %vm2603_vm7, %v3633_v5  ;;  %2340 = vrot.lane.b32.xlu2 %v2311_v25, %s3919_s18  ;;  %v4923_v1 = vpop.f32.mrf.mxu0 }
 0x2db   : > { %2114 = vrot.lane.b32.xlu1 %v2091_v33, %s3918_s17  ;;  %3401 = vmatmul.msk.bf16.gmra.mxu2 %vm1497_vm3, %v3616_v11  ;;  %v2409_v0 = vpop.permute.xlu1 %2408 }
 0x2dc   : > { %3433 = vmatmul.msk.bf16.gmra.mxu3 %vm1497_vm3, %v3623_v6 }
 0x2de   : > { %2342 = vrot.lane.b32.xlu0 %v2319_v62, %s3919_s18 }
 0x2df   : > { %v2407_v43 = vpop.permute.xlu0 %2406 }
 0x2e0   : > { %v2524_v32 = vsel %vm860_vm10, %v2493_v34, %v2407_v43  ;;  %v1519_v51 = vpop.f32.mrf.mxu1 }
 0x2e1   : > { %2546 = vst.msk [vmem:[#allocation5 + $0x1c] sm:$0xf] %vm2538_vm2, %v2524_v32  ;;  %v3635_v47 = vld [vmem:[#allocation5 + $0x14] sm:$0xff]  ;;  %v1539_v18 = vadd.f32 %v4917_v35, %v1519_v51 }
 0x2e2   : > { %2186 = vrot.lane.b32.xlu2 %v2163_v41, %s3915_s8  ;;  %s3922_s8 = smov 56   ;;  %v3646_v4 = vld [vmem:[#allocation5 + $0x14] sm:$0xff] }
 0x2e3   : > { %2414 = vrot.lane.b32.xlu1 %v2391_v10, %s3917_s16 }
 0x2e7   : > { %v2337_v49 = vpop.permute.xlu0 %2336 }
 0x2e8   : > { %v2495_v26 = vsel %vm2477_vm1, %v2470_v21, %v2337_v49  ;;  %v3630_v29 = vld [vmem:[#allocation5 + $0x18] sm:$0xff]  ;;  %v1521_v57 = vpop.f32.mrf.mxu1 }
 0x2e9   : > { %v2527_v55 = vsel %vm860_vm10, %v2495_v26, %v2409_v0  ;;  %3461 = vmatmul.msk.bf16.gmra.mxu0 %vm2603_vm7, %v3630_v29  ;;  %v3652_v48 = vld [vmem:[#allocation5 + $0x18] sm:$0xff]  ;;  %v1540_v7 = vadd.f32 %v4917_v35, %v1521_v57 }
 0x2ea   : > { %2547 = vst.msk [vmem:[#allocation5 + $0x20] sm:$0xf] %vm2538_vm2, %v2527_v55  ;;  %3492 = vmatmul.msk.bf16.gmra.mxu1 %vm2603_vm7, %v3634_v19  ;;  %v3641_v60 = vld [vmem:[#allocation5 + $0x18] sm:$0xff] }
 0x2eb   : > { %3751 = vrot.lane.b32.xlu1 %v3750_v50, %s3922_s8  ;;  %3524 = vmatmul.msk.bf16.vlgmr.msra.gmra.mxu2 %vm2603_vm7, %v3639_v24 }
 0x2ec   : > { %3557 = vmatmul.msk.bf16.vlgmr.msra.gmra.mxu3 %vm2603_vm7, %v3645_v54 }
 0x2f1   : > { %v3636_v20 = vld [vmem:[#allocation5 + $0x1c] sm:$0xff] }
 0x2f2   : > { %v3647_v12 = vld [vmem:[#allocation5 + $0x1c] sm:$0xff] }
 0x2f9   : > { %3590 = vmatmul.msk.bf16.vlgmr.msra.gmra.mxu0 %vm2603_vm7, %v3651_v59 }
 0x2fa   : > { %3493 = vmatmul.msk.bf16.gmra.mxu1 %vm2603_vm7, %v3635_v47 }
 0x2fb   : > { %3525 = vmatmul.msk.bf16.gmra.mxu2 %vm2603_vm7, %v3640_v16 }
 0x2fc   : > { %3558 = vmatmul.msk.bf16.gmra.mxu3 %vm2603_vm7, %v3646_v4 }
 0x309   : > { %3591 = vmatmul.msk.bf16.gmra.mxu0 %vm2603_vm7, %v3652_v48 }
 0x30a   : > { %3494 = vmatmul.msk.bf16.gmra.mxu1 %vm2603_vm7, %v3636_v20 }
 0x30b   : > { %3526 = vmatmul.msk.bf16.gmra.mxu2 %vm2603_vm7, %v3641_v60 }
 0x30c   : > { %3559 = vmatmul.msk.bf16.gmra.mxu3 %vm2603_vm7, %v3647_v12 }
 0x31f   : > { %v4933_v32 = vpop.f32.mrf.mxu0 }
 0x324   : > { %v2111_v33 = vpop.permute.xlu2 %2110 }
 0x325   : > { %v2446_v46 = vsel %vm2416_vm0, %v4787_v45, %v2111_v33 }
 0x327   : > { %v1524_v44 = vpop.f32.mrf.mxu1  ;;  %v4944_v60 = vpop.f32.mrf.mxu0 }
 0x328   : > { %v1541_v45 = vadd.f32 %v4917_v35, %v1524_v44 }
 0x32c   : > { %v2411_v39 = vpop.permute.xlu2 %2410 }
 0x32e   : > { %v1622_v13 = vpop.f32.mrf.mxu2 }
 0x32f   : > { %v1725_v37 = vpop.f32.mrf.mxu3  ;;  %v1642_v15 = vadd.f32 %v1622_v13, %v1539_v18  ;;  %v1526_v27 = vpop.f32.mrf.mxu1 }
 0x330   : > { %v1542_v49 = vadd.f32 %v4917_v35, %v1526_v27 }
 0x331   : > { %v1745_v23 = vadd.f32 %v1725_v37, %v1642_v15 }
 0x333   : > { %v1753_v5 = vmax.f32 %v1745_v23, 0.0 }
 0x334   : > { %v2341_v26 = vpop.permute.xlu2 %2340 }
 0x336   : > { %v1624_v8 = vpop.f32.mrf.mxu2 }
 0x337   : > { %v1643_v17 = vadd.f32 %v1624_v8, %v1540_v7  ;;  %v1727_v25 = vpop.f32.mrf.mxu3  ;;  %v1529_v43 = vpop.f32.mrf.mxu1 }
 0x338   : > { %v2183_v30 = vpop.permute.xlu0 %2182  ;;  %v1543_v15 = vadd.f32 %v4917_v35, %v1529_v43 }
 0x339   : > { %v1746_v9 = vadd.f32 %v1727_v25, %v1643_v17  ;;  %v2472_v6 = vsel %vm827_vm9, %v2446_v46, %v2183_v30  ;;  %v4954_v30 = vpop.f32.mrf.mxu0 }
 0x33b   : > { %v1754_v11 = vmax.f32 %v1746_v9, 0.0 }
 0x33c   : > { %v2187_v37 = vpop.permute.xlu2 %2186 }
 0x33d   : > { %v2339_v62 = vpop.permute.xlu1 %2338  ;;  %v3755_v22 = vpack.i.bf16 %v1754_v11, %v1753_v5 }
 0x33e   : > { %v2497_v56 = vsel %vm2477_vm1, %v2472_v6, %v2339_v62  ;;  %v1627_v10 = vpop.f32.mrf.mxu2 }
 0x33f   : > { %v2530_v61 = vsel %vm860_vm10, %v2497_v56, %v2411_v39  ;;  %v1730_v34 = vpop.f32.mrf.mxu3  ;;  %3756 = vrot.lane.b32.xlu2 %v3755_v22, %s3917_s16  ;;  %v1644_v63 = vadd.f32 %v1627_v10, %v1541_v45  ;;  %v1531_v4 = vpop.f32.mrf.mxu1 }
 0x340   : > { %2548 = vst.msk [vmem:[#allocation5 + $0x24] sm:$0xf] %vm2538_vm2, %v2530_v61  ;;  %v2113_v41 = vpop.permute.xlu0 %2112 }
 0x341   : > { %v2449_v42 = vsel %vm2416_vm0, %v4766_v40, %v2113_v41  ;;  %v1747_v19 = vadd.f32 %v1730_v34, %v1644_v63  ;;  %v4959_v43 = vpop.f32.mrf.mxu0 }
 0x343   : > { %v1755_v48 = vmax.f32 %v1747_v19, 0.0 }
 0x345   : > { %v2185_v21 = vpop.permute.xlu1 %2184 }
 0x346   : > { %v2474_v0 = vsel %vm827_vm9, %v2449_v42, %v2185_v21  ;;  %v1629_v50 = vpop.f32.mrf.mxu2 }
 0x347   : > { %v3642_v29 = vld [vmem:[#allocation5 + $0x20] sm:$0xff]  ;;  %v1645_v24 = vadd.f32 %v1629_v50, %v1542_v49  ;;  %v1732_v54 = vpop.f32.mrf.mxu3  ;;  %v2499_v59 = vsel %vm2477_vm1, %v2474_v0, %v2341_v26  ;;  %v1534_v27 = vpop.f32.mrf.mxu1 }
 0x348   : > { %v3653_v55 = vld [vmem:[#allocation5 + $0x20] sm:$0xff]  ;;  %v2413_v47 = vpop.permute.xlu0 %2412  ;;  %3527 = vmatmul.msk.bf16.gmra.mxu2 %vm2603_vm7, %v3642_v29  ;;  %v1545_v41 = vadd.f32 %v4917_v35, %v1534_v27 }
 0x349   : > { %3592 = vmatmul.msk.bf16.gmra.mxu0 %vm2603_vm7, %v3653_v55  ;;  %v1748_v40 = vadd.f32 %v1732_v54, %v1645_v24  ;;  %v2533_v16 = vsel %vm860_vm10, %v2499_v59, %v2413_v47 }
 0x34a   : > { %2549 = vst.msk [vmem:[#allocation5 + $0x28] sm:$0xf] %vm2538_vm2, %v2533_v16 }
 0x34b   : > { %v1756_v20 = vmax.f32 %v1748_v40, 0.0 }
 0x34d   : > { %v2115_v12 = vpop.permute.xlu1 %2114  ;;  %v3760_v51 = vpack.i.bf16 %v1756_v20, %v1755_v48 }
 0x34e   : > { %v1632_v57 = vpop.f32.mrf.mxu2  ;;  %v2452_v13 = vsel %vm2416_vm0, %v4802_v14, %v2115_v12  ;;  %v1544_v14 = vadd.f32 %v4917_v35, %v1531_v4 }
 0x34f   : > { %v1735_v44 = vpop.f32.mrf.mxu3  ;;  %3761 = vrot.lane.b32.xlu0 %v3760_v51, %s3917_s16  ;;  %v2476_v7 = vsel %vm827_vm9, %v2452_v13, %v2187_v37  ;;  %v1646_v8 = vadd.f32 %v1632_v57, %v1543_v15  ;;  %v1536_v56 = vpop.f32.mrf.mxu1 }
 0x350   : > { %v2343_v18 = vpop.permute.xlu0 %2342  ;;  %v1546_v42 = vadd.f32 %v4917_v35, %v1536_v56  ;;  %v4972_v35 = vld [vmem:[%s5084_s6] ss:$0 sm:$0xff] }
 0x351   : > { %v3648_v33 = vld [vmem:[#allocation5 + $0x24] sm:$0xff]  ;;  %v2501_v23 = vsel %vm2477_vm1, %v2476_v7, %v2343_v18  ;;  %v1749_v5 = vadd.f32 %v1735_v44, %v1646_v8  ;;  %v2649_v16 = vadd.f32 %v4972_v35, %v4919_v52  ;;  %v2650_v4 = vadd.f32 %v4972_v35, %v4923_v1 }
 0x352   : > { %3560 = vmatmul.msk.bf16.gmra.mxu3 %vm2603_vm7, %v3648_v33  ;;  %v2651_v1 = vadd.f32 %v4972_v35, %v4933_v32 }
 0x353   : > { %v1757_v62 = vmax.f32 %v1749_v5, 0.0 }
 0x355   : > { %v2415_v17 = vpop.permute.xlu1 %2414 }
 0x356   : > { %v2536_v25 = vsel %vm860_vm10, %v2501_v23, %v2415_v17  ;;  %v1634_v9 = vpop.f32.mrf.mxu2 }
 0x357   : > { %2550 = vst.msk [vmem:[#allocation5 + $0x2c] sm:$0xf] %vm2538_vm2, %v2536_v25  ;;  %v1737_v46 = vpop.f32.mrf.mxu3  ;;  %v1647_v11 = vadd.f32 %v1634_v9, %v1544_v14  ;;  %v2731_v49 = vpop.f32.mrf.mxu1  ;;  %v2652_v9 = vadd.f32 %v4972_v35, %v4944_v60  ;;  %v3805_v60 = vpack.i.bf16 %v4397_v53, %v4340_v58 }
 0x358   : > { %v2751_v48 = vadd.f32 %v2731_v49, %v2649_v16 }
 0x359   : > { %v1750_v6 = vadd.f32 %v1737_v46, %v1647_v11 }
 0x35b   : > { %v1758_v39 = vmax.f32 %v1750_v6, 0.0 }
 0x35d   : > { %v3765_v61 = vpack.i.bf16 %v1758_v39, %v1757_v62 }
 0x35e   : > { %v3654_v22 = vld [vmem:[#allocation5 + $0x28] sm:$0xff]  ;;  %v1637_v10 = vpop.f32.mrf.mxu2 }
 0x35f   : > { %v1740_v34 = vpop.f32.mrf.mxu3  ;;  %3593 = vmatmul.msk.bf16.gmra.mxu0 %vm2603_vm7, %v3654_v22  ;;  %3766 = vrot.lane.b32.xlu1 %v3765_v61, %s3917_s16  ;;  %v1648_v45 = vadd.f32 %v1637_v10, %v1545_v41  ;;  %v2733_v40 = vpop.f32.mrf.mxu1 }
 0x360   : > { %v2752_v51 = vadd.f32 %v2733_v40, %v2650_v4 }
 0x361   : > { %v1751_v0 = vadd.f32 %v1740_v34, %v1648_v45 }
 0x363   : > { %v1759_v55 = vmax.f32 %v1751_v0, 0.0  ;;  %v2653_v0 = vadd.f32 %v4972_v35, %v4954_v30 }
 0x366   : > { %v1639_v63 = vpop.f32.mrf.mxu2  ;;  %v4964_v50 = vpop.f32.mrf.mxu0 }
 0x367   : > { %v1742_v21 = vpop.f32.mrf.mxu3  ;;  %v1649_v26 = vadd.f32 %v1639_v63, %v1546_v42  ;;  %v2736_v37 = vpop.f32.mrf.mxu1 }
 0x368   : > { %v2753_v46 = vadd.f32 %v2736_v37, %v2651_v1 }
 0x369   : > { %v1752_v29 = vadd.f32 %v1742_v21, %v1649_v26 }
 0x36b   : > { %v1760_v19 = vmax.f32 %v1752_v29, 0.0  ;;  %v2654_v29 = vadd.f32 %v4972_v35, %v4959_v43 }
 0x36d   : > { %v3770_v24 = vpack.i.bf16 %v1760_v19, %v1759_v55 }
 0x36e   : > { %v2833_v54 = vpop.f32.mrf.mxu2  ;;  %v4967_v47 = vpop.f32.mrf.mxu0 }
 0x36f   : > { %v2935_v59 = vpop.f32.mrf.mxu3  ;;  %3771 = vrot.lane.b32.xlu2 %v3770_v24, %s3917_s16  ;;  %v2853_v57 = vadd.f32 %v2833_v54, %v2751_v48  ;;  %v2738_v14 = vpop.f32.mrf.mxu1  ;;  %s286_s16 = sand.u32 1, %s3901_s25  }
 0x370   : > { %v2754_v6 = vadd.f32 %v2738_v14, %v2652_v9  ;;  %s3307_s15 = sshll.u32 %s286_s16, 5  ;;  %s3212_s9 = scalar_lea.sflag [#allocation9], %s286_s16 }
 0x371   : > { %v2955_v18 = vadd.f32 %v2935_v59, %v2853_v57 }
 0x376   : > { %v2835_v20 = vpop.f32.mrf.mxu2  ;;  %v3037_v12 = vpop.f32.mrf.mxu0 }
 0x377   : > { %v2937_v44 = vpop.f32.mrf.mxu3  ;;  %v2854_v13 = vadd.f32 %v2835_v20, %v2752_v51  ;;  %v3057_v15 = vadd.f32 %v3037_v12, %v2955_v18  ;;  %v2741_v63 = vpop.f32.mrf.mxu1  ;;  %v3795_v18 = vpack.i.bf16 %v4331_v3, %v4320_v36 }
 0x378   : > { %v2755_v55 = vadd.f32 %v2741_v63, %v2653_v0 }
 0x379   : > { %v2956_v33 = vadd.f32 %v2937_v44, %v2854_v13  ;;  %v3065_v23 = vmax.f32 %v3057_v15, 0.0 }
 0x37e   : > { %v2838_v7 = vpop.f32.mrf.mxu2  ;;  %v3039_v27 = vpop.f32.mrf.mxu0 }
 0x37f   : > { %v3058_v8 = vadd.f32 %v3039_v27, %v2956_v33  ;;  %v2940_v52 = vpop.f32.mrf.mxu3  ;;  %v2855_v62 = vadd.f32 %v2838_v7, %v2753_v46  ;;  %v2743_v26 = vpop.f32.mrf.mxu1  ;;  %v2655_v33 = vadd.f32 %v4972_v35, %v4964_v50  ;;  %v2656_v27 = vadd.f32 %v4972_v35, %v4967_v47 }
 0x380   : > { %v2756_v54 = vadd.f32 %v2743_v26, %v2654_v29  ;;  %v3800_v47 = vpack.i.bf16 %v4379_v31, %v4325_v38 }
 0x381   : > { %v3066_v17 = vmax.f32 %v3058_v8, 0.0  ;;  %v2957_v22 = vadd.f32 %v2940_v52, %v2855_v62 }
 0x383   : > { %v3775_v25 = vpack.i.bf16 %v3066_v17, %v3065_v23 }
 0x385   : > { %3776 = vrot.lane.b32.xlu0 %v3775_v25, %s3920_s21 }
 0x386   : > { %v2840_v5 = vpop.f32.mrf.mxu2  ;;  %v3042_v11 = vpop.f32.mrf.mxu0 }
 0x387   : > { %v2856_v39 = vadd.f32 %v2840_v5, %v2754_v6  ;;  %v2942_v56 = vpop.f32.mrf.mxu3  ;;  %v3059_v10 = vadd.f32 %v3042_v11, %v2957_v22  ;;  %v2746_v13 = vpop.f32.mrf.mxu1 }
 0x388   : > { %v2757_v8 = vadd.f32 %v2746_v13, %v2655_v33 }
 0x389   : > { %v2958_v61 = vadd.f32 %v2942_v56, %v2856_v39  ;;  %v3067_v32 = vmax.f32 %v3059_v10, 0.0 }
 0x38e   : > { %v3044_v34 = vpop.f32.mrf.mxu0  ;;  %v2843_v21 = vpop.f32.mrf.mxu2 }
 0x38f   : > { %v3060_v41 = vadd.f32 %v3044_v34, %v2958_v61  ;;  %v2945_v49 = vpop.f32.mrf.mxu3  ;;  %v2857_v59 = vadd.f32 %v2843_v21, %v2755_v55  ;;  %v2748_v15 = vpop.f32.mrf.mxu1 }
 0x390   : > { %v2758_v17 = vadd.f32 %v2748_v15, %v2656_v27  ;;  %v3752_v61 = vpop.permute.xlu1 %3751 }
 0x391   : > { %v3068_v45 = vmax.f32 %v3060_v41, 0.0  ;;  %v2959_v16 = vadd.f32 %v2945_v49, %v2857_v59 }
 0x393   : > { %v3780_v42 = vpack.i.bf16 %v3068_v45, %v3067_v32  ;;  %v3754_v32 = vunpack.i.h.bf16 %v3752_v61  ;;  %v3753_v45 = vunpack.i.l.bf16 %v3752_v61 }
 0x395   : > { %3781 = vrot.lane.b32.xlu1 %v3780_v42, %s3920_s21 }
 0x396   : > { %v2845_v19 = vpop.f32.mrf.mxu2 }
 0x397   : > { %v2858_v40 = vadd.f32 %v2845_v19, %v2756_v54  ;;  %v2947_v4 = vpop.f32.mrf.mxu3 }
 0x399   : > { %v2960_v48 = vadd.f32 %v2947_v4, %v2858_v40  ;;  %v3757_v35 = vpop.permute.xlu2 %3756 }
 0x39a   : > { %v3759_v22 = vunpack.i.h.bf16 %v3757_v35  ;;  %v3758_v56 = vunpack.i.l.bf16 %v3757_v35 }
 0x39c   : > { %v3170_v42 = vsel %vm860_vm10, %v4352_v2, %v3759_v22 }
 0x39d   : > { %3806 = vrot.lane.b32.xlu1 %v3805_v60, %s3922_s8  ;;  %v3169_v60 = vsel %vm860_vm10, %v4313_v28, %v3758_v56 }
 0x3c1   : > { %v3762_v39 = vpop.permute.xlu0 %3761 }
 0x3c2   : > { %v3763_v28 = vunpack.i.l.bf16 %v3762_v39 }
 0x3c4   : > { %v3171_v4 = vsel %vm860_vm10, %v4320_v36, %v3763_v28 }
 0x3c6   : > { %v3047_v24 = vpop.f32.mrf.mxu0 }
 0x3c7   : > { %v3061_v20 = vadd.f32 %v3047_v24, %v2959_v16  ;;  %v3764_v24 = vunpack.i.h.bf16 %v3762_v39 }
 0x3c9   : > { %v3069_v57 = vmax.f32 %v3061_v20, 0.0  ;;  %v3772_v29 = vpop.permute.xlu2 %3771  ;;  %v3172_v16 = vsel %vm860_vm10, %v4331_v3, %v3764_v24 }
 0x3cb   : > { %v2848_v37 = vpop.f32.mrf.mxu2 }
 0x3cc   : > { %v2859_v52 = vadd.f32 %v2848_v37, %v2757_v8  ;;  %v3773_v37 = vunpack.i.l.bf16 %v3772_v29 }
 0x3ce   : > { %v3049_v12 = vpop.f32.mrf.mxu0  ;;  %v3175_v15 = vsel %vm860_vm10, %v4340_v58, %v3773_v37 }
 0x3cf   : > { %v3062_v51 = vadd.f32 %v3049_v12, %v2960_v48 }
 0x3d1   : > { %v3070_v44 = vmax.f32 %v3062_v51, 0.0  ;;  %v3767_v55 = vpop.permute.xlu1 %3766 }
 0x3d3   : > { %v3785_v30 = vpack.i.bf16 %v3070_v44, %v3069_v57  ;;  %v2850_v23 = vpop.f32.mrf.mxu2 }
 0x3d4   : > { %v2860_v25 = vadd.f32 %v2850_v23, %v2758_v17 }
 0x3d5   : > { %3786 = vrot.lane.b32.xlu2 %v3785_v30, %s3920_s21  ;;  %v2950_v43 = vpop.f32.mrf.mxu3  ;;  %v3774_v30 = vunpack.i.h.bf16 %v3772_v29 }
 0x3d6   : > { %v2961_v14 = vadd.f32 %v2950_v43, %v2859_v52 }
 0x3d7   : > { %v3176_v36 = vsel %vm860_vm10, %v4397_v53, %v3774_v30 }
 0x3dc   : > { %v3052_v7 = vpop.f32.mrf.mxu0 }
 0x3dd   : > { %3796 = vrot.lane.b32.xlu2 %v3795_v18, %s3922_s8  ;;  %v2952_v1 = vpop.f32.mrf.mxu3  ;;  %v3063_v9 = vadd.f32 %v3052_v7, %v2961_v14 }
 0x3de   : > { %v2962_v46 = vadd.f32 %v2952_v1, %v2860_v25  ;;  %v3769_v1 = vunpack.i.h.bf16 %v3767_v55  ;;  %v3768_v25 = vunpack.i.l.bf16 %v3767_v55 }
 0x3df   : > { %v3071_v11 = vmax.f32 %v3063_v9, 0.0 }
 0x3e4   : > { %v3054_v5 = vpop.f32.mrf.mxu0 }
 0x3e5   : > { %v3064_v50 = vadd.f32 %v3054_v5, %v2962_v46  ;;  %v3174_v46 = vsel %vm860_vm10, %v4379_v31, %v3769_v1  ;;  %v3173_v5 = vsel %vm860_vm10, %v4325_v38, %v3768_v25 }
 0x3e7   : > { %v3072_v6 = vmax.f32 %v3064_v50, 0.0 }
 0x3e9   : > { %v3790_v62 = vpack.i.bf16 %v3072_v6, %v3071_v11 }
 0x3eb   : > { %3791 = vrot.lane.b32.xlu0 %v3790_v62, %s3920_s21  ;;  %s5014_s21 = scalar_lea.vmem [#allocation10], %s3307_s15 }
 0x3ec   : > { %s3224_s29 = sshll.u32 %s5014_s21, 4  ;;  %s3225_s29 = int_to_ptr.vmem [resolvable:$true] %s3224_s29 }
 0x3f3   : > { %3801 = vrot.lane.b32.xlu0 %v3800_v47, %s3922_s8  ;;  %s3857_s8 = sshra.s32 %s3227_s28, 4  ;;  %s3858_s8 = int_to_ptr.hbm [resolvable:$true] %s3857_s8 }
 0x3f4   : > { %s3859_s17 = scalar_lea.hbm %s3858_s8, 32  ;;  %p3864_p3 = scmp.lt.s32.totalorder %s3858_s8, %s5085_s7 }
 0x3f5   : > { %p3860_p0 = scmp.ne.s32.totalorder %s3858_s8, %s3859_s17  ;;  %p3865_p4 = scmp.lt.s32.totalorder %s3863_s14, %s3859_s17 }
 0x3f7   : > { %v3777_v10 = vpop.permute.xlu0 %3776  ;;  %p3861_p1 = pnand %p3860_p0, %p4003_p5  ;;  %p3866_p7 = por %p3865_p4, %p3864_p3 }
 0x3f8   : > { %v3779_v34 = vunpack.i.h.bf16 %v3777_v10  ;;  %v3778_v41 = vunpack.i.l.bf16 %v3777_v10 }
 0x3f9   : > { %p3862_p2 = pneg %p3861_p1 }
 0x3fa   : > { %v3179_v63 = vsel %vm3177_vm5, %v3170_v42, %v3779_v34  ;;  %v3178_v21 = vsel %vm3177_vm5, %v3169_v60, %v3778_v41 }
 0x3fb   : > { %v3188_v49 = vsel %vm3186_vm6, %v3179_v63, %v3754_v32  ;;  %v3187_v0 = vsel %vm3186_vm6, %v3178_v21, %v3753_v45  ;;  %p3867_p8 = pnand %p3866_p7, %p3862_p2 }
 0x3fc   : > { %v3661_v26 = vpack.c.bf16 %v3188_v49, %v3187_v0 }
 0x3fe   : > { %3662 = vst [vmem:[%s5014_s21] sm:$0xff] %v3661_v26  }
 0x407   : > { %v3782_v2 = vpop.permute.xlu1 %3781 }
 0x408   : > { %v3784_v54 = vunpack.i.h.bf16 %v3782_v2  ;;  %v3783_v59 = vunpack.i.l.bf16 %v3782_v2 }
 0x40a   : > { %v3180_v12 = vsel %vm3177_vm5, %v3171_v4, %v3783_v59  ;;  %v3181_v51 = vsel %vm3177_vm5, %v3172_v16, %v3784_v54 }
 0x40f   : > { %v3807_v43 = vpop.permute.xlu1 %3806 }
 0x410   : > { %v3809_v7 = vunpack.i.h.bf16 %v3807_v43  ;;  %v3808_v27 = vunpack.i.l.bf16 %v3807_v43 }
 0x42f   : > { %v3787_v19 = vpop.permute.xlu2 %3786 }
 0x430   : > { %v3789_v9 = vunpack.i.h.bf16 %v3787_v19  ;;  %v3788_v53 = vunpack.i.l.bf16 %v3787_v19 }
 0x432   : > { %v3183_v6 = vsel %vm3177_vm5, %v3174_v46, %v3789_v9  ;;  %v3182_v62 = vsel %vm3177_vm5, %v3173_v5, %v3788_v53 }
 0x437   : > { %v3797_v40 = vpop.permute.xlu2 %3796 }
 0x438   : > { %v3799_v48 = vunpack.i.h.bf16 %v3797_v40  ;;  %v3798_v20 = vunpack.i.l.bf16 %v3797_v40 }
 0x43a   : > { %v3189_v57 = vsel %vm3186_vm6, %v3180_v12, %v3798_v20  ;;  %v3190_v44 = vsel %vm3186_vm6, %v3181_v51, %v3799_v48 }
 0x43b   : > { %v3666_v13 = vpack.c.bf16 %v3190_v44, %v3189_v57 }
 0x43d   : > { %3678 = vst [vmem:[%s5014_s21 + $0x8] sm:$0xff] %v3666_v13  }
 0x45d   : > { %v3792_v3 = vpop.permute.xlu0 %3791 }
 0x45e   : > { %v3794_v18 = vunpack.i.h.bf16 %v3792_v3  ;;  %v3793_v33 = vunpack.i.l.bf16 %v3792_v3 }
 0x460   : > { %v3185_v8 = vsel %vm3177_vm5, %v3176_v36, %v3794_v18  ;;  %v3184_v23 = vsel %vm3177_vm5, %v3175_v15, %v3793_v33 }
 0x461   : > { %v3194_v17 = vsel %vm3186_vm6, %v3185_v8, %v3809_v7  ;;  %v3193_v52 = vsel %vm3186_vm6, %v3184_v23, %v3808_v27 }
 0x462   : > { %v3676_v14 = vpack.c.bf16 %v3194_v17, %v3193_v52 }
 0x464   : > { %3680 = vst [vmem:[%s5014_s21 + $0x18] sm:$0xff] %v3676_v14  }
 0x465   : > { %v3802_v58 = vpop.permute.xlu0 %3801 }
 0x466   : > { %v3804_v50 = vunpack.i.h.bf16 %v3802_v58  ;;  %v3803_v11 = vunpack.i.l.bf16 %v3802_v58 }
 0x468   : > { %v3192_v39 = vsel %vm3186_vm6, %v3183_v6, %v3804_v50  ;;  %v3191_v47 = vsel %vm3186_vm6, %v3182_v62, %v3803_v11 }
 0x469   : > { %v3671_v35 = vpack.c.bf16 %v3192_v39, %v3191_v47 }
 0x46b   : > { %3679 = vst [vmem:[%s5014_s21 + $0x10] sm:$0xff] %v3671_v35  }
 0x46c   : > { %3870 = shalt.err (!%p3867_p8)
}
 0x46d   : > { %s3923_s16 = smov 64   ;;  %s3924_s21 = smov 4  }
 0x46e   : > { %3691 = dma.vmem_to_hbm [thread:$0]  (%p4003_p5), %s3225_s29, 512, %s3227_s28, %s3212_s9, %s3923_s16, %s3923_s16, %s3924_s21  }
 0x46f PF: > { %p3703_p9 = scmp.ge.s32.totalorder %s3909_s27, 2  ;;  %s3241_s20 = sand.u32 1, %s3897_s24  }
 0x470   : > { %s3242_s22 = scalar_lea.sflag [#allocation9], %s3241_s20 }
 0x471   : > { %p3698_p10 = pnand %p3703_p9, %p4007_p6 }
 0x473   : > { %p3699_p11 = pneg %p3698_p10 }
 0x475   : > { %3892 = dma.done.wait (%p3699_p11), %s3242_s22, 512  }
 0x476   : > { %3894 = vsyncadd (%p3699_p11), %s3242_s22, 4294966784  ;;  %p18_p12 = scmp.ge.s32.totalorder %s3990_s30, 6   ;;  %s5094_s24 = smov %s3901_s25 }
 0x477   : > { %s5095_s25 = smov %s3905_s26  ;;  %s5096_s26 = smov %s4001_s10 }
 0x478   : > { %s5097_s27 = smov %s3990_s30  ;;  %20 = sbr.rel (!%p18_p12) target bundleno = 4 (0x4), region = 106 }
 0x47d   :  { %3248 = vsyncpa [#allocation8], 1 }
 0x47e   :  { %3250 = vsyncpa [#allocation8 + $0x1], 1 }
 0x47f   :  { %3251 = vsyncpa [#allocation9], 1 }
 0x480   :  { %3253 = vsyncpa [#allocation9 + $0x1], 1 }

</bundles_post_ra>
